<compile_context>
chip_gen: v7x
topology: tpu7x:2x2x1
jax: 0.10.0
libtpu: 0.0.40
codegen_flags: <defaults>
</compile_context>

<pallas_src>
import functools
import math

import jax
import jax.numpy as jnp
from jax import lax
from jax.experimental import pallas as pl
from jax.experimental.pallas import tpu as pltpu

# Make the pure-JAX reference use full-precision f32 matmuls so the tolerance
# reflects real algorithmic error, not XLA's default bf16 matmul passes.
jax.config.update("jax_default_matmul_precision", "highest")

# Contract the leading (time) dim of both 2-D operands: z^T @ X without a transpose.
_DN_CONTRACT_ROWS = (((0,), (0,)), ((), ()))


def _pick_batch_block(B, per_batch_block_bytes, *, cap=8, min_blocks=1,
                      vmem_budget_bytes=8 << 20):
    """Largest divisor of B that is <= cap, keeps >= min_blocks grid steps, and keeps
    the double-buffered per-block footprint under a v7x-safe VMEM budget."""
    cap = max(1, min(cap, vmem_budget_bytes // max(per_batch_block_bytes, 1)))
    best = 1
    for bb in range(1, min(B, cap) + 1):
        if B % bb == 0 and B // bb >= min_blocks:
            best = bb
    return best


# --------------------------------------------------------------------------------------
# Kernel 1: fused encoder (Linear(C*K -> E)) + per-batch Gram matrix G = z_x^T z_x
# --------------------------------------------------------------------------------------
def _encode_gram_kernel(x_ref, wet_ref, be_ref, z_ref, g_ref, *, input_len, bb):
    wet = wet_ref[...]                      # (CK, E)  pre-transposed weight
    be = be_ref[...]                        # (1, E)
    for b in range(bb):                     # static unroll over the batch block
        rows = x_ref[b]                     # (L+O, CK)
        z = jnp.dot(rows, wet, preferred_element_type=jnp.float32) + be
        z_ref[b] = z.astype(z_ref.dtype)    # (L+O, E)
        zx = z[:input_len]                  # (L, E)  encoded x-dates only
        g_ref[b] = lax.dot_general(
            zx, zx, _DN_CONTRACT_ROWS,
            preferred_element_type=jnp.float32).astype(g_ref.dtype)  # (E, E)


def encode_gram_pallas(enc_rows, we_t, be2, *, input_len, bb):
    B, R, CK = enc_rows.shape
    E = we_t.shape[1]
    kernel = functools.partial(_encode_gram_kernel, input_len=input_len, bb=bb)
    return pl.pallas_call(
        kernel,
        out_shape=[jax.ShapeDtypeStruct((B, R, E), jnp.float32),
                   jax.ShapeDtypeStruct((B, E, E), jnp.float32)],
        grid_spec=pltpu.PrefetchScalarGridSpec(
            num_scalar_prefetch=0,
            grid=(B // bb,),
            in_specs=[pl.BlockSpec((bb, R, CK), lambda i: (i, 0, 0)),
                      pl.BlockSpec((CK, E), lambda i: (0, 0)),     # grid-invariant
                      pl.BlockSpec((1, E), lambda i: (0, 0))],      # grid-invariant
            out_specs=[pl.BlockSpec((bb, R, E), lambda i: (i, 0, 0)),
                       pl.BlockSpec((bb, E, E), lambda i: (i, 0, 0))],
        ),
        compiler_params=pltpu.CompilerParams(dimension_semantics=("parallel",)),
    )(enc_rows, we_t, be2)


# --------------------------------------------------------------------------------------
# Kernel 2: fused KPLayer loop (num iterations) + decoder, everything VMEM-resident.
# --------------------------------------------------------------------------------------
def _koopman_decode_kernel(zall_ref, xvar_ref, ginv_ref, wdt_ref, bd_ref,
                           rec_ref, pred_ref, *, input_len, num, bb):
    wdt = wdt_ref[...]                      # (V, Dout)  pre-transposed decoder weight
    bd = bd_ref[...]                        # (1, Dout)
    for b in range(bb):                     # static unroll over the batch block
        z_all = zall_ref[b]                 # (L+O, E)
        z = z_all[:input_len]               # (L, E)
        pz = z_all[input_len:]              # (O, E)
        ginv = ginv_ref[b]                  # (E, E)  = (z^T z)^-1, iteration-invariant
        label = xvar_ref[b]                 # (L, V)
        rec_sum = None
        pred_sum = None
        for it in range(num):
            ztl = lax.dot_general(z, label, _DN_CONTRACT_ROWS,
                                  preferred_element_type=jnp.float32)      # (E, V)
            kop = jnp.dot(ginv, ztl, preferred_element_type=jnp.float32)   # (E, V)
            rec = jnp.dot(z, kop, preferred_element_type=jnp.float32)      # (L, V)
            pred = jnp.dot(pz, kop, preferred_element_type=jnp.float32)    # (O, V)
            rec_sum = rec if rec_sum is None else rec_sum + rec
            pred_sum = pred if pred_sum is None else pred_sum + pred
            if it + 1 < num:                # peel the dead last-iteration label update
                label = label - rec
        # decoder: Linear(V -> Dout), fused so rec_sum/pred_sum never hit HBM
        rec_ref[b] = (jnp.dot(rec_sum, wdt, preferred_element_type=jnp.float32)
                      + bd).astype(rec_ref.dtype)
        pred_ref[b] = (jnp.dot(pred_sum, wdt, preferred_element_type=jnp.float32)
                       + bd).astype(pred_ref.dtype)


def koopman_decode_pallas(z_all, x_var, ginv, wd_t, bd2, *, input_len, num, bb):
    B, R, E = z_all.shape
    O = R - input_len
    V = x_var.shape[-1]
    Dout = wd_t.shape[1]
    kernel = functools.partial(_koopman_decode_kernel, input_len=input_len, num=num, bb=bb)
    return pl.pallas_call(
        kernel,
        out_shape=[jax.ShapeDtypeStruct((B, input_len, Dout), jnp.float32),
                   jax.ShapeDtypeStruct((B, O, Dout), jnp.float32)],
        grid_spec=pltpu.PrefetchScalarGridSpec(
            num_scalar_prefetch=0,
            grid=(B // bb,),
            in_specs=[pl.BlockSpec((bb, R, E), lambda i: (i, 0, 0)),
                      pl.BlockSpec((bb, input_len, V), lambda i: (i, 0, 0)),
                      pl.BlockSpec((bb, E, E), lambda i: (i, 0, 0)),
                      pl.BlockSpec((V, Dout), lambda i: (0, 0)),    # grid-invariant
                      pl.BlockSpec((1, Dout), lambda i: (0, 0))],    # grid-invariant
            out_specs=[pl.BlockSpec((bb, input_len, Dout), lambda i: (i, 0, 0)),
                       pl.BlockSpec((bb, O, Dout), lambda i: (i, 0, 0))],
        ),
        compiler_params=pltpu.CompilerParams(dimension_semantics=("parallel",)),
    )(z_all, x_var, ginv, wd_t, bd2)


# --------------------------------------------------------------------------------------
# TimeVarKP forward: 2 Pallas launches + one tiny batched (E,E) inverse in XLA.
# --------------------------------------------------------------------------------------
def prepare_params(we, be, wd, bd):
    """Hoisted out of the jitted forward: transpose weights / reshape biases once."""
    return we.T, be.reshape(1, -1), wd.T, bd.reshape(1, -1)


def time_var_kp_forward(t2v_x, x_var, t2v_y, we_t, be2, wd_t, bd2, *,
                        num=3, bb_cap=8, min_grid_blocks=1):
    # min_grid_blocks: 1 for single-TC chips (v5e/v6e); pass 2 on v7x so both
    # TensorCores get a batch block.
    B, L, C, K = t2v_x.shape
    O = t2v_y.shape[1]
    CK = C * K
    E = we_t.shape[1]
    V = x_var.shape[-1]
    Dout = wd_t.shape[1]
    R = L + O

    # Batch-block size: amortize per-grid-step overhead, stay within a v7x-safe budget.
    per_batch_bytes = 4 * 2 * (R * E + L * V + E * E + L * Dout + O * Dout)  # dbl-buffered f32
    bb = _pick_batch_block(B, per_batch_bytes, cap=bb_cap, min_blocks=min_grid_blocks)

    # Fused encoder + Gram (one kernel over x- and y-date rows; reshape/concat are views/cheap).
    enc_rows = jnp.concatenate(
        [t2v_x.reshape(B, L, CK), t2v_y.reshape(B, O, CK)], axis=1)      # (B, L+O, CK)
    z_all, g = encode_gram_pallas(enc_rows, we_t, be2, input_len=L, bb=bb)

    # TODO(synk): torch.linalg.lstsq has no Pallas equivalent; the iteration-invariant
    # Gram matrix is inverted once by a tiny batched XLA op, and kop = Ginv @ ztl is
    # computed on the MXU inside the fused kernel.
    ginv = jnp.linalg.inv(g)                                             # (B, E, E)

    rec_dec, pred_dec = koopman_decode_pallas(
        z_all, x_var, ginv, wd_t, bd2, input_len=L, num=num, bb=bb)
    return rec_dec, pred_dec                                             # (B,L,Dout),(B,O,Dout)


# --------------------------------------------------------------------------------------
# Pure-JAX reference of the PyTorch forward
# --------------------------------------------------------------------------------------
def reference_forward(t2v_x, x_var, t2v_y, we, be, wd, bd, *, num=3):
    B, L, C, K = t2v_x.shape
    O = t2v_y.shape[1]
    z = t2v_x.reshape(B, L, C * K) @ we.T + be
    pred_z = t2v_y.reshape(B, O, C * K) @ we.T + be
    label = x_var
    rec_sum, pred_sum = 0.0, 0.0
    for _ in range(num):
        g = jnp.einsum("ble,blf->bef", z, z)
        ztl = jnp.einsum("ble,blv->bev", z, label)
        kop = jnp.linalg.solve(g, ztl)      # lstsq solution for full-rank, overdetermined z
        pred_sum = pred_sum + pred_z @ kop
        rec = z @ kop
        rec_sum = rec_sum + rec
        label = label - rec
    # pred_len = self.step = 1 -> no additional Koopman rollout steps
    return rec_sum @ wd.T + bd, pred_sum @ wd.T + bd


def init_params(key, ck, dynamic_dim, var_dim, out_dim):
    """encoder = Linear(C*K, dynamic_dim); decoder = Linear(var_dim, out_dim)."""
    k0, k1, k2, k3 = jax.random.split(key, 4)
    bnd_e = 1.0 / math.sqrt(ck)
    we = jax.random.uniform(k0, (dynamic_dim, ck), jnp.float32, -bnd_e, bnd_e)
    be = jax.random.uniform(k1, (dynamic_dim,), jnp.float32, -bnd_e, bnd_e)
    bnd_d = 1.0 / math.sqrt(var_dim)
    wd = jax.random.uniform(k2, (out_dim, var_dim), jnp.float32, -bnd_d, bnd_d)
    bd = jax.random.uniform(k3, (out_dim,), jnp.float32, -bnd_d, bnd_d)
    return we, be, wd, bd


if __name__ == "__main__":
    # Small shapes consistent with TimeVarKP.forward (keep L > dynamic_dim so lstsq is overdetermined).
    B, L, O = 2, 32, 16      # batch, input timesteps, prediction timesteps
    C, K = 4, 4              # date channels x time-embedding feats -> encoder in = 16
    E = 16                   # dynamic_dim (latent Koopman dim)
    V = 8                    # x_var feature dim (enc_in)
    Dout = 16                # decoder output dim

    key = jax.random.PRNGKey(0)
    kx, kv, ky, kp = jax.random.split(key, 4)
    t2v_x = jax.random.normal(kx, (B, L, C, K), jnp.float32)
    x_var = jax.random.normal(kv, (B, L, V), jnp.float32)
    t2v_y = jax.random.normal(ky, (B, O, C, K), jnp.float32)
    we, be, wd, bd = init_params(kp, C * K, E, V, Dout)

    # Parameter prep (transpose / reshape) hoisted out of the jitted forward.
    we_t, be2, wd_t, bd2 = prepare_params(we, be, wd, bd)

    fwd = jax.jit(time_var_kp_forward)
    rec_out, pred_out = fwd(t2v_x, x_var, t2v_y, we_t, be2, wd_t, bd2)
    rec_out, pred_out = jax.block_until_ready((rec_out, pred_out))

    rec_ref, pred_ref = reference_forward(t2v_x, x_var, t2v_y, we, be, wd, bd)

    assert rec_out.shape == (B, L, Dout) and pred_out.shape == (B, O, Dout)
    # Tolerance note: the normal-equation path (explicit (Z^T Z)^-1) amplifies f32 matmul
    # rounding by cond(Z^T Z); kernel and reference agree to ~1e-3, 1e-2 gives margin.
    assert jnp.allclose(rec_out, rec_ref, atol=1e-2, rtol=1e-2), \
        float(jnp.max(jnp.abs(rec_out - rec_ref)))
    assert jnp.allclose(pred_out, pred_ref, atol=1e-2, rtol=1e-2), \
        float(jnp.max(jnp.abs(pred_out - pred_ref)))

    print("KERNEL_OK")
</pallas_src>

<mosaic_0001>
module attributes {stable_mosaic.version = 11 : i64} {
  func.func @_encode_gram_kernel(%arg0: i32, %arg1: memref<2x48x16xf32, #tpu.memory_space<vmem>>, %arg2: memref<16x16xf32, #tpu.memory_space<vmem>>, %arg3: memref<1x16xf32, #tpu.memory_space<vmem>>, %arg4: memref<2x48x16xf32, #tpu.memory_space<vmem>>, %arg5: memref<2x16x16xf32, #tpu.memory_space<vmem>>) attributes {dimension_semantics = [#tpu.dimension_semantics<parallel>], iteration_bounds = array<i64: 1>, scalar_prefetch = 0 : i64, scratch_operands = 0 : i64, tpu.core_type = #tpu.core_type<tc>, window_params = [{transform_indices = @transform_0, window_bounds = array<i64: 2, 48, 16>}, {pipeline_mode = #tpu.pipeline_mode<synchronous>, transform_indices = @transform_1, window_bounds = array<i64: 16, 16>}, {pipeline_mode = #tpu.pipeline_mode<synchronous>, transform_indices = @transform_2, window_bounds = array<i64: 1, 16>}, {transform_indices = @transform_3, window_bounds = array<i64: 2, 48, 16>}, {transform_indices = @transform_4, window_bounds = array<i64: 2, 16, 16>}]} {
    %c0 = arith.constant 0 : index
    %c0_0 = arith.constant 0 : index
    %0 = vector.load %arg2[%c0, %c0_0] : memref<16x16xf32, #tpu.memory_space<vmem>>, vector<16x16xf32>
    %c0_1 = arith.constant 0 : index
    %c0_2 = arith.constant 0 : index
    %1 = vector.load %arg3[%c0_1, %c0_2] : memref<1x16xf32, #tpu.memory_space<vmem>>, vector<1x16xf32>
    %c0_3 = arith.constant 0 : index
    %c0_4 = arith.constant 0 : index
    %c0_5 = arith.constant 0 : index
    %2 = vector.load %arg1[%c0_3, %c0_4, %c0_5] : memref<2x48x16xf32, #tpu.memory_space<vmem>>, vector<1x48x16xf32>
    %3 = vector.shape_cast %2 : vector<1x48x16xf32> to vector<48x16xf32>
    %cst = arith.constant dense<0.000000e+00> : vector<48x16xf32>
    %4 = tpu.matmul %3, %0, %cst {dimension_numbers = #tpu.dot_dimension_numbers<[1], [0], [0], [1], [0, 0, 1, 1], [], []>, precision = #tpu.contract_precision<fp32>} : vector<48x16xf32>, vector<16x16xf32>, vector<48x16xf32> -> vector<48x16xf32>
    %5 = vector.broadcast %1 : vector<1x16xf32> to vector<48x16xf32>
    %6 = arith.addf %4, %5 : vector<48x16xf32>
    %c0_6 = arith.constant 0 : index
    %c0_7 = arith.constant 0 : index
    %c0_8 = arith.constant 0 : index
    %7 = vector.load %arg4[%c0_6, %c0_7, %c0_8] : memref<2x48x16xf32, #tpu.memory_space<vmem>>, vector<1x48x16xf32>
    %8 = vector.shape_cast %7 : vector<1x48x16xf32> to vector<48x16xf32>
    %9 = vector.shape_cast %6 : vector<48x16xf32> to vector<1x48x16xf32>
    tpu.vector_store %arg4[%c0_6, %c0_7, %c0_8], %9 {strides = array<i32>} : memref<2x48x16xf32, #tpu.memory_space<vmem>>, vector<1x48x16xf32>,
    %10 = vector.extract_strided_slice %6 {offsets = [0, 0], sizes = [32, 16], strides = [1, 1]} : vector<48x16xf32> to vector<32x16xf32>
    %cst_9 = arith.constant dense<0.000000e+00> : vector<16x16xf32>
    %11 = tpu.matmul %10, %10, %cst_9 {dimension_numbers = #tpu.dot_dimension_numbers<[0], [0], [1], [1], [0, 1, 1, 1], [], []>, precision = #tpu.contract_precision<fp32>} : vector<32x16xf32>, vector<32x16xf32>, vector<16x16xf32> -> vector<16x16xf32>
    %c0_10 = arith.constant 0 : index
    %c0_11 = arith.constant 0 : index
    %c0_12 = arith.constant 0 : index
    %12 = vector.load %arg5[%c0_10, %c0_11, %c0_12] : memref<2x16x16xf32, #tpu.memory_space<vmem>>, vector<1x16x16xf32>
    %13 = vector.shape_cast %12 : vector<1x16x16xf32> to vector<16x16xf32>
    %14 = vector.shape_cast %11 : vector<16x16xf32> to vector<1x16x16xf32>
    tpu.vector_store %arg5[%c0_10, %c0_11, %c0_12], %14 {strides = array<i32>} : memref<2x16x16xf32, #tpu.memory_space<vmem>>, vector<1x16x16xf32>,
    %c1 = arith.constant 1 : index
    %c0_13 = arith.constant 0 : index
    %c0_14 = arith.constant 0 : index
    %15 = vector.load %arg1[%c1, %c0_13, %c0_14] : memref<2x48x16xf32, #tpu.memory_space<vmem>>, vector<1x48x16xf32>
    %16 = vector.shape_cast %15 : vector<1x48x16xf32> to vector<48x16xf32>
    %cst_15 = arith.constant dense<0.000000e+00> : vector<48x16xf32>
    %17 = tpu.matmul %16, %0, %cst_15 {dimension_numbers = #tpu.dot_dimension_numbers<[1], [0], [0], [1], [0, 0, 1, 1], [], []>, precision = #tpu.contract_precision<fp32>} : vector<48x16xf32>, vector<16x16xf32>, vector<48x16xf32> -> vector<48x16xf32>
    %18 = vector.broadcast %1 : vector<1x16xf32> to vector<48x16xf32>
    %19 = arith.addf %17, %18 : vector<48x16xf32>
    %c1_16 = arith.constant 1 : index
    %c0_17 = arith.constant 0 : index
    %c0_18 = arith.constant 0 : index
    %20 = vector.load %arg4[%c1_16, %c0_17, %c0_18] : memref<2x48x16xf32, #tpu.memory_space<vmem>>, vector<1x48x16xf32>
    %21 = vector.shape_cast %20 : vector<1x48x16xf32> to vector<48x16xf32>
    %22 = vector.shape_cast %19 : vector<48x16xf32> to vector<1x48x16xf32>
    tpu.vector_store %arg4[%c1_16, %c0_17, %c0_18], %22 {strides = array<i32>} : memref<2x48x16xf32, #tpu.memory_space<vmem>>, vector<1x48x16xf32>,
    %23 = vector.extract_strided_slice %19 {offsets = [0, 0], sizes = [32, 16], strides = [1, 1]} : vector<48x16xf32> to vector<32x16xf32>
    %cst_19 = arith.constant dense<0.000000e+00> : vector<16x16xf32>
    %24 = tpu.matmul %23, %23, %cst_19 {dimension_numbers = #tpu.dot_dimension_numbers<[0], [0], [1], [1], [0, 1, 1, 1], [], []>, precision = #tpu.contract_precision<fp32>} : vector<32x16xf32>, vector<32x16xf32>, vector<16x16xf32> -> vector<16x16xf32>
    %c1_20 = arith.constant 1 : index
    %c0_21 = arith.constant 0 : index
    %c0_22 = arith.constant 0 : index
    %25 = vector.load %arg5[%c1_20, %c0_21, %c0_22] : memref<2x16x16xf32, #tpu.memory_space<vmem>>, vector<1x16x16xf32>
    %26 = vector.shape_cast %25 : vector<1x16x16xf32> to vector<16x16xf32>
    %27 = vector.shape_cast %24 : vector<16x16xf32> to vector<1x16x16xf32>
    tpu.vector_store %arg5[%c1_20, %c0_21, %c0_22], %27 {strides = array<i32>} : memref<2x16x16xf32, #tpu.memory_space<vmem>>, vector<1x16x16xf32>,
    return
  }
  func.func @transform_0(%arg0: i32) -> (i32, i32, i32) {
    %c0_i32 = arith.constant 0 : i32
    %c0_i32_0 = arith.constant 0 : i32
    %c0_i32_1 = arith.constant 0 : i32
    return %arg0, %c0_i32, %c0_i32_0 : i32, i32, i32
  }
  func.func @transform_1(%arg0: i32) -> (i32, i32) {
    %c0_i32 = arith.constant 0 : i32
    %c0_i32_0 = arith.constant 0 : i32
    %c0_i32_1 = arith.constant 0 : i32
    return %c0_i32, %c0_i32_0 : i32, i32
  }
  func.func @transform_2(%arg0: i32) -> (i32, i32) {
    %c0_i32 = arith.constant 0 : i32
    %c0_i32_0 = arith.constant 0 : i32
    %c0_i32_1 = arith.constant 0 : i32
    return %c0_i32, %c0_i32_0 : i32, i32
  }
  func.func @transform_3(%arg0: i32) -> (i32, i32, i32) {
    %c0_i32 = arith.constant 0 : i32
    %c0_i32_0 = arith.constant 0 : i32
    %c0_i32_1 = arith.constant 0 : i32
    return %arg0, %c0_i32, %c0_i32_0 : i32, i32, i32
  }
  func.func @transform_4(%arg0: i32) -> (i32, i32, i32) {
    %c0_i32 = arith.constant 0 : i32
    %c0_i32_0 = arith.constant 0 : i32
    %c0_i32_1 = arith.constant 0 : i32
    return %arg0, %c0_i32, %c0_i32_0 : i32, i32, i32
  }
}

module attributes {stable_mosaic.version = 11 : i64} {
  func.func @_koopman_decode_kernel(%arg0: i32, %arg1: memref<2x48x16xf32, #tpu.memory_space<vmem>>, %arg2: memref<2x32x8xf32, #tpu.memory_space<vmem>>, %arg3: memref<2x16x16xf32, #tpu.memory_space<vmem>>, %arg4: memref<8x16xf32, #tpu.memory_space<vmem>>, %arg5: memref<1x16xf32, #tpu.memory_space<vmem>>, %arg6: memref<2x32x16xf32, #tpu.memory_space<vmem>>, %arg7: memref<2x16x16xf32, #tpu.memory_space<vmem>>) attributes {dimension_semantics = [#tpu.dimension_semantics<parallel>], iteration_bounds = array<i64: 1>, scalar_prefetch = 0 : i64, scratch_operands = 0 : i64, tpu.core_type = #tpu.core_type<tc>, window_params = [{transform_indices = @transform_0, window_bounds = array<i64: 2, 48, 16>}, {transform_indices = @transform_1, window_bounds = array<i64: 2, 32, 8>}, {transform_indices = @transform_2, window_bounds = array<i64: 2, 16, 16>}, {pipeline_mode = #tpu.pipeline_mode<synchronous>, transform_indices = @transform_3, window_bounds = array<i64: 8, 16>}, {pipeline_mode = #tpu.pipeline_mode<synchronous>, transform_indices = @transform_4, window_bounds = array<i64: 1, 16>}, {transform_indices = @transform_5, window_bounds = array<i64: 2, 32, 16>}, {transform_indices = @transform_6, window_bounds = array<i64: 2, 16, 16>}]} {
    %c0 = arith.constant 0 : index
    %c0_0 = arith.constant 0 : index
    %0 = vector.load %arg4[%c0, %c0_0] : memref<8x16xf32, #tpu.memory_space<vmem>>, vector<8x16xf32>
    %c0_1 = arith.constant 0 : index
    %c0_2 = arith.constant 0 : index
    %1 = vector.load %arg5[%c0_1, %c0_2] : memref<1x16xf32, #tpu.memory_space<vmem>>, vector<1x16xf32>
    %c0_3 = arith.constant 0 : index
    %c0_4 = arith.constant 0 : index
    %c0_5 = arith.constant 0 : index
    %2 = vector.load %arg1[%c0_3, %c0_4, %c0_5] : memref<2x48x16xf32, #tpu.memory_space<vmem>>, vector<1x48x16xf32>
    %3 = vector.shape_cast %2 : vector<1x48x16xf32> to vector<48x16xf32>
    %4 = vector.extract_strided_slice %3 {offsets = [0, 0], sizes = [32, 16], strides = [1, 1]} : vector<48x16xf32> to vector<32x16xf32>
    %5 = vector.extract_strided_slice %3 {offsets = [32, 0], sizes = [16, 16], strides = [1, 1]} : vector<48x16xf32> to vector<16x16xf32>
    %c0_6 = arith.constant 0 : index
    %c0_7 = arith.constant 0 : index
    %c0_8 = arith.constant 0 : index
    %6 = vector.load %arg3[%c0_6, %c0_7, %c0_8] : memref<2x16x16xf32, #tpu.memory_space<vmem>>, vector<1x16x16xf32>
    %7 = vector.shape_cast %6 : vector<1x16x16xf32> to vector<16x16xf32>
    %c0_9 = arith.constant 0 : index
    %c0_10 = arith.constant 0 : index
    %c0_11 = arith.constant 0 : index
    %8 = vector.load %arg2[%c0_9, %c0_10, %c0_11] : memref<2x32x8xf32, #tpu.memory_space<vmem>>, vector<1x32x8xf32>
    %9 = vector.shape_cast %8 : vector<1x32x8xf32> to vector<32x8xf32>
    %cst = arith.constant dense<0.000000e+00> : vector<16x8xf32>
    %10 = tpu.matmul %4, %9, %cst {dimension_numbers = #tpu.dot_dimension_numbers<[0], [0], [1], [1], [0, 1, 1, 1], [], []>, precision = #tpu.contract_precision<fp32>} : vector<32x16xf32>, vector<32x8xf32>, vector<16x8xf32> -> vector<16x8xf32>
    %cst_12 = arith.constant dense<0.000000e+00> : vector<16x8xf32>
    %11 = tpu.matmul %7, %10, %cst_12 {dimension_numbers = #tpu.dot_dimension_numbers<[1], [0], [0], [1], [0, 0, 1, 1], [], []>, precision = #tpu.contract_precision<fp32>} : vector<16x16xf32>, vector<16x8xf32>, vector<16x8xf32> -> vector<16x8xf32>
    %cst_13 = arith.constant dense<0.000000e+00> : vector<32x8xf32>
    %12 = tpu.matmul %4, %11, %cst_13 {dimension_numbers = #tpu.dot_dimension_numbers<[1], [0], [0], [1], [0, 0, 1, 1], [], []>, precision = #tpu.contract_precision<fp32>} : vector<32x16xf32>, vector<16x8xf32>, vector<32x8xf32> -> vector<32x8xf32>
    %cst_14 = arith.constant dense<0.000000e+00> : vector<16x8xf32>
    %13 = tpu.matmul %5, %11, %cst_14 {dimension_numbers = #tpu.dot_dimension_numbers<[1], [0], [0], [1], [0, 0, 1, 1], [], []>, precision = #tpu.contract_precision<fp32>} : vector<16x16xf32>, vector<16x8xf32>, vector<16x8xf32> -> vector<16x8xf32>
    %14 = arith.subf %9, %12 : vector<32x8xf32>
    %cst_15 = arith.constant dense<0.000000e+00> : vector<16x8xf32>
    %15 = tpu.matmul %4, %14, %cst_15 {dimension_numbers = #tpu.dot_dimension_numbers<[0], [0], [1], [1], [0, 1, 1, 1], [], []>, precision = #tpu.contract_precision<fp32>} : vector<32x16xf32>, vector<32x8xf32>, vector<16x8xf32> -> vector<16x8xf32>
    %cst_16 = arith.constant dense<0.000000e+00> : vector<16x8xf32>
    %16 = tpu.matmul %7, %15, %cst_16 {dimension_numbers = #tpu.dot_dimension_numbers<[1], [0], [0], [1], [0, 0, 1, 1], [], []>, precision = #tpu.contract_precision<fp32>} : vector<16x16xf32>, vector<16x8xf32>, vector<16x8xf32> -> vector<16x8xf32>
    %cst_17 = arith.constant dense<0.000000e+00> : vector<32x8xf32>
    %17 = tpu.matmul %4, %16, %cst_17 {dimension_numbers = #tpu.dot_dimension_numbers<[1], [0], [0], [1], [0, 0, 1, 1], [], []>, precision = #tpu.contract_precision<fp32>} : vector<32x16xf32>, vector<16x8xf32>, vector<32x8xf32> -> vector<32x8xf32>
    %cst_18 = arith.constant dense<0.000000e+00> : vector<16x8xf32>
    %18 = tpu.matmul %5, %16, %cst_18 {dimension_numbers = #tpu.dot_dimension_numbers<[1], [0], [0], [1], [0, 0, 1, 1], [], []>, precision = #tpu.contract_precision<fp32>} : vector<16x16xf32>, vector<16x8xf32>, vector<16x8xf32> -> vector<16x8xf32>
    %19 = arith.addf %12, %17 : vector<32x8xf32>
    %20 = arith.addf %13, %18 : vector<16x8xf32>
    %21 = arith.subf %14, %17 : vector<32x8xf32>
    %cst_19 = arith.constant dense<0.000000e+00> : vector<16x8xf32>
    %22 = tpu.matmul %4, %21, %cst_19 {dimension_numbers = #tpu.dot_dimension_numbers<[0], [0], [1], [1], [0, 1, 1, 1], [], []>, precision = #tpu.contract_precision<fp32>} : vector<32x16xf32>, vector<32x8xf32>, vector<16x8xf32> -> vector<16x8xf32>
    %cst_20 = arith.constant dense<0.000000e+00> : vector<16x8xf32>
    %23 = tpu.matmul %7, %22, %cst_20 {dimension_numbers = #tpu.dot_dimension_numbers<[1], [0], [0], [1], [0, 0, 1, 1], [], []>, precision = #tpu.contract_precision<fp32>} : vector<16x16xf32>, vector<16x8xf32>, vector<16x8xf32> -> vector<16x8xf32>
    %cst_21 = arith.constant dense<0.000000e+00> : vector<32x8xf32>
    %24 = tpu.matmul %4, %23, %cst_21 {dimension_numbers = #tpu.dot_dimension_numbers<[1], [0], [0], [1], [0, 0, 1, 1], [], []>, precision = #tpu.contract_precision<fp32>} : vector<32x16xf32>, vector<16x8xf32>, vector<32x8xf32> -> vector<32x8xf32>
    %cst_22 = arith.constant dense<0.000000e+00> : vector<16x8xf32>
    %25 = tpu.matmul %5, %23, %cst_22 {dimension_numbers = #tpu.dot_dimension_numbers<[1], [0], [0], [1], [0, 0, 1, 1], [], []>, precision = #tpu.contract_precision<fp32>} : vector<16x16xf32>, vector<16x8xf32>, vector<16x8xf32> -> vector<16x8xf32>
    %26 = arith.addf %19, %24 : vector<32x8xf32>
    %27 = arith.addf %20, %25 : vector<16x8xf32>
    %cst_23 = arith.constant dense<0.000000e+00> : vector<32x16xf32>
    %28 = tpu.matmul %26, %0, %cst_23 {dimension_numbers = #tpu.dot_dimension_numbers<[1], [0], [0], [1], [0, 0, 1, 1], [], []>, precision = #tpu.contract_precision<fp32>} : vector<32x8xf32>, vector<8x16xf32>, vector<32x16xf32> -> vector<32x16xf32>
    %29 = vector.broadcast %1 : vector<1x16xf32> to vector<32x16xf32>
    %30 = arith.addf %28, %29 : vector<32x16xf32>
    %c0_24 = arith.constant 0 : index
    %c0_25 = arith.constant 0 : index
    %c0_26 = arith.constant 0 : index
    %31 = vector.load %arg6[%c0_24, %c0_25, %c0_26] : memref<2x32x16xf32, #tpu.memory_space<vmem>>, vector<1x32x16xf32>
    %32 = vector.shape_cast %31 : vector<1x32x16xf32> to vector<32x16xf32>
    %33 = vector.shape_cast %30 : vector<32x16xf32> to vector<1x32x16xf32>
    tpu.vector_store %arg6[%c0_24, %c0_25, %c0_26], %33 {strides = array<i32>} : memref<2x32x16xf32, #tpu.memory_space<vmem>>, vector<1x32x16xf32>,
    %cst_27 = arith.constant dense<0.000000e+00> : vector<16x16xf32>
    %34 = tpu.matmul %27, %0, %cst_27 {dimension_numbers = #tpu.dot_dimension_numbers<[1], [0], [0], [1], [0, 0, 1, 1], [], []>, precision = #tpu.contract_precision<fp32>} : vector<16x8xf32>, vector<8x16xf32>, vector<16x16xf32> -> vector<16x16xf32>
    %35 = vector.broadcast %1 : vector<1x16xf32> to vector<16x16xf32>
    %36 = arith.addf %34, %35 : vector<16x16xf32>
    %c0_28 = arith.constant 0 : index
    %c0_29 = arith.constant 0 : index
    %c0_30 = arith.constant 0 : index
    %37 = vector.load %arg7[%c0_28, %c0_29, %c0_30] : memref<2x16x16xf32, #tpu.memory_space<vmem>>, vector<1x16x16xf32>
    %38 = vector.shape_cast %37 : vector<1x16x16xf32> to vector<16x16xf32>
    %39 = vector.shape_cast %36 : vector<16x16xf32> to vector<1x16x16xf32>
    tpu.vector_store %arg7[%c0_28, %c0_29, %c0_30], %39 {strides = array<i32>} : memref<2x16x16xf32, #tpu.memory_space<vmem>>, vector<1x16x16xf32>,
    %c1 = arith.constant 1 : index
    %c0_31 = arith.constant 0 : index
    %c0_32 = arith.constant 0 : index
    %40 = vector.load %arg1[%c1, %c0_31, %c0_32] : memref<2x48x16xf32, #tpu.memory_space<vmem>>, vector<1x48x16xf32>
    %41 = vector.shape_cast %40 : vector<1x48x16xf32> to vector<48x16xf32>
    %42 = vector.extract_strided_slice %41 {offsets = [0, 0], sizes = [32, 16], strides = [1, 1]} : vector<48x16xf32> to vector<32x16xf32>
    %43 = vector.extract_strided_slice %41 {offsets = [32, 0], sizes = [16, 16], strides = [1, 1]} : vector<48x16xf32> to vector<16x16xf32>
    %c1_33 = arith.constant 1 : index
    %c0_34 = arith.constant 0 : index
    %c0_35 = arith.constant 0 : index
    %44 = vector.load %arg3[%c1_33, %c0_34, %c0_35] : memref<2x16x16xf32, #tpu.memory_space<vmem>>, vector<1x16x16xf32>
    %45 = vector.shape_cast %44 : vector<1x16x16xf32> to vector<16x16xf32>
    %c1_36 = arith.constant 1 : index
    %c0_37 = arith.constant 0 : index
    %c0_38 = arith.constant 0 : index
    %46 = vector.load %arg2[%c1_36, %c0_37, %c0_38] : memref<2x32x8xf32, #tpu.memory_space<vmem>>, vector<1x32x8xf32>
    %47 = vector.shape_cast %46 : vector<1x32x8xf32> to vector<32x8xf32>
    %cst_39 = arith.constant dense<0.000000e+00> : vector<16x8xf32>
    %48 = tpu.matmul %42, %47, %cst_39 {dimension_numbers = #tpu.dot_dimension_numbers<[0], [0], [1], [1], [0, 1, 1, 1], [], []>, precision = #tpu.contract_precision<fp32>} : vector<32x16xf32>, vector<32x8xf32>, vector<16x8xf32> -> vector<16x8xf32>
    %cst_40 = arith.constant dense<0.000000e+00> : vector<16x8xf32>
    %49 = tpu.matmul %45, %48, %cst_40 {dimension_numbers = #tpu.dot_dimension_numbers<[1], [0], [0], [1], [0, 0, 1, 1], [], []>, precision = #tpu.contract_precision<fp32>} : vector<16x16xf32>, vector<16x8xf32>, vector<16x8xf32> -> vector<16x8xf32>
    %cst_41 = arith.constant dense<0.000000e+00> : vector<32x8xf32>
    %50 = tpu.matmul %42, %49, %cst_41 {dimension_numbers = #tpu.dot_dimension_numbers<[1], [0], [0], [1], [0, 0, 1, 1], [], []>, precision = #tpu.contract_precision<fp32>} : vector<32x16xf32>, vector<16x8xf32>, vector<32x8xf32> -> vector<32x8xf32>
    %cst_42 = arith.constant dense<0.000000e+00> : vector<16x8xf32>
    %51 = tpu.matmul %43, %49, %cst_42 {dimension_numbers = #tpu.dot_dimension_numbers<[1], [0], [0], [1], [0, 0, 1, 1], [], []>, precision = #tpu.contract_precision<fp32>} : vector<16x16xf32>, vector<16x8xf32>, vector<16x8xf32> -> vector<16x8xf32>
    %52 = arith.subf %47, %50 : vector<32x8xf32>
    %cst_43 = arith.constant dense<0.000000e+00> : vector<16x8xf32>
    %53 = tpu.matmul %42, %52, %cst_43 {dimension_numbers = #tpu.dot_dimension_numbers<[0], [0], [1], [1], [0, 1, 1, 1], [], []>, precision = #tpu.contract_precision<fp32>} : vector<32x16xf32>, vector<32x8xf32>, vector<16x8xf32> -> vector<16x8xf32>
    %cst_44 = arith.constant dense<0.000000e+00> : vector<16x8xf32>
    %54 = tpu.matmul %45, %53, %cst_44 {dimension_numbers = #tpu.dot_dimension_numbers<[1], [0], [0], [1], [0, 0, 1, 1], [], []>, precision = #tpu.contract_precision<fp32>} : vector<16x16xf32>, vector<16x8xf32>, vector<16x8xf32> -> vector<16x8xf32>
    %cst_45 = arith.constant dense<0.000000e+00> : vector<32x8xf32>
    %55 = tpu.matmul %42, %54, %cst_45 {dimension_numbers = #tpu.dot_dimension_numbers<[1], [0], [0], [1], [0, 0, 1, 1], [], []>, precision = #tpu.contract_precision<fp32>} : vector<32x16xf32>, vector<16x8xf32>, vector<32x8xf32> -> vector<32x8xf32>
    %cst_46 = arith.constant dense<0.000000e+00> : vector<16x8xf32>
    %56 = tpu.matmul %43, %54, %cst_46 {dimension_numbers = #tpu.dot_dimension_numbers<[1], [0], [0], [1], [0, 0, 1, 1], [], []>, precision = #tpu.contract_precision<fp32>} : vector<16x16xf32>, vector<16x8xf32>, vector<16x8xf32> -> vector<16x8xf32>
    %57 = arith.addf %50, %55 : vector<32x8xf32>
    %58 = arith.addf %51, %56 : vector<16x8xf32>
    %59 = arith.subf %52, %55 : vector<32x8xf32>
    %cst_47 = arith.constant dense<0.000000e+00> : vector<16x8xf32>
    %60 = tpu.matmul %42, %59, %cst_47 {dimension_numbers = #tpu.dot_dimension_numbers<[0], [0], [1], [1], [0, 1, 1, 1], [], []>, precision = #tpu.contract_precision<fp32>} : vector<32x16xf32>, vector<32x8xf32>, vector<16x8xf32> -> vector<16x8xf32>
    %cst_48 = arith.constant dense<0.000000e+00> : vector<16x8xf32>
    %61 = tpu.matmul %45, %60, %cst_48 {dimension_numbers = #tpu.dot_dimension_numbers<[1], [0], [0], [1], [0, 0, 1, 1], [], []>, precision = #tpu.contract_precision<fp32>} : vector<16x16xf32>, vector<16x8xf32>, vector<16x8xf32> -> vector<16x8xf32>
    %cst_49 = arith.constant dense<0.000000e+00> : vector<32x8xf32>
    %62 = tpu.matmul %42, %61, %cst_49 {dimension_numbers = #tpu.dot_dimension_numbers<[1], [0], [0], [1], [0, 0, 1, 1], [], []>, precision = #tpu.contract_precision<fp32>} : vector<32x16xf32>, vector<16x8xf32>, vector<32x8xf32> -> vector<32x8xf32>
    %cst_50 = arith.constant dense<0.000000e+00> : vector<16x8xf32>
    %63 = tpu.matmul %43, %61, %cst_50 {dimension_numbers = #tpu.dot_dimension_numbers<[1], [0], [0], [1], [0, 0, 1, 1], [], []>, precision = #tpu.contract_precision<fp32>} : vector<16x16xf32>, vector<16x8xf32>, vector<16x8xf32> -> vector<16x8xf32>
    %64 = arith.addf %57, %62 : vector<32x8xf32>
    %65 = arith.addf %58, %63 : vector<16x8xf32>
    %cst_51 = arith.constant dense<0.000000e+00> : vector<32x16xf32>
    %66 = tpu.matmul %64, %0, %cst_51 {dimension_numbers = #tpu.dot_dimension_numbers<[1], [0], [0], [1], [0, 0, 1, 1], [], []>, precision = #tpu.contract_precision<fp32>} : vector<32x8xf32>, vector<8x16xf32>, vector<32x16xf32> -> vector<32x16xf32>
    %67 = vector.broadcast %1 : vector<1x16xf32> to vector<32x16xf32>
    %68 = arith.addf %66, %67 : vector<32x16xf32>
    %c1_52 = arith.constant 1 : index
    %c0_53 = arith.constant 0 : index
    %c0_54 = arith.constant 0 : index
    %69 = vector.load %arg6[%c1_52, %c0_53, %c0_54] : memref<2x32x16xf32, #tpu.memory_space<vmem>>, vector<1x32x16xf32>
    %70 = vector.shape_cast %69 : vector<1x32x16xf32> to vector<32x16xf32>
    %71 = vector.shape_cast %68 : vector<32x16xf32> to vector<1x32x16xf32>
    tpu.vector_store %arg6[%c1_52, %c0_53, %c0_54], %71 {strides = array<i32>} : memref<2x32x16xf32, #tpu.memory_space<vmem>>, vector<1x32x16xf32>,
    %cst_55 = arith.constant dense<0.000000e+00> : vector<16x16xf32>
    %72 = tpu.matmul %65, %0, %cst_55 {dimension_numbers = #tpu.dot_dimension_numbers<[1], [0], [0], [1], [0, 0, 1, 1], [], []>, precision = #tpu.contract_precision<fp32>} : vector<16x8xf32>, vector<8x16xf32>, vector<16x16xf32> -> vector<16x16xf32>
    %73 = vector.broadcast %1 : vector<1x16xf32> to vector<16x16xf32>
    %74 = arith.addf %72, %73 : vector<16x16xf32>
    %c1_56 = arith.constant 1 : index
    %c0_57 = arith.constant 0 : index
    %c0_58 = arith.constant 0 : index
    %75 = vector.load %arg7[%c1_56, %c0_57, %c0_58] : memref<2x16x16xf32, #tpu.memory_space<vmem>>, vector<1x16x16xf32>
    %76 = vector.shape_cast %75 : vector<1x16x16xf32> to vector<16x16xf32>
    %77 = vector.shape_cast %74 : vector<16x16xf32> to vector<1x16x16xf32>
    tpu.vector_store %arg7[%c1_56, %c0_57, %c0_58], %77 {strides = array<i32>} : memref<2x16x16xf32, #tpu.memory_space<vmem>>, vector<1x16x16xf32>,
    return
  }
  func.func @transform_0(%arg0: i32) -> (i32, i32, i32) {
    %c0_i32 = arith.constant 0 : i32
    %c0_i32_0 = arith.constant 0 : i32
    %c0_i32_1 = arith.constant 0 : i32
    return %arg0, %c0_i32, %c0_i32_0 : i32, i32, i32
  }
  func.func @transform_1(%arg0: i32) -> (i32, i32, i32) {
    %c0_i32 = arith.constant 0 : i32
    %c0_i32_0 = arith.constant 0 : i32
    %c0_i32_1 = arith.constant 0 : i32
    return %arg0, %c0_i32, %c0_i32_0 : i32, i32, i32
  }
  func.func @transform_2(%arg0: i32) -> (i32, i32, i32) {
    %c0_i32 = arith.constant 0 : i32
    %c0_i32_0 = arith.constant 0 : i32
    %c0_i32_1 = arith.constant 0 : i32
    return %arg0, %c0_i32, %c0_i32_0 : i32, i32, i32
  }
  func.func @transform_3(%arg0: i32) -> (i32, i32) {
    %c0_i32 = arith.constant 0 : i32
    %c0_i32_0 = arith.constant 0 : i32
    %c0_i32_1 = arith.constant 0 : i32
    return %c0_i32, %c0_i32_0 : i32, i32
  }
  func.func @transform_4(%arg0: i32) -> (i32, i32) {
    %c0_i32 = arith.constant 0 : i32
    %c0_i32_0 = arith.constant 0 : i32
    %c0_i32_1 = arith.constant 0 : i32
    return %c0_i32, %c0_i32_0 : i32, i32
  }
  func.func @transform_5(%arg0: i32) -> (i32, i32, i32) {
    %c0_i32 = arith.constant 0 : i32
    %c0_i32_0 = arith.constant 0 : i32
    %c0_i32_1 = arith.constant 0 : i32
    return %arg0, %c0_i32, %c0_i32_0 : i32, i32, i32
  }
  func.func @transform_6(%arg0: i32) -> (i32, i32, i32) {
    %c0_i32 = arith.constant 0 : i32
    %c0_i32_0 = arith.constant 0 : i32
    %c0_i32_1 = arith.constant 0 : i32
    return %arg0, %c0_i32, %c0_i32_0 : i32, i32, i32
  }
}

</mosaic_0001>

<bundles_post_ra>
// kernel: custom-call.11
= control target key start
LH: loop header
LB: loop body
LE: loop exit
PB: predicated region body
PF: predicated region fallthrough
CT: control target
= control target key end

     0   :  { %5 = vsyncpa [#allocation4], 0  ;;  %s963_s0 = inlined_call_operand.vmem [shape: f32[2,16,16], index: 0, kind: input, shape index: {}]   ;;  %s964_s1 = inlined_call_operand.vmem [shape: f32[2,16,16], index: 1, kind: output, shape index: {0}]   ;;  %s965_s2 = inlined_call_operand.hbm [shape: s32[2,16], index: 2, kind: output, shape index: {1}]   ;;  %s966_s3 = inlined_call_operand.vmem [shape: s32[2,16], index: 3, kind: output, shape index: {2}]  }
   0x1   :  { %7 = vsyncpa [#allocation4 + $0x1], 0  ;;  %s755_s12 = smov 0   ;;  %s757_s13 = smov 0  }
   0x2   :  { %s759_s14 = smov 0   ;;  %s761_s15 = smov 0  }
   0x3 LB: > { %s776_s16 = sadd.s32 4294967295, %s723_s15   ;;  %s565_s17 = sadd.s32 4294967294, %s723_s15   ;;  %s723_s15 = sphi %s761_s15, %s974_s15   ;;  %s719_s14 = sphi %s759_s14, %s973_s14   ;;  %s715_s13 = sphi %s757_s13, %s972_s13   ;;  %s711_s12 = sphi %s755_s12, %s971_s12  }
   0x4   : > { %s780_s18 = sadd.s32 1, %s723_s15   ;;  %s17_s19 = sshrl.u32 %s723_s15, 3 }
   0x5   : > { %s18_s20 = sshrl.u32 %s780_s18, 3  ;;  %s22_s21 = sadd.s32 1, %s719_s14 }
   0x6   : > { %s19_s22 = ssub.s32 %s17_s19, %s18_s20  ;;  %p32_p0 = scmp.ne.s32.totalorder %s719_s14, %s715_s13 }
   0x7   : > { %p20_p1 = scmp.eq.s32.totalorder %s19_s22, 0  ;;  %p33_p2 = scmp.eq.s32.totalorder %s776_s16, 1 }
   0x8   : > { %p38_p3 = scmp.ne.s32.totalorder %s715_s13, %s711_s12  ;;  %p39_p4 = scmp.eq.s32.totalorder %s565_s17, 1 }
   0x9   : > { %s791_s23 = scalar_select %p20_p1, %s719_s14, %s22_s21  }
   0xa   : > { %p793_p5 = por %p33_p2, %p32_p0  ;;  %p797_p6 = por %p39_p4, %p38_p3 }
   0xb   : > { %p567_p7 = scmp.ge.s32.totalorder %s723_s15, 2 }
   0xc   : > { %s85_s26 = sand.u32 (!%p567_p7), 1, %s723_s15   ;;  %s569_s27 = sshll.u32 (!%p567_p7), %s723_s15, 4 }
   0xd   : > { %83 = sbr.rel (%p567_p7) target bundleno = 20 (0x14), region = 16  ;;  %s568_s28 = sshll.u32 (!%p567_p7), %s85_s26, 4 }
   0xe   : > { %s89_s4 = scalar_lea.vmem (!%p567_p7), %s963_s0, %s569_s27  ;;  %s87_s5 = scalar_lea.vmem (!%p567_p7), [#allocation0], %s568_s28 }
   0xf   : > { %v102_v0 = vld [vmem:[%s89_s4] sm:$0xff] (!%p567_p7)  ;;  %v104_v1 = vld [vmem:[%s89_s4 + $0x8] sm:$0xff] (!%p567_p7) }
  0x10   : > { %103 = vst [vmem:[%s87_s5] sm:$0xff] (!%p567_p7), %v102_v0  ;;  %105 = vst [vmem:[%s87_s5 + $0x8] sm:$0xff] (!%p567_p7), %v104_v1 }
  0x14 PF: > { %p570_p8 = scmp.ge.s32.totalorder %s723_s15, 1  ;;  %p110_p9 = scmp.lt.s32.totalorder %s723_s15, 3 }
  0x16   : > { %p111_p10 = pnand %p570_p8, %p110_p9 }
  0x18   : > { %114 = sbr.rel (%p111_p10) target bundleno = 450 (0x1c2), region = 39 }
  0x1f   : > { %s117_s6 = sand.u32 1, %s776_s16   ;;  %s132_s7 = sand.u32 1, %s715_s13   ;;  %v154_v2 = vlaneseq  ;;  %v733_v6 = vmov 0  }
  0x20   : > { %s571_s8 = sshll.u32 %s117_s6, 4  ;;  %s815_s9 = sshll.u32 %s132_s7, 1 }
  0x21   : > { %v818_v3 = vshrl.u32 %v154_v2, 7  ;;  %s119_s10 = scalar_lea.vmem [#allocation0], %s571_s8  ;;  %s820_s11 = scalar_lea.vmem [#allocation1], %s571_s8 }
  0x22   : > { %v143_v4 = vld [vmem:[%s119_s10] sm:$0xff]  ;;  %v575_v5 = vld [vmem:[%s119_s10 + $0x8] sm:$0xff]  ;;  %s149_s17 = sand.u32 7, %s776_s16   ;;  %s134_s20 = scalar_lea.vmem [#allocation3], %s815_s9 }
  0x23   : > { %144 = vst [vmem:[%s820_s11] sm:$0xff] %v143_v4  ;;  %576 = vst [vmem:[%s820_s11 + $0x8] sm:$0xff] %v575_v5  ;;  %s825_s19 = scalar_lea.vmem [#allocation2], %s149_s17  ;;  %s140_s21 = scalar_lea.vmem [#allocation6], %s815_s9 }
  0x24   : > { %153 = vst [vmem:[%s825_s19] sm:$0x1] %v733_v6  ;;  %s830_s22 = scalar_lea.vmem [#allocation5], %s149_s17  ;;  %s725_s26 = smov 0  }
  0x25 LB: >> { %s577_s27 = sshll.u32 %s727_s26, 3  ;;  %s162_s26 = sadd.s32 1, %s727_s26   ;;  %s727_s26 = sphi %s725_s26, %s162_s26  }
  0x26   : >> { %v166_v7 = vstv %s577_s27  ;;  %s164_s28 = scalar_lea.vmem [#allocation7], %s577_s27  ;;  %p159_p11 = scmp.ge.s32.totalorder %s162_s26, 2  }
  0x27   : >> { %v167_v8 = vadd.s32 %v166_v7, %v818_v3  ;;  %s833_s29 = smov (%p159_p11), 0  }
  0x28   : > { %161 = sbr.rel (!%p159_p11) target bundleno = 37 (0x25), region = 191 }
  0x29   : >> { %168 = vst [vmem:[%s164_s28] sm:$0xff] %v167_v8 }
  0x2f LB: >> { %v179_v9 = vld [vmem:[%s820_s11] sm:$0xff]  ;;  %v580_v10 = vld [vmem:[%s820_s11 + $0x8] sm:$0xff]  ;;  %v841_v11 = vadd.s32 8, %v818_v3  ;;  %v844_v13 = vstv %s731_s29  ;;  %s237_s30 = ssub.s32 128, %s731_s29  ;;  %v243_v46 = vand.u32 127, %v154_v2  ;;  %s249_s4 = scalar_lea.vmem %s820_s11, %s731_s29 [#allocation1]  ;;  %s731_s29 = sphi %s833_s29, %s174_s29  }
  0x30   : >> { %v180_v12 = vand.u32 2147483647, %v179_v9  ;;  %v192_v14 = vand.u32 2147483647, %v580_v10  ;;  %vm183_vm0 = vcmp.ge.s32.totalorder %v818_v3, %v844_v13  ;;  %v246_v49 = vld [vmem:[%s825_s19] ss:$0 sm:$0xff] }
  0x31   : >> { %vm195_vm3 = vcmp.ge.s32.totalorder %v841_v11, %v844_v13  ;;  %vm267_vm13 = vcmp.gt.s32.totalorder %v243_v46, %v844_v13  ;;  %vm290_vm14 = vcmp.gt.s32.totalorder %v841_v11, %v844_v13  ;;  %vm244_vm15 = vcmp.eq.s32.totalorder %v243_v46, %v844_v13  ;;  %v251_v50 = vld [vmem:[%s249_s4] ss:$0 sm:$0xff]  ;;  %s255_s6 = scalar_lea.vmem [#allocation7], %s731_s29  ;;  %s174_s29 = sadd.s32 1, %s731_s29  }
  0x32   : >> { %vm579_vm1 = vcmp.gt.f32.partialorder %v180_v12, -inf  ;;  %v257_v51 = vld [vmem:[%s255_s6] ss:$0 sm:$0xff]  ;;  %p171_p12 = scmp.ge.s32.totalorder %s174_s29, 16  }
  0x33   : >> { %vm187_vm2 = vmand %vm183_vm0, %vm579_vm1  ;;  %s400_s17 = sshrl.u32 (%p171_p12), %s776_s16, 3  ;;  %s586_s26 = sshll.u32 (%p171_p12), %s776_s16, 4 }
  0x34   : >> { %v188_v15 = vsel %vm187_vm2, %v818_v3, %v844_v13  ;;  %v189_v16 = vsel %vm187_vm2, %v180_v12, -inf  ;;  %vm864_vm0 = vmand %vm290_vm14, %vm244_vm15  ;;  %vm275_vm2 = vcmp.gt.s32.totalorder %v818_v3, %v844_v13  ;;  %s587_s27 = sshll.u32 (%p171_p12), %s400_s17, 5  ;;  %s377_s29 = scalar_lea.vmem (%p171_p12), %s964_s1, %s586_s26 }
  0x35   : >> { %vm198_vm4 = vcmp.lt.f32.partialorder %v189_v16, %v192_v14  ;;  %s734_s26 = smov (%p171_p12), [#allocation3]  }
  0x36   : >> { %vm199_vm5 = vmand %vm195_vm3, %vm198_vm4 }
  0x37   : >> { %v200_v17 = vsel %vm199_vm5, %v841_v11, %v188_v15  ;;  %v201_v18 = vsel %vm199_vm5, %v192_v14, %v189_v16  ;;  %vm279_vm4 = vmand %vm275_vm2, %vm244_vm15 }
  0x38   : >> { %v202_v19 = vrot.slane %v201_v18, 1  ;;  %v203_v20 = vrot.slane %v200_v17, 1 }
  0x3a   : >> { %vm204_vm6 = vcmp.ge.f32.partialorder %v202_v19, %v201_v18  ;;  %v207_v21 = vrot.slane %v202_v19, 1  ;;  %v208_v22 = vrot.slane %v203_v20, 1 }
  0x3b   : >> { %v205_v23 = vsel %vm204_vm6, %v202_v19, %v201_v18  ;;  %v206_v24 = vsel %vm204_vm6, %v203_v20, %v200_v17 }
  0x3c   : >> { %vm209_vm7 = vcmp.ge.f32.partialorder %v207_v21, %v205_v23  ;;  %v212_v25 = vrot.slane %v207_v21, 1  ;;  %v213_v26 = vrot.slane %v208_v22, 1 }
  0x3d   : >> { %v210_v27 = vsel %vm209_vm7, %v207_v21, %v205_v23  ;;  %v211_v28 = vsel %vm209_vm7, %v208_v22, %v206_v24 }
  0x3e   : >> { %vm214_vm8 = vcmp.ge.f32.partialorder %v212_v25, %v210_v27  ;;  %v217_v29 = vrot.slane %v212_v25, 1  ;;  %v218_v30 = vrot.slane %v213_v26, 1 }
  0x3f   : >> { %v215_v31 = vsel %vm214_vm8, %v212_v25, %v210_v27  ;;  %v216_v32 = vsel %vm214_vm8, %v213_v26, %v211_v28 }
  0x40   : >> { %vm219_vm9 = vcmp.ge.f32.partialorder %v217_v29, %v215_v31  ;;  %v222_v33 = vrot.slane %v217_v29, 1  ;;  %v223_v34 = vrot.slane %v218_v30, 1 }
  0x41   : >> { %v220_v35 = vsel %vm219_vm9, %v217_v29, %v215_v31  ;;  %v221_v36 = vsel %vm219_vm9, %v218_v30, %v216_v32 }
  0x42   : >> { %vm224_vm10 = vcmp.ge.f32.partialorder %v222_v33, %v220_v35  ;;  %v227_v37 = vrot.slane %v222_v33, 1  ;;  %v228_v38 = vrot.slane %v223_v34, 1 }
  0x43   : >> { %v225_v39 = vsel %vm224_vm10, %v222_v33, %v220_v35  ;;  %v226_v40 = vsel %vm224_vm10, %v223_v34, %v221_v36 }
  0x44   : >> { %vm229_vm11 = vcmp.ge.f32.partialorder %v227_v37, %v225_v39  ;;  %v232_v41 = vrot.slane %v227_v37, 1  ;;  %v233_v42 = vrot.slane %v228_v38, 1 }
  0x45   : >> { %v230_v43 = vsel %vm229_vm11, %v227_v37, %v225_v39  ;;  %v231_v44 = vsel %vm229_vm11, %v228_v38, %v226_v40 }
  0x46   : >> { %vm234_vm12 = vcmp.ge.f32.partialorder %v232_v41, %v230_v43 }
  0x47   : >> { %v236_v45 = vsel %vm234_vm12, %v233_v42, %v231_v44 }
  0x48   : >> { %238 = vrot.lane.b32.xlu0 %v236_v45, %s237_s30 }
  0xba   : >> { %v239_v48 = vpop.permute.xlu0 %238 }
  0xbb   : >> { %591 = vpush %v239_v48 }
  0xec   : >> { %s592_s5 = spop %591 }
  0xed   : >> { %v245_v52 = vstv %s592_s5  ;;  %s250_s8 = scalar_lea.vmem %s820_s11, %s592_s5 [#allocation1]  ;;  %s256_s10 = scalar_lea.vmem [#allocation7], %s592_s5 }
  0xee   : >> { %v247_v53 = vsel %vm244_vm15, %v245_v52, %v246_v49  ;;  %v252_v54 = vld [vmem:[%s250_s8] ss:$0 sm:$0xff]  ;;  %s910_s5 = scalar_lea.hbm (%p171_p12), %s965_s2, %s587_s27 }
  0xef   : >> { %v258_v55 = vld [vmem:[%s256_s10] ss:$0 sm:$0xff]  ;;  %248 = vst [vmem:[%s825_s19] sm:$0x1] %v247_v53  ;;  %253 = vst [vmem:[%s250_s8] sm:$0x1] %v251_v50  ;;  %vm261_vm1 = vcmp.ne.f32.partialorder %v252_v54, 0.0  ;;  %v268_v5 = vsel %vm267_vm13, %v252_v54, 0.0 }
  0xf0   : >> { %259 = vst [vmem:[%s256_s10] sm:$0x1] %v257_v51  ;;  %254 = vst [vmem:[%s249_s4] sm:$0x1] %v252_v54  ;;  %s368_s8 = scalar_lea.sflag (%p171_p12), [#allocation4], %s132_s7  ;;  %s657_s19 = sshll.u32 (%p171_p12), %s734_s26, 4  ;;  %s658_s19 = int_to_ptr.vmem [resolvable:$false] %s657_s19 }
  0xf1   : >> { %260 = vst [vmem:[%s255_s6] sm:$0x1] %v258_v55  ;;  %vm262_vm3 = vmand %vm244_vm15, %vm261_vm1  ;;  %s407_s6 = sshll.u32 (%p171_p12), %s134_s20, 4  ;;  %s408_s6 = int_to_ptr.vmem [resolvable:$true] %s407_s6 }
  0xf2   : >> { %v263_v56 = vsel %vm262_vm3, %v252_v54, 1.0  ;;  %s653_s10 = scalar_lea.vmem (%p171_p12), %s408_s6, 32  ;;  %p660_p2 = scmp.lt.s32.totalorder (%p171_p12), %s408_s6, %s658_s19 }
  0xf3   : >> { %v291_v57 = vsel %vm290_vm14, %v263_v56, 1.0  ;;  %v276_v58 = vsel %vm275_vm2, %v263_v56, 1.0  ;;  %p654_p13 = scmp.ne.s32.totalorder (%p171_p12), %s408_s6, %s653_s10 }
  0xf4   : >> { %649 = vrcp.f32 %v291_v57 }
  0xf5   : >> { %651 = vrcp.f32 %v276_v58  ;;  %p655_p0 = pnand (%p171_p12), %p654_p13, %p793_p5 }
  0xf6   : > { %v354_v14 = vld [vmem:[#allocation2] sm:$0x3] (%p171_p12) }
  0xf7   : >> { %v581_v60 = vld [vmem:[%s820_s11 + $0x8] sm:$0xff]  ;;  %v272_v63 = vld [vmem:[%s820_s11] sm:$0xff]  ;;  %356 = vst [vmem:[%s134_s20] sm:$0x3] (%p171_p12), %v354_v14  ;;  %p656_p1 = pneg (%p171_p12), %p655_p0 }
  0xf8   : > { %v301_v12 = vld [vmem:[#allocation7] sm:$0xff] (%p171_p12)  ;;  %v303_v13 = vld [vmem:[#allocation7 + $0x8] sm:$0xff] (%p171_p12) }
  0xfe   : >> { %v650_v59 = vpop.eup %649 }
  0xff   : >> { %v652_v61 = vpop.eup %651  ;;  %v293_v62 = vmul.f32 %v650_v59, %v581_v60 }
 0x100   : >> { %v278_v0 = vmul.f32 %v652_v61, %v272_v63 }
 0x101   : >> { %v295_v1 = vsel %vm864_vm0, %v293_v62, 0.0 }
 0x102   : >> { %296 = vadd.xlane.f32.xlu1 %v295_v1  ;;  %v280_v4 = vsel %vm279_vm4, %v278_v0, 0.0 }
 0x103   : >> { %281 = vadd.xlane.f32.xlu0 %v280_v4 }
 0x130   : > { %318 = vxpose.xlu0.b32.start [1/2] (short) (narrow) (%p171_p12), %v301_v12, 8 }
 0x134   : > { %319 = vxpose.xlu0.b32.end [2/2] (short) (narrow) (%p171_p12), %v303_v13, 8 }
 0x18f   : >> { %v297_v6 = vpop.xlane.xlu1 %296  ;;  %173 = sbr.rel (!%p171_p12) target bundleno = 47 (0x2f), region = 202 }
 0x190   : >> { %v298_v7 = vmul.f32 %v297_v6, %v268_v5  ;;  %v282_v8 = vpop.xlane.xlu0 %281 }
 0x191   : >> { %v283_v9 = vmul.f32 %v282_v8, %v268_v5 }
 0x192   : >> { %v299_v10 = vsub.f32 %v293_v62, %v298_v7 }
 0x193   : >> { %v284_v11 = vsub.f32 %v278_v0, %v283_v9 }
 0x194   : >> { %582 = vst [vmem:[%s820_s11 + $0x8] sm:$0xff] %v299_v10 }
 0x195   : >> { %285 = vst [vmem:[%s820_s11] sm:$0xff] %v284_v11 }
 0x19b   : > { %v392_v3 = vld [vmem:[%s820_s11 + $0x8] sm:$0xff] }
 0x19c   : > { %v390_v2 = vld [vmem:[%s820_s11] sm:$0xff]  ;;  %393 = vst [vmem:[%s377_s29 + $0x8] sm:$0xff] %v392_v3  ;;  %s659_s11 = scalar_lea.vmem %s658_s19, 64 }
 0x19d   : > { %391 = vst [vmem:[%s377_s29] sm:$0xff] %v390_v2  ;;  %p661_p3 = scmp.lt.s32.totalorder %s659_s11, %s653_s10 }
 0x19f   : > { %p662_p4 = por %p661_p3, %p660_p2 }
 0x1a1   : > { %p663_p8 = pnand %p662_p4, %p656_p1 }
 0x1a3   : > { %666 = shalt.err (!%p663_p8)
}
 0x1a4   : > { %s667_s7 = scalar_lea.hbm %s910_s5, 32  ;;  %s671_s28 = scalar_lea.hbm %s965_s2, 32 }
 0x1a5   : > { %p668_p9 = scmp.ne.s32.totalorder %s910_s5, %s667_s7  ;;  %p672_p12 = scmp.lt.u32.totalorder %s910_s5, %s965_s2 }
 0x1a6   : > { %p673_p13 = scmp.lt.u32.totalorder %s671_s28, %s667_s7  ;;  %p675_p1 = scmp.lt.u32.totalorder %s667_s7, %s910_s5 }
 0x1a7   : > { %p669_p10 = pnand %p668_p9, %p793_p5 }
 0x1a8   : > { %p674_p0 = por %p673_p13, %p672_p12 }
 0x1a9   : > { %p670_p11 = pneg %p669_p10 }
 0x1aa   : > { %p676_p2 = por %p675_p1, %p674_p0 }
 0x1ac   : > { %p677_p3 = pnand %p676_p2, %p670_p11 }
 0x1ae   : > { %680 = shalt.err (!%p677_p3)
}
 0x1af   : > { %593 = dma.vmem_to_hbm [thread:$0]  (%p793_p5), %s408_s6, 32, %s910_s5, %s368_s8  }
 0x1b0   : > { %v334_v15 = vpop.trf.xlu0  ;;  %s588_s4 = sshll.u32 (%p793_p5), %s400_s17, 1 }
 0x1b1   : > { %350 = vst [vmem:[%s830_s22] sm:$0x1] %v334_v15  ;;  %s416_s19 = scalar_lea.vmem (%p793_p5), %s966_s3, %s588_s4 }
 0x1b3   : > { %413 = sbr.rel (!%p793_p5) target bundleno = 450 (0x1c2), region = 80 }
 0x1b8   : > { %v360_v16 = vld [vmem:[#allocation5] sm:$0x3] }
 0x1b9   : > { %362 = vst [vmem:[%s140_s21] sm:$0x3] %v360_v16 }
 0x1c0   : > { %v432_v17 = vld [vmem:[%s140_s21] sm:$0x3] }
 0x1c1   : > { %433 = vst [vmem:[%s416_s19] sm:$0x3] %v432_v17 }
 0x1c2 PF: > { %s460_s22 = sand.u32 1, %s711_s12   ;;  %p596_p5 = pnand %p567_p7, %p797_p6 }
 0x1c3   : > { %s461_s24 = scalar_lea.sflag [#allocation4], %s460_s22 }
 0x1c4   : > { %706 = dma.done.wait (!%p596_p5), %s461_s24, 32  }
 0x1c5   : > { %708 = vsyncadd (!%p596_p5), %s461_s24, 4294967264  ;;  %p10_p4 = scmp.ge.s32.totalorder %s780_s18, 4   ;;  %s971_s12 = smov %s715_s13 }
 0x1c6   : > { %s972_s13 = smov %s719_s14  ;;  %s973_s14 = smov %s791_s23 }
 0x1c7   : > { %s974_s15 = smov %s780_s18  ;;  %12 = sbr.rel (!%p10_p4) target bundleno = 3 (0x3), region = 213 }
 0x1ce   :  { %473 = vsyncpa [#allocation4], 1 }
 0x1cf   :  { %475 = vsyncpa [#allocation4 + $0x1], 1 }

// kernel: custom-call.12
= control target key start
LH: loop header
LB: loop body
LE: loop exit
PB: predicated region body
PF: predicated region fallthrough
CT: control target
= control target key end

     0   :  { %s551_s6 = smov 0   ;;  %s553_s7 = smov 0   ;;  %s674_s0 = inlined_call_operand.vmem [shape: f32[2,1,16,16], index: 0, kind: input, shape index: {}]   ;;  %s675_s1 = inlined_call_operand.vmem [shape: f32[2,1,16,16], index: 1, kind: output, shape index: {}]  }
   0x1   :  { %s555_s8 = smov 0  }
   0x2 LB: > { %s467_s9 = sadd.s32 4294967295, %s537_s8   ;;  %s33_s10 = sadd.s32 1, %s533_s7  ;;  %s537_s8 = sphi %s555_s8, %s7_s8   ;;  %s533_s7 = sphi %s553_s7, %s677_s7   ;;  %s529_s6 = sphi %s551_s6, %s676_s6  }
   0x3   : > { %p35_p0 = scmp.ge.s32.totalorder %s33_s10, 2  ;;  %p469_p1 = scmp.ge.s32.totalorder %s537_s8, 2 }
   0x4   : > { %s49_s11 = sand.u32 (!%p469_p1), 1, %s537_s8   ;;  %s483_s12 = sshll.u32 (!%p469_p1), %s533_s7, 4 }
   0x5   : > { %s679_s10 = smov (%p35_p0, %s33_s10), 0  ;;  %47 = sbr.rel (%p469_p1) target bundleno = 12 (0xc), region = 16 }
   0x6   : > { %s470_s13 = sshll.u32 (!%p469_p1), %s49_s11, 4  ;;  %s58_s16 = scalar_lea.vmem (!%p469_p1), %s674_s0, %s483_s12 }
   0x7   : > { %v88_v0 = vld [vmem:[%s58_s16] sm:$0xff] (!%p469_p1)  ;;  %v90_v1 = vld [vmem:[%s58_s16 + $0x8] sm:$0xff] (!%p469_p1)  ;;  %s51_s17 = scalar_lea.vmem (!%p469_p1), [#allocation0], %s470_s13 }
   0x8   : > { %89 = vst [vmem:[%s51_s17] sm:$0xff] (!%p469_p1), %v88_v0  ;;  %91 = vst [vmem:[%s51_s17 + $0x8] sm:$0xff] (!%p469_p1), %v90_v1 }
   0xc PF: > { %p473_p2 = scmp.ge.s32.totalorder %s537_s8, 1  ;;  %p96_p3 = scmp.lt.s32.totalorder %s537_s8, 3 }
   0xe   : > { %p97_p4 = pnand %p473_p2, %p96_p3 }
  0x10   : > { %100 = sbr.rel (%p97_p4) target bundleno = 2375 (0x947), region = 54 }
  0x17   : > { %s103_s18 = sand.u32 1, %s467_s9   ;;  %v114_v2 = vlaneseq  ;;  %v539_v12 = vmov -1.0   ;;  %v540_v49 = vmov 0.0   ;;  %s484_s21 = sshll.u32 %s529_s6, 4 }
  0x18   : > { %s474_s19 = sshll.u32 %s103_s18, 4  ;;  %s367_s24 = scalar_lea.vmem %s675_s1, %s484_s21 }
  0x19   : > { %v578_v3 = vand.u32 127, %v114_v2  ;;  %v580_v4 = vshrl.u32 %v114_v2, 7  ;;  %s584_s20 = scalar_lea.vmem [#allocation0], %s474_s19 }
  0x1a   : > { %v476_v6 = vld [vmem:[%s584_s20 + $0x8] sm:$0xff]  ;;  %v121_v38 = vld [vmem:[%s584_s20] sm:$0xff] }
  0x1b   : > { %vm116_vm0 = vcmp.lt.s32.totalorder %v578_v3, 16  ;;  %v135_v5 = vadd.s32 8, %v580_v4  ;;  %vm162_vm4 = vcmp.eq.s32.totalorder %v578_v3, 15  ;;  %vm170_vm6 = vcmp.eq.s32.totalorder %v578_v3, 14 }
  0x1c   : > { %v163_v13 = vsel %vm162_vm4, 1.0, %v539_v12  ;;  %vm180_vm7 = vcmp.eq.s32.totalorder %v578_v3, 13  ;;  %vm190_vm8 = vcmp.eq.s32.totalorder %v578_v3, 12  ;;  %vm200_vm9 = vcmp.eq.s32.totalorder %v578_v3, 11 }
  0x1d   : > { %vm136_vm1 = vcmp.eq.s32.totalorder %v135_v5, %v578_v3  ;;  %vm141_vm2 = vcmp.le.s32.totalorder %v135_v5, %v578_v3  ;;  %vm159_vm5 = vcmp.eq.s32.totalorder %v578_v3, %v135_v5  ;;  %vm120_vm10 = vcmp.eq.s32.totalorder %v580_v4, %v578_v3 }
  0x1e   : > { %v138_v7 = vsel %vm136_vm1, %v476_v6, 0.0  ;;  %vm142_vm3 = vmand %vm141_vm2, %vm116_vm0  ;;  %v164_v14 = vsel %vm159_vm5, %v163_v13, 0.0  ;;  %v122_v39 = vsel %vm120_vm10, %v121_v38, 0.0  ;;  %vm210_vm11 = vcmp.eq.s32.totalorder %v578_v3, 10 }
  0x1f   : > { %v143_v8 = vsel %vm142_vm3, %v476_v6, 0.0  ;;  %139 = vadd.xlane.f32.xlu0 %v138_v7  ;;  %vm125_vm12 = vcmp.le.s32.totalorder %v580_v4, %v578_v3  ;;  %vm152_vm14 = vcmp.eq.s32.totalorder %v578_v3, %v580_v4  ;;  %vm220_vm15 = vcmp.eq.s32.totalorder %v578_v3, 9 }
  0x20   : > { %vm126_vm13 = vmand %vm125_vm12, %vm116_vm0  ;;  %v153_v50 = vsel %vm152_vm14, -1.0, %v540_v49  ;;  %vm240_vm0 = vcmp.eq.s32.totalorder %v578_v3, 7  ;;  %vm230_vm1 = vcmp.eq.s32.totalorder %v578_v3, 8  ;;  %vm254_vm2 = vcmp.eq.s32.totalorder %v578_v3, 6 }
  0x21   : > { %v127_v46 = vsel %vm126_vm13, %v121_v38, 0.0  ;;  %vm268_vm3 = vcmp.eq.s32.totalorder %v578_v3, 5  ;;  %vm282_vm4 = vcmp.eq.s32.totalorder %v578_v3, 4  ;;  %vm296_vm5 = vcmp.eq.s32.totalorder %v578_v3, 3 }
  0xac   : > { %v591_v9 = vpop.xlane.xlu0 %139 }
  0xad   : > { %511 = vrcp.f32 %v591_v9  ;;  %vm353_vm10 = vweird.f32 %v591_v9 }
  0xb7   : > { %v594_v10 = vpop.eup %511 }
  0xb8   : > { %v145_v11 = vmul.f32 %v594_v10, %v143_v8 }
  0xba   : > { %146 = vst [vmem:[#allocation2 + $0x8] sm:$0xff] %v145_v11 }
  0xc1   : > { %v166_v15 = vld [vmem:[#allocation2 + $0xe] ss:$0 sm:$0xff]  ;;  %v176_v18 = vld [vmem:[#allocation2 + $0xd] ss:$0 sm:$0xff]  ;;  %v186_v23 = vld [vmem:[#allocation2 + $0xc] ss:$0 sm:$0xff] }
  0xc2   : > { %v167_v16 = vxor.u32 2147483648, %v166_v15  ;;  %v177_v20 = vxor.u32 2147483648, %v176_v18  ;;  %v187_v25 = vxor.u32 2147483648, %v186_v23  ;;  %v196_v28 = vld [vmem:[#allocation2 + $0xb] ss:$0 sm:$0xff] }
  0xc3   : > { %v197_v30 = vxor.u32 2147483648, %v196_v28  ;;  %v206_v33 = vld [vmem:[#allocation2 + $0xa] ss:$0 sm:$0xff]  ;;  %v216_v40 = vld [vmem:[#allocation2 + $0x9] ss:$0 sm:$0xff] }
  0xc4   : > { %v171_v17 = vmul.f32 %v167_v16, %v164_v14  ;;  %v207_v35 = vxor.u32 2147483648, %v206_v33  ;;  %v217_v42 = vxor.u32 2147483648, %v216_v40  ;;  %v226_v54 = vld [vmem:[#allocation2 + $0x8] ss:$0 sm:$0xff] }
  0xc5   : > { %v227_v56 = vxor.u32 2147483648, %v226_v54 }
  0xc6   : > { %172 = vadd.xlane.f32.xlu0 %v171_v17 }
 0x153   : > { %v173_v19 = vpop.xlane.xlu0 %172 }
 0x154   : > { %v174_v21 = vsel %vm170_vm6, %v173_v19, %v164_v14  ;;  %vm310_vm6 = vcmp.eq.s32.totalorder %v578_v3, 2 }
 0x155   : > { %v181_v22 = vmul.f32 %v177_v20, %v174_v21 }
 0x157   : > { %182 = vadd.xlane.f32.xlu1 %v181_v22 }
 0x1e4   : > { %v183_v24 = vpop.xlane.xlu1 %182 }
 0x1e5   : > { %v184_v26 = vsel %vm180_vm7, %v183_v24, %v174_v21  ;;  %vm324_vm7 = vcmp.eq.s32.totalorder %v578_v3, 1 }
 0x1e6   : > { %v191_v27 = vmul.f32 %v187_v25, %v184_v26 }
 0x1e8   : > { %192 = vadd.xlane.f32.xlu1 %v191_v27 }
 0x275   : > { %v193_v29 = vpop.xlane.xlu1 %192 }
 0x276   : > { %v194_v31 = vsel %vm190_vm8, %v193_v29, %v184_v26  ;;  %vm337_vm8 = vcmp.eq.s32.totalorder %v578_v3, 0 }
 0x277   : > { %v201_v32 = vmul.f32 %v197_v30, %v194_v31 }
 0x279   : > { %202 = vadd.xlane.f32.xlu0 %v201_v32 }
 0x306   : > { %v203_v34 = vpop.xlane.xlu0 %202 }
 0x307   : > { %v204_v36 = vsel %vm200_vm9, %v203_v34, %v194_v31 }
 0x308   : > { %v211_v37 = vmul.f32 %v207_v35, %v204_v36 }
 0x30a   : > { %212 = vadd.xlane.f32.xlu1 %v211_v37 }
 0x30e   : > { %123 = vadd.xlane.f32.xlu1 %v122_v39 }
 0x397   : > { %v213_v41 = vpop.xlane.xlu1 %212 }
 0x398   : > { %v214_v43 = vsel %vm210_vm11, %v213_v41, %v204_v36 }
 0x399   : > { %v221_v44 = vmul.f32 %v217_v42, %v214_v43 }
 0x39b   : > { %222 = vadd.xlane.f32.xlu0 %v221_v44  ;;  %v607_v45 = vpop.xlane.xlu1 %123 }
 0x39c   : > { %513 = vrcp.f32 %v607_v45  ;;  %vm348_vm9 = vweird.f32 %v607_v45 }
 0x3a6   : > { %v614_v47 = vpop.eup %513 }
 0x3a7   : > { %v129_v48 = vmul.f32 %v614_v47, %v127_v46 }
 0x3a9   : > { %130 = vst [vmem:[#allocation2] sm:$0xff] %v129_v48 }
 0x3b0   : > { %v236_v51 = vld [vmem:[#allocation2 + $0x7] ss:$0 sm:$0xff]  ;;  %v250_v59 = vld [vmem:[#allocation2 + $0x6] ss:$0 sm:$0xff]  ;;  %v264_v4 = vld [vmem:[#allocation2 + $0x5] ss:$0 sm:$0xff] }
 0x3b1   : > { %v237_v52 = vxor.u32 2147483648, %v236_v51  ;;  %v251_v60 = vxor.u32 2147483648, %v250_v59  ;;  %v265_v6 = vxor.u32 2147483648, %v264_v4  ;;  %v278_v14 = vld [vmem:[#allocation2 + $0x4] ss:$0 sm:$0xff] }
 0x3b2   : > { %v279_v16 = vxor.u32 2147483648, %v278_v14  ;;  %v292_v22 = vld [vmem:[#allocation2 + $0x3] ss:$0 sm:$0xff]  ;;  %v306_v30 = vld [vmem:[#allocation2 + $0x2] ss:$0 sm:$0xff] }
 0x3b3   : > { %v241_v53 = vmul.f32 %v237_v52, %v153_v50  ;;  %v293_v24 = vxor.u32 2147483648, %v292_v22  ;;  %v307_v32 = vxor.u32 2147483648, %v306_v30  ;;  %v320_v38 = vld [vmem:[#allocation2 + $0x1] ss:$0 sm:$0xff]  ;;  %v333_v48 = vld [vmem:[#allocation2] ss:$0 sm:$0xff] }
 0x3b4   : > { %v321_v40 = vxor.u32 2147483648, %v320_v38 }
 0x3b5   : > { %242 = vadd.xlane.f32.xlu1 %v241_v53 }
 0x428   : > { %v223_v55 = vpop.xlane.xlu0 %222 }
 0x429   : > { %v224_v57 = vsel %vm220_vm15, %v223_v55, %v214_v43 }
 0x42a   : > { %v231_v58 = vmul.f32 %v227_v56, %v224_v57 }
 0x42c   : > { %232 = vadd.xlane.f32.xlu0 %v231_v58 }
 0x442   : > { %v243_v61 = vpop.xlane.xlu1 %242 }
 0x443   : > { %v244_v62 = vsel %vm240_vm0, %v243_v61, %v153_v50  ;;  %v334_v50 = vxor.u32 2147483648, %v333_v48 }
 0x444   : > { %v255_v63 = vmul.f32 %v251_v60, %v244_v62 }
 0x446   : > { %256 = vadd.xlane.f32.xlu1 %v255_v63 }
 0x4b9   : > { %v233_v0 = vpop.xlane.xlu0 %232 }
 0x4ba   : > { %v234_v1 = vsel %vm230_vm1, %v233_v0, %v224_v57 }
 0x4bb   : > { %v245_v2 = vmul.f32 %v237_v52, %v234_v1 }
 0x4bd   : > { %246 = vadd.xlane.f32.xlu0 %v245_v2 }
 0x4d3   : > { %v257_v5 = vpop.xlane.xlu1 %256 }
 0x4d4   : > { %v258_v7 = vsel %vm254_vm2, %v257_v5, %v244_v62 }
 0x4d5   : > { %v269_v8 = vmul.f32 %v265_v6, %v258_v7 }
 0x4d7   : > { %270 = vadd.xlane.f32.xlu1 %v269_v8 }
 0x54a   : > { %v247_v11 = vpop.xlane.xlu0 %246 }
 0x54b   : > { %v248_v12 = vsel %vm240_vm0, %v247_v11, %v234_v1 }
 0x54c   : > { %v259_v13 = vmul.f32 %v251_v60, %v248_v12 }
 0x54e   : > { %260 = vadd.xlane.f32.xlu0 %v259_v13 }
 0x564   : > { %v271_v15 = vpop.xlane.xlu1 %270 }
 0x565   : > { %v272_v17 = vsel %vm268_vm3, %v271_v15, %v258_v7 }
 0x566   : > { %v283_v18 = vmul.f32 %v279_v16, %v272_v17 }
 0x568   : > { %284 = vadd.xlane.f32.xlu1 %v283_v18 }
 0x5db   : > { %v261_v19 = vpop.xlane.xlu0 %260 }
 0x5dc   : > { %v262_v20 = vsel %vm254_vm2, %v261_v19, %v248_v12 }
 0x5dd   : > { %v273_v21 = vmul.f32 %v265_v6, %v262_v20 }
 0x5df   : > { %274 = vadd.xlane.f32.xlu0 %v273_v21 }
 0x5f5   : > { %v285_v23 = vpop.xlane.xlu1 %284 }
 0x5f6   : > { %v286_v25 = vsel %vm282_vm4, %v285_v23, %v272_v17 }
 0x5f7   : > { %v297_v26 = vmul.f32 %v293_v24, %v286_v25 }
 0x5f9   : > { %298 = vadd.xlane.f32.xlu1 %v297_v26 }
 0x66c   : > { %v275_v27 = vpop.xlane.xlu0 %274 }
 0x66d   : > { %v276_v28 = vsel %vm268_vm3, %v275_v27, %v262_v20 }
 0x66e   : > { %v287_v29 = vmul.f32 %v279_v16, %v276_v28 }
 0x670   : > { %288 = vadd.xlane.f32.xlu0 %v287_v29 }
 0x686   : > { %v299_v31 = vpop.xlane.xlu1 %298 }
 0x687   : > { %v300_v33 = vsel %vm296_vm5, %v299_v31, %v286_v25 }
 0x688   : > { %v311_v34 = vmul.f32 %v307_v32, %v300_v33 }
 0x68a   : > { %312 = vadd.xlane.f32.xlu1 %v311_v34 }
 0x6fd   : > { %v289_v35 = vpop.xlane.xlu0 %288 }
 0x6fe   : > { %v290_v36 = vsel %vm282_vm4, %v289_v35, %v276_v28 }
 0x6ff   : > { %v301_v37 = vmul.f32 %v293_v24, %v290_v36 }
 0x701   : > { %302 = vadd.xlane.f32.xlu0 %v301_v37 }
 0x717   : > { %v313_v39 = vpop.xlane.xlu1 %312 }
 0x718   : > { %v314_v41 = vsel %vm310_vm6, %v313_v39, %v300_v33 }
 0x719   : > { %v325_v42 = vmul.f32 %v321_v40, %v314_v41 }
 0x71b   : > { %326 = vadd.xlane.f32.xlu1 %v325_v42 }
 0x78e   : > { %v303_v43 = vpop.xlane.xlu0 %302 }
 0x78f   : > { %v304_v44 = vsel %vm296_vm5, %v303_v43, %v290_v36 }
 0x790   : > { %v315_v46 = vmul.f32 %v307_v32, %v304_v44 }
 0x792   : > { %316 = vadd.xlane.f32.xlu0 %v315_v46 }
 0x7a8   : > { %v327_v49 = vpop.xlane.xlu1 %326 }
 0x7a9   : > { %v328_v51 = vsel %vm324_vm7, %v327_v49, %v314_v41 }
 0x7aa   : > { %v338_v52 = vmul.f32 %v334_v50, %v328_v51 }
 0x7ac   : > { %339 = vadd.xlane.f32.xlu1 %v338_v52 }
 0x81f   : > { %v317_v53 = vpop.xlane.xlu0 %316 }
 0x820   : > { %v318_v54 = vsel %vm310_vm6, %v317_v53, %v304_v44 }
 0x821   : > { %v329_v55 = vmul.f32 %v321_v40, %v318_v54 }
 0x823   : > { %330 = vadd.xlane.f32.xlu0 %v329_v55 }
 0x839   : > { %v340_v56 = vpop.xlane.xlu1 %339 }
 0x83a   : > { %v341_v57 = vsel %vm337_vm8, %v340_v56, %v328_v51 }
 0x83b   : > { %v347_v58 = vmul.f32 %v614_v47, %v341_v57 }
 0x83d   : > { %v349_v59 = vsel %vm348_vm9, %v341_v57, %v347_v58 }
 0x83e   : > { %398 = vst [vmem:[%s367_s24] sm:$0xff] %v349_v59 }
 0x8b0   : > { %v331_v60 = vpop.xlane.xlu0 %330 }
 0x8b1   : > { %v332_v61 = vsel %vm324_vm7, %v331_v60, %v318_v54 }
 0x8b2   : > { %v342_v62 = vmul.f32 %v334_v50, %v332_v61 }
 0x8b4   : > { %343 = vadd.xlane.f32.xlu0 %v342_v62 }
 0x941   : > { %v344_v63 = vpop.xlane.xlu0 %343 }
 0x942   : > { %v345_v0 = vsel %vm337_vm8, %v344_v63, %v332_v61 }
 0x943   : > { %v352_v1 = vmul.f32 %v594_v10, %v345_v0 }
 0x945   : > { %v354_v2 = vsel %vm353_vm10, %v345_v0, %v352_v1 }
 0x946   : > { %400 = vst [vmem:[%s367_s24 + $0x8] sm:$0xff] %v354_v2 }
 0x947 PF: > { %s7_s8 = sadd.s32 1, %s537_s8   ;;  %s676_s6 = smov %s533_s7 }
 0x948   : > { %p4_p5 = scmp.ge.s32.totalorder %s7_s8, 4   ;;  %s677_s7 = smov %s679_s10 }
 0x94a   :  { %6 = sbr.rel (!%p4_p5) target bundleno = 2 (0x2), region = 135 }

// kernel: custom-call.13
= control target key start
LH: loop header
LB: loop body
LE: loop exit
PB: predicated region body
PF: predicated region fallthrough
CT: control target
= control target key end

     0   :  { %s552_s6 = smov 0   ;;  %s554_s7 = smov 0   ;;  %s641_s0 = inlined_call_operand.vmem [shape: f32[2,1,16,16], index: 0, kind: input, shape index: {}]   ;;  %s642_s1 = inlined_call_operand.vmem [shape: f32[2,1,16,16], index: 1, kind: output, shape index: {}]  }
   0x1   :  { %s556_s8 = smov 0  }
   0x2 LB: > { %s468_s9 = sadd.s32 4294967295, %s538_s8   ;;  %s33_s10 = sadd.s32 1, %s534_s7  ;;  %s538_s8 = sphi %s556_s8, %s7_s8   ;;  %s534_s7 = sphi %s554_s7, %s644_s7   ;;  %s530_s6 = sphi %s552_s6, %s643_s6  }
   0x3   : > { %p35_p0 = scmp.ge.s32.totalorder %s33_s10, 2  ;;  %p470_p1 = scmp.ge.s32.totalorder %s538_s8, 2 }
   0x4   : > { %s49_s11 = sand.u32 (!%p470_p1), 1, %s538_s8   ;;  %s484_s12 = sshll.u32 (!%p470_p1), %s534_s7, 4 }
   0x5   : > { %s646_s10 = smov (%p35_p0, %s33_s10), 0  ;;  %47 = sbr.rel (%p470_p1) target bundleno = 12 (0xc), region = 16 }
   0x6   : > { %s471_s13 = sshll.u32 (!%p470_p1), %s49_s11, 4  ;;  %s58_s16 = scalar_lea.vmem (!%p470_p1), %s641_s0, %s484_s12 }
   0x7   : > { %v88_v0 = vld [vmem:[%s58_s16] sm:$0xff] (!%p470_p1)  ;;  %v90_v1 = vld [vmem:[%s58_s16 + $0x8] sm:$0xff] (!%p470_p1)  ;;  %s51_s17 = scalar_lea.vmem (!%p470_p1), [#allocation0], %s471_s13 }
   0x8   : > { %89 = vst [vmem:[%s51_s17] sm:$0xff] (!%p470_p1), %v88_v0  ;;  %91 = vst [vmem:[%s51_s17 + $0x8] sm:$0xff] (!%p470_p1), %v90_v1 }
   0xc PF: > { %p474_p2 = scmp.ge.s32.totalorder %s538_s8, 1  ;;  %p96_p3 = scmp.lt.s32.totalorder %s538_s8, 3 }
   0xe   : > { %p97_p4 = pnand %p474_p2, %p96_p3 }
  0x10   : > { %100 = sbr.rel (%p97_p4) target bundleno = 2373 (0x945), region = 54 }
  0x17   : > { %s103_s18 = sand.u32 1, %s468_s9   ;;  %v114_v2 = vlaneseq  ;;  %v540_v11 = vmov -1.0   ;;  %v541_v55 = vmov 0.0   ;;  %s485_s21 = sshll.u32 %s530_s6, 4 }
  0x18   : > { %s475_s19 = sshll.u32 %s103_s18, 4  ;;  %s368_s24 = scalar_lea.vmem %s642_s1, %s485_s21 }
  0x19   : > { %v579_v3 = vand.u32 127, %v114_v2  ;;  %v118_v4 = vshrl.u32 %v114_v2, 7  ;;  %s581_s20 = scalar_lea.vmem [#allocation0], %s475_s19 }
  0x1a   : > { %v121_v5 = vld [vmem:[%s581_s20] sm:$0xff]  ;;  %v477_v38 = vld [vmem:[%s581_s20 + $0x8] sm:$0xff] }
  0x1b   : > { %vm120_vm0 = vcmp.eq.s32.totalorder %v118_v4, %v579_v3  ;;  %vm116_vm1 = vcmp.lt.s32.totalorder %v579_v3, 16  ;;  %vm125_vm2 = vcmp.ge.s32.totalorder %v118_v4, %v579_v3  ;;  %vm155_vm4 = vcmp.eq.s32.totalorder %v579_v3, 0 }
  0x1c   : > { %v122_v6 = vsel %vm120_vm0, %v121_v5, 0.0  ;;  %vm126_vm3 = vmand %vm125_vm2, %vm116_vm1  ;;  %vm152_vm5 = vcmp.eq.s32.totalorder %v579_v3, %v118_v4  ;;  %v156_v12 = vsel %vm155_vm4, 1.0, %v540_v11  ;;  %vm170_vm6 = vcmp.eq.s32.totalorder %v579_v3, 1 }
  0x1d   : > { %123 = vadd.xlane.f32.xlu0 %v122_v6  ;;  %v127_v8 = vsel %vm126_vm3, %v121_v5, 0.0  ;;  %v157_v13 = vsel %vm152_vm5, %v156_v12, 0.0  ;;  %vm180_vm7 = vcmp.eq.s32.totalorder %v579_v3, 2  ;;  %vm190_vm8 = vcmp.eq.s32.totalorder %v579_v3, 3 }
  0x1e   : > { %vm200_vm9 = vcmp.eq.s32.totalorder %v579_v3, 4  ;;  %v135_v33 = vadd.s32 8, %v118_v4  ;;  %vm210_vm11 = vcmp.eq.s32.totalorder %v579_v3, 5  ;;  %vm220_vm14 = vcmp.eq.s32.totalorder %v579_v3, 6 }
  0x1f   : > { %vm230_vm0 = vcmp.eq.s32.totalorder %v579_v3, 7  ;;  %vm254_vm2 = vcmp.eq.s32.totalorder %v579_v3, 9  ;;  %vm268_vm3 = vcmp.eq.s32.totalorder %v579_v3, 10  ;;  %vm282_vm4 = vcmp.eq.s32.totalorder %v579_v3, 11 }
  0x20   : > { %vm136_vm10 = vcmp.eq.s32.totalorder %v135_v33, %v579_v3  ;;  %vm141_vm12 = vcmp.ge.s32.totalorder %v135_v33, %v579_v3  ;;  %vm163_vm15 = vcmp.eq.s32.totalorder %v579_v3, %v135_v33  ;;  %vm296_vm5 = vcmp.eq.s32.totalorder %v579_v3, 12 }
  0x21   : > { %v138_v39 = vsel %vm136_vm10, %v477_v38, 0.0  ;;  %vm142_vm13 = vmand %vm141_vm12, %vm116_vm1  ;;  %v164_v56 = vsel %vm163_vm15, -1.0, %v541_v55  ;;  %vm240_vm1 = vcmp.eq.s32.totalorder %v579_v3, 8 }
  0x22   : > { %v143_v46 = vsel %vm142_vm13, %v477_v38, 0.0 }
  0xaa   : > { %v585_v7 = vpop.xlane.xlu0 %123 }
  0xab   : > { %512 = vrcp.f32 %v585_v7  ;;  %vm349_vm10 = vweird.f32 %v585_v7 }
  0xb5   : > { %v592_v9 = vpop.eup %512 }
  0xb6   : > { %v129_v10 = vmul.f32 %v592_v9, %v127_v8 }
  0xb8   : > { %130 = vst [vmem:[#allocation2] sm:$0xff] %v129_v10 }
  0xbf   : > { %v166_v14 = vld [vmem:[#allocation2 + $0x1] ss:$0 sm:$0xff]  ;;  %v176_v17 = vld [vmem:[#allocation2 + $0x2] ss:$0 sm:$0xff]  ;;  %v186_v22 = vld [vmem:[#allocation2 + $0x3] ss:$0 sm:$0xff] }
  0xc0   : > { %v167_v15 = vxor.u32 2147483648, %v166_v14  ;;  %v177_v19 = vxor.u32 2147483648, %v176_v17  ;;  %v187_v24 = vxor.u32 2147483648, %v186_v22  ;;  %v196_v27 = vld [vmem:[#allocation2 + $0x4] ss:$0 sm:$0xff] }
  0xc1   : > { %v197_v29 = vxor.u32 2147483648, %v196_v27  ;;  %v206_v32 = vld [vmem:[#allocation2 + $0x5] ss:$0 sm:$0xff]  ;;  %v216_v40 = vld [vmem:[#allocation2 + $0x6] ss:$0 sm:$0xff] }
  0xc2   : > { %v171_v16 = vmul.f32 %v167_v15, %v157_v13  ;;  %v207_v35 = vxor.u32 2147483648, %v206_v32  ;;  %v217_v42 = vxor.u32 2147483648, %v216_v40  ;;  %v226_v49 = vld [vmem:[#allocation2 + $0x7] ss:$0 sm:$0xff] }
  0xc3   : > { %v227_v52 = vxor.u32 2147483648, %v226_v49 }
  0xc4   : > { %172 = vadd.xlane.f32.xlu0 %v171_v16 }
 0x151   : > { %v173_v18 = vpop.xlane.xlu0 %172 }
 0x152   : > { %v174_v20 = vsel %vm170_vm6, %v173_v18, %v157_v13  ;;  %vm310_vm6 = vcmp.eq.s32.totalorder %v579_v3, 13 }
 0x153   : > { %v181_v21 = vmul.f32 %v177_v19, %v174_v20 }
 0x155   : > { %182 = vadd.xlane.f32.xlu1 %v181_v21 }
 0x1e2   : > { %v183_v23 = vpop.xlane.xlu1 %182 }
 0x1e3   : > { %v184_v25 = vsel %vm180_vm7, %v183_v23, %v174_v20  ;;  %vm324_vm7 = vcmp.eq.s32.totalorder %v579_v3, 14 }
 0x1e4   : > { %v191_v26 = vmul.f32 %v187_v24, %v184_v25 }
 0x1e6   : > { %192 = vadd.xlane.f32.xlu1 %v191_v26 }
 0x273   : > { %v193_v28 = vpop.xlane.xlu1 %192 }
 0x274   : > { %v194_v30 = vsel %vm190_vm8, %v193_v28, %v184_v25  ;;  %vm338_vm8 = vcmp.eq.s32.totalorder %v579_v3, 15 }
 0x275   : > { %v201_v31 = vmul.f32 %v197_v29, %v194_v30 }
 0x277   : > { %202 = vadd.xlane.f32.xlu0 %v201_v31 }
 0x304   : > { %v203_v34 = vpop.xlane.xlu0 %202 }
 0x305   : > { %v204_v36 = vsel %vm200_vm9, %v203_v34, %v194_v30 }
 0x306   : > { %v211_v37 = vmul.f32 %v207_v35, %v204_v36 }
 0x308   : > { %212 = vadd.xlane.f32.xlu1 %v211_v37 }
 0x30c   : > { %139 = vadd.xlane.f32.xlu1 %v138_v39 }
 0x395   : > { %v213_v41 = vpop.xlane.xlu1 %212 }
 0x396   : > { %v214_v43 = vsel %vm210_vm11, %v213_v41, %v204_v36 }
 0x397   : > { %v221_v44 = vmul.f32 %v217_v42, %v214_v43 }
 0x399   : > { %222 = vadd.xlane.f32.xlu0 %v221_v44  ;;  %v604_v45 = vpop.xlane.xlu1 %139 }
 0x39a   : > { %514 = vrcp.f32 %v604_v45  ;;  %vm354_vm9 = vweird.f32 %v604_v45 }
 0x3a4   : > { %v610_v47 = vpop.eup %514 }
 0x3a5   : > { %v145_v48 = vmul.f32 %v610_v47, %v143_v46 }
 0x3a7   : > { %146 = vst [vmem:[#allocation2 + $0x8] sm:$0xff] %v145_v48 }
 0x3ae   : > { %v236_v50 = vld [vmem:[#allocation2 + $0x8] ss:$0 sm:$0xff]  ;;  %v250_v61 = vld [vmem:[#allocation2 + $0x9] ss:$0 sm:$0xff]  ;;  %v264_v6 = vld [vmem:[#allocation2 + $0xa] ss:$0 sm:$0xff] }
 0x3af   : > { %v237_v53 = vxor.u32 2147483648, %v236_v50  ;;  %v251_v0 = vxor.u32 2147483648, %v250_v61  ;;  %v265_v11 = vxor.u32 2147483648, %v264_v6  ;;  %v278_v16 = vld [vmem:[#allocation2 + $0xb] ss:$0 sm:$0xff] }
 0x3b0   : > { %v279_v19 = vxor.u32 2147483648, %v278_v16  ;;  %v292_v24 = vld [vmem:[#allocation2 + $0xc] ss:$0 sm:$0xff]  ;;  %v306_v32 = vld [vmem:[#allocation2 + $0xd] ss:$0 sm:$0xff] }
 0x3b1   : > { %v245_v58 = vmul.f32 %v237_v53, %v164_v56  ;;  %v293_v27 = vxor.u32 2147483648, %v292_v24  ;;  %v307_v35 = vxor.u32 2147483648, %v306_v32  ;;  %v320_v40 = vld [vmem:[#allocation2 + $0xe] ss:$0 sm:$0xff]  ;;  %v334_v50 = vld [vmem:[#allocation2 + $0xf] ss:$0 sm:$0xff] }
 0x426   : > { %v223_v51 = vpop.xlane.xlu0 %222 }
 0x427   : > { %v224_v54 = vsel %vm220_vm14, %v223_v51, %v214_v43  ;;  %v321_v43 = vxor.u32 2147483648, %v320_v40 }
 0x428   : > { %v231_v57 = vmul.f32 %v227_v52, %v224_v54 }
 0x42a   : > { %232 = vadd.xlane.f32.xlu0 %v231_v57 }
 0x42e   : > { %246 = vadd.xlane.f32.xlu0 %v245_v58 }
 0x4b7   : > { %v233_v59 = vpop.xlane.xlu0 %232 }
 0x4b8   : > { %v234_v60 = vsel %vm230_vm0, %v233_v59, %v224_v54 }
 0x4b9   : > { %v241_v62 = vmul.f32 %v237_v53, %v234_v60  ;;  %v335_v53 = vxor.u32 2147483648, %v334_v50 }
 0x4bb   : > { %v247_v63 = vpop.xlane.xlu0 %246  ;;  %242 = vadd.xlane.f32.xlu1 %v241_v62 }
 0x4bc   : > { %v248_v1 = vsel %vm240_vm1, %v247_v63, %v164_v56 }
 0x4bd   : > { %v259_v2 = vmul.f32 %v251_v0, %v248_v1 }
 0x4bf   : > { %260 = vadd.xlane.f32.xlu0 %v259_v2 }
 0x548   : > { %v243_v4 = vpop.xlane.xlu1 %242 }
 0x549   : > { %v244_v5 = vsel %vm240_vm1, %v243_v4, %v234_v60 }
 0x54a   : > { %v255_v8 = vmul.f32 %v251_v0, %v244_v5 }
 0x54c   : > { %v261_v10 = vpop.xlane.xlu0 %260  ;;  %256 = vadd.xlane.f32.xlu1 %v255_v8 }
 0x54d   : > { %v262_v12 = vsel %vm254_vm2, %v261_v10, %v248_v1 }
 0x54e   : > { %v273_v13 = vmul.f32 %v265_v11, %v262_v12 }
 0x550   : > { %274 = vadd.xlane.f32.xlu0 %v273_v13 }
 0x5d9   : > { %v257_v14 = vpop.xlane.xlu1 %256 }
 0x5da   : > { %v258_v15 = vsel %vm254_vm2, %v257_v14, %v244_v5 }
 0x5db   : > { %v269_v17 = vmul.f32 %v265_v11, %v258_v15 }
 0x5dd   : > { %v275_v18 = vpop.xlane.xlu0 %274  ;;  %270 = vadd.xlane.f32.xlu1 %v269_v17 }
 0x5de   : > { %v276_v20 = vsel %vm268_vm3, %v275_v18, %v262_v12 }
 0x5df   : > { %v287_v21 = vmul.f32 %v279_v19, %v276_v20 }
 0x5e1   : > { %288 = vadd.xlane.f32.xlu0 %v287_v21 }
 0x66a   : > { %v271_v22 = vpop.xlane.xlu1 %270 }
 0x66b   : > { %v272_v23 = vsel %vm268_vm3, %v271_v22, %v258_v15 }
 0x66c   : > { %v283_v25 = vmul.f32 %v279_v19, %v272_v23 }
 0x66e   : > { %v289_v26 = vpop.xlane.xlu0 %288  ;;  %284 = vadd.xlane.f32.xlu1 %v283_v25 }
 0x66f   : > { %v290_v28 = vsel %vm282_vm4, %v289_v26, %v276_v20 }
 0x670   : > { %v301_v29 = vmul.f32 %v293_v27, %v290_v28 }
 0x672   : > { %302 = vadd.xlane.f32.xlu0 %v301_v29 }
 0x6fb   : > { %v285_v30 = vpop.xlane.xlu1 %284 }
 0x6fc   : > { %v286_v31 = vsel %vm282_vm4, %v285_v30, %v272_v23 }
 0x6fd   : > { %v297_v33 = vmul.f32 %v293_v27, %v286_v31 }
 0x6ff   : > { %v303_v34 = vpop.xlane.xlu0 %302  ;;  %298 = vadd.xlane.f32.xlu1 %v297_v33 }
 0x700   : > { %v304_v36 = vsel %vm296_vm5, %v303_v34, %v290_v28 }
 0x701   : > { %v315_v37 = vmul.f32 %v307_v35, %v304_v36 }
 0x703   : > { %316 = vadd.xlane.f32.xlu0 %v315_v37 }
 0x78c   : > { %v299_v38 = vpop.xlane.xlu1 %298 }
 0x78d   : > { %v300_v39 = vsel %vm296_vm5, %v299_v38, %v286_v31 }
 0x78e   : > { %v311_v41 = vmul.f32 %v307_v35, %v300_v39 }
 0x790   : > { %v317_v42 = vpop.xlane.xlu0 %316  ;;  %312 = vadd.xlane.f32.xlu1 %v311_v41 }
 0x791   : > { %v318_v44 = vsel %vm310_vm6, %v317_v42, %v304_v36 }
 0x792   : > { %v329_v46 = vmul.f32 %v321_v43, %v318_v44 }
 0x794   : > { %330 = vadd.xlane.f32.xlu0 %v329_v46 }
 0x81d   : > { %v313_v48 = vpop.xlane.xlu1 %312 }
 0x81e   : > { %v314_v49 = vsel %vm310_vm6, %v313_v48, %v300_v39 }
 0x81f   : > { %v325_v51 = vmul.f32 %v321_v43, %v314_v49 }
 0x821   : > { %v331_v52 = vpop.xlane.xlu0 %330  ;;  %326 = vadd.xlane.f32.xlu1 %v325_v51 }
 0x822   : > { %v332_v54 = vsel %vm324_vm7, %v331_v52, %v318_v44 }
 0x823   : > { %v343_v55 = vmul.f32 %v335_v53, %v332_v54 }
 0x825   : > { %344 = vadd.xlane.f32.xlu0 %v343_v55 }
 0x8ae   : > { %v327_v56 = vpop.xlane.xlu1 %326 }
 0x8af   : > { %v328_v57 = vsel %vm324_vm7, %v327_v56, %v314_v49 }
 0x8b0   : > { %v339_v58 = vmul.f32 %v335_v53, %v328_v57 }
 0x8b2   : > { %v345_v59 = vpop.xlane.xlu0 %344  ;;  %340 = vadd.xlane.f32.xlu1 %v339_v58 }
 0x8b3   : > { %v346_v60 = vsel %vm338_vm8, %v345_v59, %v332_v54 }
 0x8b4   : > { %v353_v61 = vmul.f32 %v610_v47, %v346_v60 }
 0x8b6   : > { %v355_v62 = vsel %vm354_vm9, %v346_v60, %v353_v61 }
 0x8b7   : > { %401 = vst [vmem:[%s368_s24 + $0x8] sm:$0xff] %v355_v62 }
 0x93f   : > { %v341_v63 = vpop.xlane.xlu1 %340 }
 0x940   : > { %v342_v0 = vsel %vm338_vm8, %v341_v63, %v328_v57 }
 0x941   : > { %v348_v1 = vmul.f32 %v592_v9, %v342_v0 }
 0x943   : > { %v350_v3 = vsel %vm349_vm10, %v342_v0, %v348_v1 }
 0x944   : > { %399 = vst [vmem:[%s368_s24] sm:$0xff] %v350_v3 }
 0x945 PF: > { %s7_s8 = sadd.s32 1, %s538_s8   ;;  %s643_s6 = smov %s534_s7 }
 0x946   : > { %p4_p5 = scmp.ge.s32.totalorder %s7_s8, 4   ;;  %s644_s7 = smov %s646_s10 }
 0x948   :  { %6 = sbr.rel (!%p4_p5) target bundleno = 2 (0x2), region = 136 }

// kernel: time_var_kp_forward.2
= control target key start
LH: loop header
LB: loop body
LE: loop exit
PB: predicated region body
PF: predicated region fallthrough
CT: control target
= control target key end

     0   :  { %vm31_vm0 = vcmask 130048   ;;  %vm762_vm1 = vcmask 261120   ;;  %s3611_s1 = inlined_call_operand.vmem [shape: f32[16,16], index: 1, kind: input, shape index: {}]   ;;  %s3612_s0 = inlined_call_operand.vmem [shape: f32[2,48,16], index: 0, kind: input, shape index: {}]   ;;  %s3613_s2 = inlined_call_operand.vmem [shape: f32[1,16], index: 2, kind: input, shape index: {}]   ;;  %s3614_s3 = inlined_call_operand.vmem [shape: f32[2,48,16], index: 3, kind: output, shape index: {0}]   ;;  %s3615_s4 = inlined_call_operand.vmem [shape: f32[2,16,16], index: 4, kind: output, shape index: {1}]  }
   0x1   :  { %v16_v0 = vld [vmem:[%s3611_s1] sm:$0xff]  ;;  %v17_v1 = vld [vmem:[%s3611_s1 + $0x8] sm:$0xff]  ;;  %v21_v7 = vld [vmem:[%s3612_s0 + $0x10] sm:$0xff] }
   0x2   :  { %v19_v2 = vld [vmem:[%s3612_s0] sm:$0xff]  ;;  %v51_v3 = vand.u32 4294901760, %v16_v0  ;;  %v54_v4 = vand.u32 4294901760, %v17_v1  ;;  %v20_v6 = vld [vmem:[%s3612_s0 + $0x8] sm:$0xff]  ;;  %v22_v8 = vld [vmem:[%s3612_s0 + $0x18] sm:$0xff]  ;;  %v39_v11 = vsel %vm31_vm0, %v21_v7, 0 }
   0x3   :  { %v33_v5 = vsel %vm31_vm0, %v19_v2, 0  ;;  %v36_v10 = vsel %vm31_vm0, %v20_v6, 0  ;;  %v42_v12 = vsel %vm31_vm0, %v22_v8, 0  ;;  %v23_v13 = vld [vmem:[%s3612_s0 + $0x20] sm:$0xff]  ;;  %v24_v18 = vld [vmem:[%s3612_s0 + $0x28] sm:$0xff]  ;;  %v3352_v20 = vand.u32 4294901760, %v39_v11 }
   0x4   :  { %v3334_v9 = vand.u32 4294901760, %v33_v5  ;;  %v3342_v14 = vpack.c.bf16 %v54_v4, %v51_v3  ;;  %v3344_v15 = vand.u32 4294901760, %v36_v10  ;;  %v179_v16 = vsub.f32 %v16_v0, %v51_v3  ;;  %v3409_v58 = vld [vmem:[%s3613_s2] ss:$0 sm:$0xff] }
   0x5   :  { %v186_v17 = vsub.f32 %v17_v1, %v54_v4  ;;  %v3354_v21 = vand.u32 4294901760, %v42_v12  ;;  %v45_v22 = vsel %vm31_vm0, %v23_v13, 0  ;;  %v138_v28 = vsub.f32 %v39_v11, %v3352_v20 }
   0x6   :  { %v3350_v19 = vsub.f32 %v33_v5, %v3334_v9  ;;  %3054 = vmatprep.subr.bf16.mxu0 %v3342_v14  ;;  %v128_v23 = vsub.f32 %v36_v10, %v3344_v15  ;;  %v180_v24 = vand.u32 4294901760, %v179_v16  ;;  %v3359_v26 = vand.u32 4294901760, %v45_v22 }
   0x7   :  { %v187_v25 = vand.u32 4294901760, %v186_v17  ;;  %3056 = vmatpush3.bf16.msra.mxu0 %v3342_v14  ;;  %v148_v29 = vsub.f32 %v42_v12, %v3354_v21  ;;  %v48_v30 = vsel %vm31_vm0, %v24_v18, 0  ;;  %v139_v36 = vand.u32 4294901760, %v138_v28 }
   0x8   :  { %v119_v27 = vand.u32 4294901760, %v3350_v19  ;;  %v129_v31 = vand.u32 4294901760, %v128_v23  ;;  %v181_v32 = vsub.f32 %v179_v16, %v180_v24  ;;  %v158_v34 = vsub.f32 %v45_v22, %v3359_v26 }
   0x9   :  { %v188_v33 = vsub.f32 %v186_v17, %v187_v25  ;;  %v149_v37 = vand.u32 4294901760, %v148_v29  ;;  %v3368_v38 = vand.u32 4294901760, %v48_v30  ;;  %v140_v44 = vsub.f32 %v138_v28, %v139_v36 }
   0xa   :  { %v120_v35 = vsub.f32 %v3350_v19, %v119_v27  ;;  %v130_v39 = vsub.f32 %v128_v23, %v129_v31  ;;  %v182_v40 = vand.u32 4294901760, %v181_v32  ;;  %v159_v42 = vand.u32 4294901760, %v158_v34 }
   0xb   :  { %v189_v41 = vand.u32 4294901760, %v188_v33  ;;  %v150_v45 = vsub.f32 %v148_v29, %v149_v37  ;;  %v168_v46 = vsub.f32 %v48_v30, %v3368_v38  ;;  %v3373_v50 = vpack.c.bf16 %v186_v17, %v179_v16 }
   0xc   :  { %v121_v43 = vand.u32 4294901760, %v120_v35  ;;  %v131_v47 = vand.u32 4294901760, %v130_v39  ;;  %v160_v49 = vsub.f32 %v158_v34, %v159_v42  ;;  %v141_v51 = vand.u32 4294901760, %v140_v44 }
   0xd   :  { %v3371_v48 = vpack.c.bf16 %v189_v41, %v182_v40  ;;  %v169_v52 = vand.u32 4294901760, %v168_v46  ;;  %v151_v53 = vand.u32 4294901760, %v150_v45  ;;  %v3387_v57 = vpack.c.bf16 %v187_v25, %v180_v24 }
   0xe   :  { %2769 = vmatprep.mubr.f32.mxu0 %v121_v43  ;;  %v161_v54 = vand.u32 4294901760, %v160_v49 }
   0xf   :  { %2770 = vmatmul.mubr.f32.vlgmr.msra.gmra.mrb[0].mxu0 %v131_v47  ;;  %3058 = vmatprep.subr.bf16.mxu0 %v3371_v48  ;;  %v170_v55 = vsub.f32 %v168_v46, %v169_v52 }
  0x10   :  { %3060 = vmatpush3.bf16.msra.mxu0 %v3371_v48  ;;  %2772 = vmatprep.mubr.f32.mxu0 %v141_v51 }
  0x11   :  { %3062 = vmatprep.subr.bf16.mxu0 %v3373_v50  ;;  %v171_v56 = vand.u32 4294901760, %v170_v55  ;;  %v2585_v55 = vld [vmem:[%s3612_s0 + $0x40] sm:$0xff] }
  0x13   :  { %2773 = vmatmul.mubr.f32.gmra.mrb[2].mxu0 %v151_v53 }
  0x14   :  { %2775 = vmatprep.mubr.f32.mxu0 %v161_v54  ;;  %v2584_v54 = vld [vmem:[%s3612_s0 + $0x38] sm:$0xff] }
  0x17   :  { %2776 = vmatmul.mubr.f32.gmra.mrb[4].mxu0 %v171_v56 }
  0x18   :  { %2782 = vmatprep.mubr.f32.mxu0 %v3334_v9 }
  0x1b   :  { %2783 = vmatmul.mubr.f32.vlgmr.msra.gmra.mrb[0].mxu0 %v3344_v15 }
  0x1c   :  { %3064 = vmatpush3.bf16.msra.mxu0 %v3373_v50  ;;  %2785 = vmatprep.mubr.f32.mxu0 %v3352_v20 }
  0x1d   :  { %3066 = vmatprep.subr.bf16.mxu0 %v3342_v14 }
  0x1f   :  { %2786 = vmatmul.mubr.f32.gmra.mrb[2].mxu0 %v3354_v21 }
  0x20   :  { %2788 = vmatprep.mubr.f32.mxu0 %v3359_v26 }
  0x23   :  { %2789 = vmatmul.mubr.f32.gmra.mrb[4].mxu0 %v3368_v38 }
  0x24   :  { %2795 = vmatprep.mubr.f32.mxu0 %v3350_v19 }
  0x27   :  { %2796 = vmatmul.mubr.f32.vlgmr.msra.gmra.mrb[0].mxu0 %v128_v23 }
  0x28   :  { %3068 = vmatpush3.bf16.msra.mxu0 %v3342_v14  ;;  %2798 = vmatprep.mubr.f32.mxu0 %v138_v28 }
  0x29   :  { %3070 = vmatprep.subr.bf16.mxu0 %v3387_v57 }
  0x2b   :  { %2799 = vmatmul.mubr.f32.gmra.mrb[2].mxu0 %v148_v29 }
  0x2c   :  { %2801 = vmatprep.mubr.f32.mxu0 %v158_v34 }
  0x2f   :  { %2802 = vmatmul.mubr.f32.gmra.mrb[4].mxu0 %v168_v46 }
  0x30   :  { %2808 = vmatprep.mubr.f32.mxu0 %v119_v27 }
  0x33   :  { %2809 = vmatmul.mubr.f32.vlgmr.msra.gmra.mrb[0].mxu0 %v129_v31 }
  0x34   :  { %3072 = vmatpush3.bf16.msra.mxu0 %v3387_v57  ;;  %2811 = vmatprep.mubr.f32.mxu0 %v139_v36 }
  0x35   :  { %3074 = vmatprep.subr.bf16.mxu0 %v3342_v14 }
  0x37   :  { %2812 = vmatmul.mubr.f32.gmra.mrb[2].mxu0 %v149_v37 }
  0x38   :  { %2814 = vmatprep.mubr.f32.mxu0 %v159_v42 }
  0x3b   :  { %2815 = vmatmul.mubr.f32.gmra.mrb[4].mxu0 %v169_v52  ;;  %v2583_v52 = vld [vmem:[%s3612_s0 + $0x30] sm:$0xff] }
  0x3c   :  { %2821 = vmatprep.mubr.f32.mxu0 %v3334_v9  ;;  %v1307_v53 = vsel %vm31_vm0, %v2583_v52, 0 }
  0x3d   :  { %v3469_v56 = vand.u32 4294901760, %v1307_v53 }
  0x3f   :  { %2822 = vmatmul.mubr.f32.vlgmr.msra.gmra.mrb[0].mxu0 %v3344_v15 }
  0x40   :  { %3076 = vmatpush3.bf16.msra.mxu0 %v3342_v14  ;;  %2824 = vmatprep.mubr.f32.mxu0 %v3352_v20 }
  0x43   :  { %2825 = vmatmul.mubr.f32.gmra.mrb[2].mxu0 %v3354_v21 }
  0x44   :  { %2827 = vmatprep.mubr.f32.mxu0 %v3359_v26 }
  0x47   :  { %2828 = vmatmul.mubr.f32.gmra.mrb[4].mxu0 %v3368_v38 }
  0x48   :  { %2834 = vmatprep.mubr.f32.mxu0 %v3334_v9 }
  0x4b   :  { %2835 = vmatmul.mubr.f32.vlgmr.msra.gmra.mrb[0].mxu0 %v3344_v15 }
  0x4c   :  { %2837 = vmatprep.mubr.f32.mxu0 %v3352_v20 }
  0x4f   :  { %2838 = vmatmul.mubr.f32.gmra.mrb[2].mxu0 %v3354_v21 }
  0x50   :  { %2840 = vmatprep.mubr.f32.mxu0 %v3359_v26 }
  0x53   :  { %2841 = vmatmul.mubr.f32.gmra.mrb[4].mxu0 %v3368_v38 }
 0x11e   :  { %v2836_v59 = vpop.f32.mrb[0].mxu0 }
 0x11f   :  { %v3197_v60 = vadd.f32 %v2836_v59, %v3409_v58  ;;  %v690_v61 = vpop.f32.mrb[1].mxu0  ;;  %v1310_v59 = vsel %vm31_vm0, %v2584_v54, 0 }
 0x120   :  { %v3198_v62 = vadd.f32 %v3409_v58, %v690_v61  ;;  %v2586_v61 = vld [vmem:[%s3612_s0 + $0x48] sm:$0xff] }
 0x121   :  { %725 = vst.msk [vmem:[%s3614_s3 + $0x8] sm:$0xff] %vm31_vm0, %v3197_v60  ;;  %v773_v63 = vand.u32 4294901760, %v3197_v60 }
 0x122   :  { %724 = vst.msk [vmem:[%s3614_s3] sm:$0xff] %vm31_vm0, %v3198_v62  ;;  %v770_v0 = vand.u32 4294901760, %v3198_v62  ;;  %v2839_v1 = vpop.f32.mrb[2].mxu0  ;;  %730 = vxpose.xlu0.b32.start [1/4] (short) (narrow) %v3198_v62, 16 }
 0x123   :  { %v867_v2 = vsub.f32 %v3197_v60, %v773_v63  ;;  %v3199_v3 = vadd.f32 %v2839_v1, %v3409_v58  ;;  %v702_v4 = vpop.f32.mrb[3].mxu0 }
 0x124   :  { %v3422_v5 = vpack.c.bf16 %v773_v63, %v770_v0  ;;  %v860_v6 = vsub.f32 %v3198_v62, %v770_v0  ;;  %v3200_v7 = vadd.f32 %v3409_v58, %v702_v4  ;;  %v2587_v62 = vld [vmem:[%s3612_s0 + $0x50] sm:$0xff]  ;;  %v3479_v63 = vand.u32 4294901760, %v1310_v59  ;;  %v2588_v4 = vld [vmem:[%s3612_s0 + $0x58] sm:$0xff] }
 0x125   :  { %727 = vst.msk [vmem:[%s3614_s3 + $0x18] sm:$0xff] %vm31_vm0, %v3199_v3  ;;  %v779_v8 = vand.u32 4294901760, %v3199_v3  ;;  %v868_v9 = vand.u32 4294901760, %v867_v2  ;;  %v3482_v0 = vsub.f32 %v1307_v53, %v3469_v56 }
 0x126   :  { %726 = vst.msk [vmem:[%s3614_s3 + $0x10] sm:$0xff] %vm31_vm0, %v3200_v7  ;;  %v776_v10 = vand.u32 4294901760, %v3200_v7  ;;  %v2842_v11 = vpop.f32.mrb[4].mxu0  ;;  %731 = vxpose.xlu0.b32.cont [2/4] (short) (narrow) %v3197_v60, 16  ;;  %3078 = vmatprep.subr.bf16.mxu1 %v3422_v5  ;;  %v861_v12 = vand.u32 4294901760, %v860_v6  ;;  %v3093_v13 = vpack.c.bf16 %v867_v2, %v860_v6  ;;  %v1313_v60 = vsel %vm31_vm0, %v2585_v55, 0 }
 0x127   :  { %v881_v15 = vsub.f32 %v3199_v3, %v779_v8  ;;  %v3201_v16 = vadd.f32 %v2842_v11, %v3409_v58  ;;  %v714_v17 = vpop.f32.mrb[5].mxu0  ;;  %3080 = vmatpush3.bf16.msra.mxu1 %v3422_v5  ;;  %v869_v18 = vsub.f32 %v867_v2, %v868_v9  ;;  %v3484_v1 = vand.u32 4294901760, %v1313_v60 }
 0x128   :  { %v3436_v19 = vpack.c.bf16 %v779_v8, %v776_v10  ;;  %v874_v20 = vsub.f32 %v3200_v7, %v776_v10  ;;  %v3202_v21 = vadd.f32 %v3409_v58, %v714_v17  ;;  %v862_v22 = vsub.f32 %v860_v6, %v861_v12 }
 0x129   :  { %729 = vst.msk [vmem:[%s3614_s3 + $0x28] sm:$0xff] %vm31_vm0, %v3201_v16  ;;  %v870_v23 = vand.u32 4294901760, %v869_v18  ;;  %v882_v24 = vand.u32 4294901760, %v881_v15  ;;  %v3109_v25 = vpack.c.bf16 %v868_v9, %v861_v12  ;;  %v1316_v2 = vsel %vm31_vm0, %v2586_v61, 0 }
 0x12a   :  { %728 = vst.msk [vmem:[%s3614_s3 + $0x20] sm:$0xff] %vm31_vm0, %v3202_v21  ;;  %732 = vxpose.xlu0.b32.cont [3/4] (short) (narrow) %v3200_v7, 16  ;;  %3082 = vmatprep.subr.bf16.mxu1 %v3436_v19  ;;  %v863_v26 = vand.u32 4294901760, %v862_v22  ;;  %v875_v27 = vand.u32 4294901760, %v874_v20  ;;  %v3097_v28 = vpack.c.bf16 %v881_v15, %v874_v20  ;;  %v3492_v6 = vsub.f32 %v1310_v59, %v3479_v63 }
 0x12b   :  { %3084 = vmatpush3.bf16.msra.mxu1 %v3436_v19  ;;  %v883_v29 = vsub.f32 %v881_v15, %v882_v24  ;;  %v3494_v7 = vand.u32 4294901760, %v1316_v2  ;;  %v1393_v8 = vand.u32 4294901760, %v3482_v0  ;;  %v1412_v9 = vsub.f32 %v1313_v60, %v3484_v1 }
 0x12c   :  { %v3085_v30 = vpack.c.bf16 %v870_v23, %v863_v26  ;;  %v876_v31 = vsub.f32 %v874_v20, %v875_v27  ;;  %v3113_v32 = vpack.c.bf16 %v882_v24, %v875_v27  ;;  %v1322_v11 = vsel %vm31_vm0, %v2588_v4, 0 }
 0x12d   :  { %v884_v33 = vand.u32 4294901760, %v883_v29  ;;  %v1403_v12 = vand.u32 4294901760, %v3492_v6  ;;  %v3505_v15 = vand.u32 4294901760, %v1322_v11  ;;  %v1394_v16 = vsub.f32 %v3482_v0, %v1393_v8 }
 0x12e   :  { %733 = vxpose.xlu0.b32.end [4/4] (short) (narrow) %v3199_v3, 16  ;;  %3086 = vmatprep.subr.bf16.mxu1 %v3085_v30  ;;  %v877_v34 = vand.u32 4294901760, %v876_v31  ;;  %v1319_v3 = vsel %vm31_vm0, %v2587_v62, 0  ;;  %v1413_v17 = vand.u32 4294901760, %v1412_v9 }
 0x12f   :  { %v3498_v10 = vand.u32 4294901760, %v1319_v3  ;;  %v1404_v20 = vsub.f32 %v3492_v6, %v1403_v12  ;;  %v1442_v22 = vsub.f32 %v1322_v11, %v3505_v15  ;;  %v1395_v23 = vand.u32 4294901760, %v1394_v16 }
 0x130   :  { %v3089_v35 = vpack.c.bf16 %v884_v33, %v877_v34  ;;  %v1414_v24 = vsub.f32 %v1412_v9, %v1413_v17 }
 0x131   :  { %v1432_v18 = vsub.f32 %v1319_v3, %v3498_v10  ;;  %v1443_v27 = vand.u32 4294901760, %v1442_v22 }
 0x1a2   :  { %v746_v36 = vpop.trf.xlu0 }
 0x1a3   :  { %v764_v37 = vsel %vm762_vm1, %v746_v36, 0 }
 0x1a4   :  { %v838_v38 = vand.u32 4294901760, %v764_v37 }
 0x1a6   :  { %v839_v39 = vsub.f32 %v764_v37, %v838_v38  ;;  %v747_v40 = vpop.trf.xlu0 }
 0x1a7   :  { %v767_v41 = vsel %vm762_vm1, %v747_v40, 0 }
 0x1a8   :  { %v3451_v42 = vand.u32 4294901760, %v767_v41  ;;  %v840_v43 = vand.u32 4294901760, %v839_v39 }
 0x1aa   :  { %v849_v44 = vsub.f32 %v767_v41, %v3451_v42  ;;  %v841_v45 = vsub.f32 %v839_v39, %v840_v43 }
 0x1ac   :  { %v850_v46 = vand.u32 4294901760, %v849_v44  ;;  %v842_v47 = vand.u32 4294901760, %v841_v45 }
 0x1ae   :  { %2851 = vmatprep.mubr.f32.mxu1 %v842_v47  ;;  %v851_v49 = vsub.f32 %v849_v44, %v850_v46 }
 0x1b0   :  { %v852_v51 = vand.u32 4294901760, %v851_v49 }
 0x1b2   :  { %2852 = vmatmul.mubr.f32.vlgmr.msra.gmra.mrb[0].mxu1 %v852_v51 }
 0x1b3   :  { %3088 = vmatpush3.bf16.msra.mxu1 %v3085_v30  ;;  %2862 = vmatprep.mubr.f32.mxu1 %v838_v38 }
 0x1b4   :  { %3090 = vmatprep.subr.bf16.mxu1 %v3089_v35 }
 0x1b7   :  { %3092 = vmatpush3.bf16.msra.mxu1 %v3089_v35 }
 0x1b8   :  { %3094 = vmatprep.subr.bf16.mxu1 %v3093_v13 }
 0x1ba   :  { %2863 = vmatmul.mubr.f32.vlgmr.msra.gmra.mrb[0].mxu1 %v3451_v42 }
 0x1bb   :  { %3096 = vmatpush3.bf16.msra.mxu1 %v3093_v13  ;;  %2873 = vmatprep.mubr.f32.mxu1 %v839_v39  ;;  %v1422_v13 = vsub.f32 %v1316_v2, %v3494_v7 }
 0x1bc   :  { %3098 = vmatprep.subr.bf16.mxu1 %v3097_v28 }
 0x1bd   :  { %v1423_v21 = vand.u32 4294901760, %v1422_v13 }
 0x1bf   :  { %3100 = vmatpush3.bf16.msra.mxu1 %v3097_v28  ;;  %v1424_v26 = vsub.f32 %v1422_v13, %v1423_v21  ;;  %v1415_v28 = vand.u32 4294901760, %v1414_v24 }
 0x1c0   :  { %3102 = vmatprep.subr.bf16.mxu1 %v3422_v5 }
 0x1c1   :  { %v1425_v30 = vand.u32 4294901760, %v1424_v26 }
 0x1c2   :  { %2874 = vmatmul.mubr.f32.vlgmr.msra.gmra.mrb[0].mxu1 %v849_v44 }
 0x1c3   :  { %3104 = vmatpush3.bf16.msra.mxu1 %v3422_v5  ;;  %2884 = vmatprep.mubr.f32.mxu1 %v840_v43 }
 0x1c4   :  { %3106 = vmatprep.subr.bf16.mxu1 %v3436_v19 }
 0x1c7   :  { %3108 = vmatpush3.bf16.msra.mxu1 %v3436_v19 }
 0x1c8   :  { %3110 = vmatprep.subr.bf16.mxu1 %v3109_v25 }
 0x1ca   :  { %2885 = vmatmul.mubr.f32.vlgmr.msra.gmra.mrb[0].mxu1 %v850_v46 }
 0x1cb   :  { %3112 = vmatpush3.bf16.msra.mxu1 %v3109_v25  ;;  %2895 = vmatprep.mubr.f32.mxu1 %v838_v38  ;;  %v1433_v25 = vand.u32 4294901760, %v1432_v18 }
 0x1cc   :  { %3114 = vmatprep.subr.bf16.mxu1 %v3113_v32 }
 0x1cd   :  { %v1434_v29 = vsub.f32 %v1432_v18, %v1433_v25 }
 0x1cf   :  { %3116 = vmatpush3.bf16.msra.mxu1 %v3113_v32  ;;  %v1435_v31 = vand.u32 4294901760, %v1434_v29 }
 0x1d0   :  { %3118 = vmatprep.subr.bf16.mxu1 %v3422_v5 }
 0x1d2   :  { %2896 = vmatmul.mubr.f32.vlgmr.msra.gmra.mrb[0].mxu1 %v3451_v42 }
 0x1d3   :  { %3120 = vmatpush3.bf16.msra.mxu1 %v3422_v5  ;;  %2906 = vmatprep.mubr.f32.mxu1 %v838_v38  ;;  %v1405_v5 = vand.u32 4294901760, %v1404_v20 }
 0x1d4   :  { %3122 = vmatprep.subr.bf16.mxu1 %v3436_v19 }
 0x1d7   :  { %3124 = vmatpush3.bf16.msra.mxu1 %v3436_v19  ;;  %v1444_v19 = vsub.f32 %v1442_v22, %v1443_v27 }
 0x1d8   :  { %3126 = vmatprep.subr.bf16.mxu1 %v3342_v14 }
 0x1d9   :  { %v1445_v32 = vand.u32 4294901760, %v1444_v19 }
 0x1da   :  { %2907 = vmatmul.mubr.f32.vlgmr.msra.gmra.mrb[0].mxu1 %v3451_v42 }
 0x1db   :  { %3128 = vmatpush3.bf16.msra.mxu1 %v3342_v14  ;;  %2913 = vmatprep.mubr.f32.mxu1 %v1395_v23 }
 0x1dc   :  { %3130 = vmatprep.subr.bf16.mxu1 %v3371_v48 }
 0x1de   :  { %2914 = vmatmul.mubr.f32.vlgmr.msra.gmra.mrb[2].mxu1 %v1405_v5 }
 0x1df   :  { %3132 = vmatpush3.bf16.msra.mxu1 %v3371_v48  ;;  %2916 = vmatprep.mubr.f32.mxu1 %v1415_v28 }
 0x1e0   :  { %3134 = vmatprep.subr.bf16.mxu1 %v3373_v50 }
 0x1e2   :  { %2917 = vmatmul.mubr.f32.gmra.mrb[4].mxu1 %v1425_v30 }
 0x1e3   :  { %2919 = vmatprep.mubr.f32.mxu1 %v1435_v31 }
 0x1e6   :  { %2920 = vmatmul.mubr.f32.gmra.mrb[6].mxu1 %v1445_v32 }
 0x1e7   :  { %2926 = vmatprep.mubr.f32.mxu1 %v3469_v56 }
 0x1ea   :  { %2927 = vmatmul.mubr.f32.vlgmr.msra.gmra.mrb[2].mxu1 %v3479_v63 }
 0x1eb   :  { %3136 = vmatpush3.bf16.msra.mxu1 %v3373_v50  ;;  %2929 = vmatprep.mubr.f32.mxu1 %v3484_v1 }
 0x1ec   :  { %3138 = vmatprep.subr.bf16.mxu1 %v3342_v14 }
 0x1ee   :  { %2930 = vmatmul.mubr.f32.gmra.mrb[4].mxu1 %v3494_v7 }
 0x1ef   :  { %2932 = vmatprep.mubr.f32.mxu1 %v3498_v10 }
 0x1f2   :  { %2933 = vmatmul.mubr.f32.gmra.mrb[6].mxu1 %v3505_v15 }
 0x1f3   :  { %2939 = vmatprep.mubr.f32.mxu1 %v3482_v0 }
 0x1f6   :  { %2940 = vmatmul.mubr.f32.vlgmr.msra.gmra.mrb[2].mxu1 %v3492_v6 }
 0x1f7   :  { %3140 = vmatpush3.bf16.msra.mxu1 %v3342_v14  ;;  %2942 = vmatprep.mubr.f32.mxu1 %v1412_v9 }
 0x1f8   :  { %3142 = vmatprep.subr.bf16.mxu1 %v3387_v57 }
 0x1fa   :  { %2943 = vmatmul.mubr.f32.gmra.mrb[4].mxu1 %v1422_v13 }
 0x1fb   :  { %2945 = vmatprep.mubr.f32.mxu1 %v1432_v18 }
 0x1fe   :  { %2946 = vmatmul.mubr.f32.gmra.mrb[6].mxu1 %v1442_v22 }
 0x1ff   :  { %2952 = vmatprep.mubr.f32.mxu1 %v1393_v8 }
 0x202   :  { %2953 = vmatmul.mubr.f32.vlgmr.msra.gmra.mrb[2].mxu1 %v1403_v12 }
 0x203   :  { %3144 = vmatpush3.bf16.msra.mxu1 %v3387_v57  ;;  %2955 = vmatprep.mubr.f32.mxu1 %v1413_v17 }
 0x204   :  { %3146 = vmatprep.subr.bf16.mxu1 %v3342_v14 }
 0x206   :  { %2956 = vmatmul.mubr.f32.gmra.mrb[4].mxu1 %v1423_v21 }
 0x207   :  { %2958 = vmatprep.mubr.f32.mxu1 %v1433_v25 }
 0x20a   :  { %2959 = vmatmul.mubr.f32.gmra.mrb[6].mxu1 %v1443_v27 }
 0x20b   :  { %2965 = vmatprep.mubr.f32.mxu1 %v3469_v56 }
 0x20e   :  { %2966 = vmatmul.mubr.f32.vlgmr.msra.gmra.mrb[2].mxu1 %v3479_v63 }
 0x20f   :  { %3148 = vmatpush3.bf16.msra.mxu1 %v3342_v14  ;;  %2968 = vmatprep.mubr.f32.mxu1 %v3484_v1 }
 0x212   :  { %2969 = vmatmul.mubr.f32.gmra.mrb[4].mxu1 %v3494_v7 }
 0x213   :  { %2971 = vmatprep.mubr.f32.mxu1 %v3498_v10 }
 0x216   :  { %2972 = vmatmul.mubr.f32.gmra.mrb[6].mxu1 %v3505_v15 }
 0x217   :  { %2978 = vmatprep.mubr.f32.mxu1 %v3469_v56 }
 0x21a   :  { %2979 = vmatmul.mubr.f32.vlgmr.msra.gmra.mrb[2].mxu1 %v3479_v63 }
 0x21b   :  { %2981 = vmatprep.mubr.f32.mxu1 %v3484_v1 }
 0x21e   :  { %2982 = vmatmul.mubr.f32.gmra.mrb[4].mxu1 %v3494_v7 }
 0x21f   :  { %2984 = vmatprep.mubr.f32.mxu1 %v3498_v10 }
 0x222   :  { %2985 = vmatmul.mubr.f32.gmra.mrb[6].mxu1 %v3505_v15 }
 0x2ad   :  { %v2908_v14 = vpop.f32.mrb[0].mxu1 }
 0x2ae   :  { %1298 = vst.msk [vmem:[%s3615_s4 + $0x8] sm:$0xff] %vm31_vm0, %v2908_v14  ;;  %v1287_v48 = vpop.f32.mrb[1].mxu1 }
 0x2af   :  { %1297 = vst.msk [vmem:[%s3615_s4] sm:$0xff] %vm31_vm0, %v1287_v48 }
 0x2ed   :  { %v2980_v50 = vpop.f32.mrb[2].mxu1 }
 0x2ee   :  { %v3203_v57 = vadd.f32 %v2980_v50, %v3409_v58  ;;  %v1964_v33 = vpop.f32.mrb[3].mxu1 }
 0x2ef   :  { %v3204_v34 = vadd.f32 %v3409_v58, %v1964_v33 }
 0x2f0   :  { %2590 = vst.msk [vmem:[%s3614_s3 + $0x38] sm:$0xff] %vm31_vm0, %v3203_v57  ;;  %v2047_v35 = vand.u32 4294901760, %v3203_v57 }
 0x2f1   :  { %2589 = vst.msk [vmem:[%s3614_s3 + $0x30] sm:$0xff] %vm31_vm0, %v3204_v34  ;;  %v2044_v36 = vand.u32 4294901760, %v3204_v34  ;;  %v2983_v37 = vpop.f32.mrb[4].mxu1  ;;  %2005 = vxpose.xlu1.b32.start [1/4] (short) (narrow) %v3204_v34, 16 }
 0x2f2   :  { %v2141_v38 = vsub.f32 %v3203_v57, %v2047_v35  ;;  %v3205_v39 = vadd.f32 %v2983_v37, %v3409_v58  ;;  %v1976_v40 = vpop.f32.mrb[5].mxu1 }
 0x2f3   :  { %v3566_v41 = vpack.c.bf16 %v2047_v35, %v2044_v36  ;;  %v2134_v42 = vsub.f32 %v3204_v34, %v2044_v36  ;;  %v3206_v43 = vadd.f32 %v3409_v58, %v1976_v40 }
 0x2f4   :  { %2592 = vst.msk [vmem:[%s3614_s3 + $0x48] sm:$0xff] %vm31_vm0, %v3205_v39  ;;  %v2053_v44 = vand.u32 4294901760, %v3205_v39  ;;  %v2142_v45 = vand.u32 4294901760, %v2141_v38 }
 0x2f5   :  { %2591 = vst.msk [vmem:[%s3614_s3 + $0x40] sm:$0xff] %vm31_vm0, %v3206_v43  ;;  %v2050_v46 = vand.u32 4294901760, %v3206_v43  ;;  %v2986_v47 = vpop.f32.mrb[6].mxu1  ;;  %2006 = vxpose.xlu1.b32.cont [2/4] (short) (narrow) %v3203_v57, 16  ;;  %3150 = vmatprep.subr.bf16.mxu0 %v3566_v41  ;;  %v2135_v49 = vand.u32 4294901760, %v2134_v42  ;;  %v3165_v51 = vpack.c.bf16 %v2141_v38, %v2134_v42 }
 0x2f6   :  { %v2155_v52 = vsub.f32 %v3205_v39, %v2053_v44  ;;  %v3207_v53 = vadd.f32 %v2986_v47, %v3409_v58  ;;  %v1988_v54 = vpop.f32.mrb[7].mxu1  ;;  %3152 = vmatpush3.bf16.msra.mxu0 %v3566_v41  ;;  %v2143_v55 = vsub.f32 %v2141_v38, %v2142_v45 }
 0x2f7   :  { %v3580_v56 = vpack.c.bf16 %v2053_v44, %v2050_v46  ;;  %v2148_v59 = vsub.f32 %v3206_v43, %v2050_v46  ;;  %v3208_v60 = vadd.f32 %v3409_v58, %v1988_v54  ;;  %v2136_v61 = vsub.f32 %v2134_v42, %v2135_v49 }
 0x2f8   :  { %2594 = vst.msk [vmem:[%s3614_s3 + $0x58] sm:$0xff] %vm31_vm0, %v3207_v53  ;;  %v2144_v62 = vand.u32 4294901760, %v2143_v55  ;;  %v2156_v63 = vand.u32 4294901760, %v2155_v52  ;;  %v3181_v0 = vpack.c.bf16 %v2142_v45, %v2135_v49 }
 0x2f9   :  { %2593 = vst.msk [vmem:[%s3614_s3 + $0x50] sm:$0xff] %vm31_vm0, %v3208_v60  ;;  %2007 = vxpose.xlu1.b32.cont [3/4] (short) (narrow) %v3206_v43, 16  ;;  %3154 = vmatprep.subr.bf16.mxu0 %v3580_v56  ;;  %v2137_v1 = vand.u32 4294901760, %v2136_v61  ;;  %v2149_v2 = vand.u32 4294901760, %v2148_v59  ;;  %v3169_v58 = vpack.c.bf16 %v2155_v52, %v2148_v59 }
 0x2fa   :  { %3156 = vmatpush3.bf16.msra.mxu0 %v3580_v56  ;;  %v2157_v3 = vsub.f32 %v2155_v52, %v2156_v63 }
 0x2fb   :  { %v3157_v4 = vpack.c.bf16 %v2144_v62, %v2137_v1  ;;  %v2150_v6 = vsub.f32 %v2148_v59, %v2149_v2  ;;  %v3185_v7 = vpack.c.bf16 %v2156_v63, %v2149_v2 }
 0x2fc   :  { %v2158_v8 = vand.u32 4294901760, %v2157_v3 }
 0x2fd   :  { %2008 = vxpose.xlu1.b32.end [4/4] (short) (narrow) %v3205_v39, 16  ;;  %3158 = vmatprep.subr.bf16.mxu0 %v3157_v4  ;;  %v2151_v9 = vand.u32 4294901760, %v2150_v6 }
 0x2ff   :  { %v3161_v10 = vpack.c.bf16 %v2158_v8, %v2151_v9 }
 0x371   :  { %v2021_v11 = vpop.trf.xlu1 }
 0x372   :  { %v2038_v12 = vsel %vm762_vm1, %v2021_v11, 0 }
 0x373   :  { %v2112_v13 = vand.u32 4294901760, %v2038_v12 }
 0x375   :  { %v2113_v15 = vsub.f32 %v2038_v12, %v2112_v13  ;;  %v2022_v16 = vpop.trf.xlu1 }
 0x376   :  { %v2041_v17 = vsel %vm762_vm1, %v2022_v16, 0 }
 0x377   :  { %v2114_v18 = vand.u32 4294901760, %v2113_v15  ;;  %v2122_v20 = vand.u32 4294901760, %v2041_v17 }
 0x379   :  { %v2123_v21 = vsub.f32 %v2041_v17, %v2122_v20  ;;  %v2115_v22 = vsub.f32 %v2113_v15, %v2114_v18 }
 0x37b   :  { %v2124_v23 = vand.u32 4294901760, %v2123_v21  ;;  %v2116_v24 = vand.u32 4294901760, %v2115_v22 }
 0x37d   :  { %v2125_v25 = vsub.f32 %v2123_v21, %v2124_v23  ;;  %2995 = vmatprep.mubr.f32.mxu0 %v2116_v24 }
 0x37f   :  { %v2126_v5 = vand.u32 4294901760, %v2125_v25 }
 0x381   :  { %2996 = vmatmul.mubr.f32.vlgmr.msra.gmra.mrb[6].mxu0 %v2126_v5 }
 0x382   :  { %3160 = vmatpush3.bf16.msra.mxu0 %v3157_v4  ;;  %3006 = vmatprep.mubr.f32.mxu0 %v2112_v13 }
 0x383   :  { %3162 = vmatprep.subr.bf16.mxu0 %v3161_v10 }
 0x386   :  { %3164 = vmatpush3.bf16.msra.mxu0 %v3161_v10 }
 0x387   :  { %3166 = vmatprep.subr.bf16.mxu0 %v3165_v51 }
 0x389   :  { %3007 = vmatmul.mubr.f32.vlgmr.msra.gmra.mrb[6].mxu0 %v2122_v20 }
 0x38a   :  { %3168 = vmatpush3.bf16.msra.mxu0 %v3165_v51  ;;  %3017 = vmatprep.mubr.f32.mxu0 %v2113_v15 }
 0x38b   :  { %3170 = vmatprep.subr.bf16.mxu0 %v3169_v58 }
 0x38e   :  { %3172 = vmatpush3.bf16.msra.mxu0 %v3169_v58 }
 0x38f   :  { %3174 = vmatprep.subr.bf16.mxu0 %v3566_v41 }
 0x391   :  { %3018 = vmatmul.mubr.f32.vlgmr.msra.gmra.mrb[6].mxu0 %v2123_v21 }
 0x392   :  { %3176 = vmatpush3.bf16.msra.mxu0 %v3566_v41  ;;  %3028 = vmatprep.mubr.f32.mxu0 %v2114_v18 }
 0x393   :  { %3178 = vmatprep.subr.bf16.mxu0 %v3580_v56 }
 0x396   :  { %3180 = vmatpush3.bf16.msra.mxu0 %v3580_v56 }
 0x397   :  { %3182 = vmatprep.subr.bf16.mxu0 %v3181_v0 }
 0x399   :  { %3029 = vmatmul.mubr.f32.vlgmr.msra.gmra.mrb[6].mxu0 %v2124_v23 }
 0x39a   :  { %3184 = vmatpush3.bf16.msra.mxu0 %v3181_v0  ;;  %3039 = vmatprep.mubr.f32.mxu0 %v2112_v13 }
 0x39b   :  { %3186 = vmatprep.subr.bf16.mxu0 %v3185_v7 }
 0x39e   :  { %3188 = vmatpush3.bf16.msra.mxu0 %v3185_v7 }
 0x39f   :  { %3190 = vmatprep.subr.bf16.mxu0 %v3566_v41 }
 0x3a1   :  { %3040 = vmatmul.mubr.f32.vlgmr.msra.gmra.mrb[6].mxu0 %v2122_v20 }
 0x3a2   :  { %3192 = vmatpush3.bf16.msra.mxu0 %v3566_v41  ;;  %3050 = vmatprep.mubr.f32.mxu0 %v2112_v13 }
 0x3a3   :  { %3194 = vmatprep.subr.bf16.mxu0 %v3580_v56 }
 0x3a6   :  { %3196 = vmatpush3.bf16.msra.mxu0 %v3580_v56 }
 0x3a9   :  { %3051 = vmatmul.mubr.f32.vlgmr.msra.gmra.mrb[6].mxu0 %v2122_v20 }
 0x47c   :  { %v3052_v26 = vpop.f32.mrb[6].mxu0 }
 0x47d   :  { %2596 = vst.msk [vmem:[%s3615_s4 + $0x18] sm:$0xff] %vm31_vm0, %v3052_v26  ;;  %v2561_v27 = vpop.f32.mrb[7].mxu0 }
 0x47e   :  { %2595 = vst.msk [vmem:[%s3615_s4 + $0x10] sm:$0xff] %vm31_vm0, %v2561_v27 }

// kernel: time_var_kp_forward.3
= control target key start
LH: loop header
LB: loop body
LE: loop exit
PB: predicated region body
PF: predicated region fallthrough
CT: control target
= control target key end

     0   :  { %s19696_s0 = inlined_call_operand.vmem [shape: f32[2,48,16], index: 0, kind: input, shape index: {}]   ;;  %s19697_s1 = inlined_call_operand.vmem [shape: f32[2,32,8], index: 1, kind: input, shape index: {}]   ;;  %s19698_s2 = inlined_call_operand.vmem [shape: f32[2,16,16], index: 2, kind: input, shape index: {}]   ;;  %s19699_s3 = inlined_call_operand.vmem [shape: f32[8,16], index: 3, kind: input, shape index: {}]   ;;  %s19700_s4 = inlined_call_operand.vmem [shape: f32[1,16], index: 4, kind: input, shape index: {}]   ;;  %s19701_s5 = inlined_call_operand.vmem [shape: f32[2,32,16], index: 5, kind: output, shape index: {0}]   ;;  %s19702_s6 = inlined_call_operand.hbm [shape: f32[2,16,16], index: 6, kind: output, shape index: {1}]  }
   0x1   :  { %v18558_v0 = vld [vmem:[%s19696_s0] sm:$0xff]  ;;  %v18564_v1 = vld [vmem:[%s19696_s0 + $0x8] sm:$0xff] }
   0x2   :  { %37 = vxpose.xlu0.b32.start [1/4] (short) (narrow) %v18558_v0, 16 }
   0x3   :  { %12 = vsyncpa [#allocation3], 0  ;;  %v18569_v2 = vld [vmem:[%s19697_s1] sm:$0xff]  ;;  %v18574_v3 = vld [vmem:[%s19697_s1 + $0x8] sm:$0xff]  ;;  %vm69_vm0 = vcmask 261120   ;;  %vm604_vm1 = vcmask 130048  }
   0x4   :  { %v77_v4 = vand.u32 4294901760, %v18569_v2  ;;  %v80_v5 = vand.u32 4294901760, %v18574_v3  ;;  %v18582_v6 = vld [vmem:[%s19696_s0 + $0x10] sm:$0xff]  ;;  %v18596_v11 = vld [vmem:[%s19697_s1 + $0x18] sm:$0xff]  ;;  %v31_v50 = vld [vmem:[%s19698_s2] sm:$0xff]  ;;  %vm6485_vm2 = vcmask 64512  }
   0x5   :  { %v18591_v10 = vld [vmem:[%s19697_s1 + $0x10] sm:$0xff]  ;;  %v86_v13 = vand.u32 4294901760, %v18596_v11  ;;  %v18605_v16 = vld [vmem:[%s19696_s0 + $0x18] sm:$0xff]  ;;  %v606_v51 = vsel %vm604_vm1, %v31_v50, 0  ;;  %v32_v57 = vld [vmem:[%s19698_s2 + $0x8] sm:$0xff]  ;;  %s18517_s13 = smov [#allocation2]  }
   0x6   :  { %38 = vxpose.xlu0.b32.cont [2/4] (short) (narrow) %v18564_v1, 16  ;;  %v18584_v7 = vpack.c.bf16 %v80_v5, %v77_v4  ;;  %v167_v8 = vsub.f32 %v18569_v2, %v77_v4  ;;  %v174_v9 = vsub.f32 %v18574_v3, %v80_v5  ;;  %v83_v12 = vand.u32 4294901760, %v18591_v10 }
   0x7   :  { %v188_v21 = vsub.f32 %v18596_v11, %v86_v13  ;;  %v18666_v52 = vand.u32 4294901760, %v606_v51  ;;  %v609_v58 = vsel %vm604_vm1, %v32_v57, 0 }
   0x8   :  { %17389 = vmatprep.subr.bf16.mxu0 %v18584_v7  ;;  %v168_v14 = vand.u32 4294901760, %v167_v8  ;;  %v175_v15 = vand.u32 4294901760, %v174_v9  ;;  %v18608_v17 = vpack.c.bf16 %v86_v13, %v83_v12  ;;  %v181_v20 = vsub.f32 %v18591_v10, %v83_v12 }
   0x9   :  { %17391 = vmatpush3.bf16.msra.mxu0 %v18584_v7  ;;  %v189_v25 = vand.u32 4294901760, %v188_v21  ;;  %v17404_v32 = vpack.c.bf16 %v174_v9, %v167_v8  ;;  %v18669_v53 = vsub.f32 %v606_v51, %v18666_v52  ;;  %v18683_v59 = vand.u32 4294901760, %v609_v58 }
   0xa   :  { %39 = vxpose.xlu0.b32.cont [3/4] (short) (narrow) %v18582_v6, 16  ;;  %v169_v18 = vsub.f32 %v167_v8, %v168_v14  ;;  %v176_v19 = vsub.f32 %v174_v9, %v175_v15  ;;  %17393 = vmatprep.subr.bf16.mxu0 %v18608_v17  ;;  %v182_v24 = vand.u32 4294901760, %v181_v20  ;;  %v17408_v33 = vpack.c.bf16 %v188_v21, %v181_v20 }
   0xb   :  { %v190_v28 = vsub.f32 %v188_v21, %v189_v25  ;;  %v17420_v34 = vpack.c.bf16 %v175_v15, %v168_v14  ;;  %v18672_v54 = vand.u32 4294901760, %v18669_v53  ;;  %v18686_v60 = vsub.f32 %v609_v58, %v18683_v59 }
   0xc   :  { %v170_v22 = vand.u32 4294901760, %v169_v18  ;;  %v177_v23 = vand.u32 4294901760, %v176_v19  ;;  %v183_v27 = vsub.f32 %v181_v20, %v182_v24  ;;  %v17424_v35 = vpack.c.bf16 %v189_v25, %v182_v24 }
   0xd   :  { %17395 = vmatpush3.bf16.msra.mxu0 %v18608_v17  ;;  %v191_v30 = vand.u32 4294901760, %v190_v28  ;;  %19719 = vst [vmem:[#allocation5_spill] sm:$0xff] %v18672_v54  ;;  %v681_v55 = vsub.f32 %v18669_v53, %v18672_v54  ;;  %v18689_v61 = vand.u32 4294901760, %v18686_v60  ;;  %v1114_v24 = vsel %vm604_vm1, %v18558_v0, 0 }
   0xe   :  { %40 = vxpose.xlu0.b32.end [4/4] (short) (narrow) %v18605_v16, 16  ;;  %v17396_v26 = vpack.c.bf16 %v177_v23, %v170_v22  ;;  %v184_v29 = vand.u32 4294901760, %v183_v27  ;;  %v18708_v25 = vand.u32 4294901760, %v1114_v24  ;;  %v1120_v0 = vsel %vm604_vm1, %v18582_v6, 0 }
   0xf   :  { %v18676_v56 = vand.u32 4294901760, %v681_v55  ;;  %19720 = vst [vmem:[#allocation6_spill] sm:$0xff] %v18689_v61 }
  0x10   :  { %17397 = vmatprep.subr.bf16.mxu0 %v17396_v26  ;;  %v17400_v31 = vpack.c.bf16 %v191_v30, %v184_v29  ;;  %v1117_v30 = vsel %vm604_vm1, %v18564_v1, 0 }
  0x11   :  { %16042 = vmatprep.mubr.f32.mxu1 %v18676_v56 }
  0x82   :  { %v53_v36 = vpop.trf.xlu0 }
  0x83   :  { %v71_v37 = vsel %vm69_vm0, %v53_v36, 0 }
  0x84   :  { %v18616_v38 = vand.u32 4294901760, %v71_v37 }
  0x86   :  { %v18619_v39 = vsub.f32 %v71_v37, %v18616_v38  ;;  %v54_v40 = vpop.trf.xlu0 }
  0x87   :  { %v74_v41 = vsel %vm69_vm0, %v54_v40, 0 }
  0x88   :  { %v18622_v42 = vand.u32 4294901760, %v74_v41  ;;  %v18625_v43 = vand.u32 4294901760, %v18619_v39 }
  0x8a   :  { %v18628_v44 = vsub.f32 %v74_v41, %v18622_v42  ;;  %v148_v45 = vsub.f32 %v18619_v39, %v18625_v43 }
  0x8c   :  { %v18632_v46 = vand.u32 4294901760, %v148_v45  ;;  %v18635_v47 = vand.u32 4294901760, %v18628_v44 }
  0x8e   :  { %15980 = vmatprep.mubr.f32.mxu0 %v18632_v46  ;;  %v158_v48 = vsub.f32 %v18628_v44, %v18635_v47 }
  0x90   :  { %v18640_v49 = vand.u32 4294901760, %v158_v48 }
  0x92   :  { %15981 = vmatmul.mubr.f32.vlgmr.msra.gmra.mrb[0].mxu0 %v18640_v49 }
  0x93   :  { %17399 = vmatpush3.bf16.msra.mxu0 %v17396_v26  ;;  %15991 = vmatprep.mubr.f32.mxu0 %v18616_v38  ;;  %v18711_v26 = vsub.f32 %v1114_v24, %v18708_v25 }
  0x94   :  { %17401 = vmatprep.subr.bf16.mxu0 %v17400_v31 }
  0x95   :  { %v18714_v27 = vand.u32 4294901760, %v18711_v26 }
  0x97   :  { %17403 = vmatpush3.bf16.msra.mxu0 %v17400_v31  ;;  %v1195_v28 = vsub.f32 %v18711_v26, %v18714_v27  ;;  %v18725_v31 = vand.u32 4294901760, %v1117_v30 }
  0x98   :  { %17405 = vmatprep.subr.bf16.mxu0 %v17404_v32 }
  0x99   :  { %v18718_v29 = vand.u32 4294901760, %v1195_v28 }
  0x9a   :  { %15992 = vmatmul.mubr.f32.vlgmr.msra.gmra.mrb[0].mxu0 %v18622_v42 }
  0x9b   :  { %17407 = vmatpush3.bf16.msra.mxu0 %v17404_v32  ;;  %16002 = vmatprep.mubr.f32.mxu0 %v18619_v39  ;;  %19721 = vst [vmem:[#allocation7_spill] sm:$0xff] %v18718_v29  ;;  %v18727_v32 = vand.u32 4294901760, %v1120_v0 }
  0x9c   :  { %17409 = vmatprep.subr.bf16.mxu0 %v17408_v33 }
  0x9d   :  { %v18737_v36 = vsub.f32 %v1120_v0, %v18727_v32 }
  0x9f   :  { %17411 = vmatpush3.bf16.msra.mxu0 %v17408_v33  ;;  %v1123_v33 = vsel %vm604_vm1, %v18605_v16, 0  ;;  %v18746_v37 = vand.u32 4294901760, %v18737_v36 }
  0xa0   :  { %17413 = vmatprep.subr.bf16.mxu0 %v18584_v7 }
  0xa1   :  { %v1215_v55 = vsub.f32 %v18737_v36, %v18746_v37 }
  0xa2   :  { %16003 = vmatmul.mubr.f32.vlgmr.msra.gmra.mrb[0].mxu0 %v18628_v44 }
  0xa3   :  { %17415 = vmatpush3.bf16.msra.mxu0 %v18584_v7  ;;  %16013 = vmatprep.mubr.f32.mxu0 %v18625_v43 }
  0xa4   :  { %17417 = vmatprep.subr.bf16.mxu0 %v18608_v17 }
  0xa7   :  { %17419 = vmatpush3.bf16.msra.mxu0 %v18608_v17 }
  0xa8   :  { %17421 = vmatprep.subr.bf16.mxu0 %v17420_v34 }
  0xaa   :  { %16014 = vmatmul.mubr.f32.vlgmr.msra.gmra.mrb[0].mxu0 %v18635_v47 }
  0xab   :  { %17423 = vmatpush3.bf16.msra.mxu0 %v17420_v34  ;;  %16024 = vmatprep.mubr.f32.mxu0 %v18616_v38  ;;  %v18732_v34 = vsub.f32 %v1117_v30, %v18725_v31 }
  0xac   :  { %17425 = vmatprep.subr.bf16.mxu0 %v17424_v35 }
  0xad   :  { %v18740_v1 = vand.u32 4294901760, %v18732_v34 }
  0xaf   :  { %17427 = vmatpush3.bf16.msra.mxu0 %v17424_v35  ;;  %v18734_v35 = vand.u32 4294901760, %v1123_v33  ;;  %v1205_v48 = vsub.f32 %v18732_v34, %v18740_v1 }
  0xb0   :  { %17429 = vmatprep.subr.bf16.mxu0 %v18584_v7 }
  0xb1   :  { %v18743_v6 = vsub.f32 %v1123_v33, %v18734_v35 }
  0xb2   :  { %16025 = vmatmul.mubr.f32.vlgmr.msra.gmra.mrb[0].mxu0 %v18622_v42 }
  0xb3   :  { %17431 = vmatpush3.bf16.msra.mxu0 %v18584_v7  ;;  %16035 = vmatprep.mubr.f32.mxu0 %v18616_v38  ;;  %v691_v7 = vsub.f32 %v18686_v60, %v18689_v61  ;;  %v18751_v50 = vand.u32 4294901760, %v18743_v6 }
  0xb4   :  { %17433 = vmatprep.subr.bf16.mxu0 %v18608_v17 }
  0xb5   :  { %v18693_v15 = vand.u32 4294901760, %v691_v7  ;;  %v1225_v7 = vsub.f32 %v18743_v6, %v18751_v50 }
  0xb7   :  { %17435 = vmatpush3.bf16.msra.mxu0 %v18608_v17 }
  0xba   :  { %16036 = vmatmul.mubr.f32.vlgmr.msra.gmra.mrb[0].mxu0 %v18622_v42 }
  0xbb   :  { %16148 = vmatprep.mubr.f32.mxu0 %v18632_v46 }
 0x18d   :  { %v16037_v62 = vpop.f32.mrb[0].mxu0 }
 0x18e   :  { %v615_v63 = vand.u32 4294901760, %v16037_v62  ;;  %v594_v4 = vpop.f32.mrb[1].mxu0 }
 0x18f   :  { %v612_v5 = vand.u32 4294901760, %v594_v4 }
 0x190   :  { %v707_v8 = vsub.f32 %v16037_v62, %v615_v63 }
 0x191   :  { %v17436_v9 = vpack.c.bf16 %v615_v63, %v612_v5  ;;  %v700_v12 = vsub.f32 %v594_v4, %v612_v5  ;;  %v18760_v5 = vand.u32 4294901760, %v1205_v48 }
 0x192   :  { %v708_v13 = vand.u32 4294901760, %v707_v8 }
 0x193   :  { %v701_v14 = vand.u32 4294901760, %v700_v12  ;;  %17437 = vmatprep.subr.bf16.mxu1 %v17436_v9  ;;  %v17444_v17 = vpack.c.bf16 %v707_v8, %v700_v12 }
 0x194   :  { %v709_v18 = vsub.f32 %v707_v8, %v708_v13  ;;  %17439 = vmatpush3.bf16.msra.mxu1 %v17436_v9 }
 0x195   :  { %v702_v19 = vsub.f32 %v700_v12, %v701_v14  ;;  %v17452_v20 = vpack.c.bf16 %v708_v13, %v701_v14 }
 0x196   :  { %v710_v21 = vand.u32 4294901760, %v709_v18  ;;  %v18770_v18 = vand.u32 4294901760, %v1225_v7 }
 0x197   :  { %16043 = vmatmul.mubr.f32.vlgmr.msra.gmra.mrb[0].mxu1 %v18693_v15  ;;  %v703_v22 = vand.u32 4294901760, %v702_v19 }
 0x198   :  { %16049 = vmatprep.mubr.f32.mxu1 %v18666_v52 }
 0x199   :  { %v17440_v23 = vpack.c.bf16 %v710_v21, %v703_v22 }
 0x19b   :  { %17441 = vmatprep.subr.bf16.mxu1 %v17440_v23 }
 0x19c   :  { %17443 = vmatpush3.bf16.msra.mxu1 %v17440_v23 }
 0x19d   :  { %17445 = vmatprep.subr.bf16.mxu1 %v17444_v17 }
 0x19f   :  { %16050 = vmatmul.mubr.f32.vlgmr.msra.gmra.mrb[0].mxu1 %v18683_v59 }
 0x1a0   :  { %17447 = vmatpush3.bf16.msra.mxu1 %v17444_v17  ;;  %16056 = vmatprep.mubr.f32.mxu1 %v18669_v53 }
 0x1a1   :  { %17449 = vmatprep.subr.bf16.mxu1 %v17436_v9 }
 0x1a7   :  { %16057 = vmatmul.mubr.f32.vlgmr.msra.gmra.mrb[0].mxu1 %v18686_v60 }
 0x1a8   :  { %17451 = vmatpush3.bf16.msra.mxu1 %v17436_v9  ;;  %16063 = vmatprep.mubr.f32.mxu1 %v18672_v54 }
 0x1a9   :  { %17453 = vmatprep.subr.bf16.mxu1 %v17452_v20 }
 0x1af   :  { %16064 = vmatmul.mubr.f32.vlgmr.msra.gmra.mrb[0].mxu1 %v18689_v61 }
 0x1b0   :  { %17455 = vmatpush3.bf16.msra.mxu1 %v17452_v20  ;;  %16070 = vmatprep.mubr.f32.mxu1 %v18666_v52 }
 0x1b1   :  { %17457 = vmatprep.subr.bf16.mxu1 %v17436_v9 }
 0x1b7   :  { %16071 = vmatmul.mubr.f32.vlgmr.msra.gmra.mrb[0].mxu1 %v18683_v59 }
 0x1b8   :  { %17459 = vmatpush3.bf16.msra.mxu1 %v17436_v9  ;;  %16077 = vmatprep.mubr.f32.mxu1 %v18666_v52  ;;  %v18765_v9 = vand.u32 4294901760, %v1215_v55 }
 0x1bf   :  { %16078 = vmatmul.mubr.f32.vlgmr.msra.gmra.mrb[0].mxu1 %v18683_v59 }
 0x1c0   :  { %16084 = vmatprep.mubr.f32.mxu1 %v18718_v29 }
 0x292   :  { %v16079_v40 = vpop.f32.mrb[0].mxu1 }
 0x293   :  { %v1129_v41 = vand.u32 4294901760, %v16079_v40  ;;  %v1103_v16 = vpop.f32.mrb[1].mxu1 }
 0x294   :  { %v1126_v45 = vand.u32 4294901760, %v1103_v16 }
 0x295   :  { %v1241_v51 = vsub.f32 %v16079_v40, %v1129_v41 }
 0x296   :  { %v18755_v57 = vpack.c.bf16 %v1129_v41, %v1126_v45  ;;  %v1234_v58 = vsub.f32 %v1103_v16, %v1126_v45 }
 0x297   :  { %v1242_v62 = vand.u32 4294901760, %v1241_v51 }
 0x298   :  { %v1235_v63 = vand.u32 4294901760, %v1234_v58  ;;  %v18757_v4 = vpack.c.bf16 %v1241_v51, %v1234_v58  ;;  %17461 = vmatprep.subr.bf16.mxu1 %v18755_v57 }
 0x299   :  { %v1243_v8 = vsub.f32 %v1241_v51, %v1242_v62  ;;  %17463 = vmatpush3.bf16.msra.mxu1 %v18755_v57 }
 0x29a   :  { %v1236_v12 = vsub.f32 %v1234_v58, %v1235_v63  ;;  %v18767_v13 = vpack.c.bf16 %v1242_v62, %v1235_v63 }
 0x29b   :  { %v1244_v14 = vand.u32 4294901760, %v1243_v8 }
 0x29c   :  { %v1237_v17 = vand.u32 4294901760, %v1236_v12  ;;  %16085 = vmatmul.mubr.f32.vlgmr.msra.gmra.mrb[2].mxu1 %v18760_v5 }
 0x29d   :  { %16087 = vmatprep.mubr.f32.mxu1 %v18765_v9 }
 0x29e   :  { %v18773_v19 = vpack.c.bf16 %v1244_v14, %v1237_v17 }
 0x2a0   :  { %16088 = vmatmul.mubr.f32.gmra.mrb[4].mxu1 %v18770_v18  ;;  %17465 = vmatprep.subr.bf16.mxu1 %v18773_v19 }
 0x2a1   :  { %17467 = vmatpush3.bf16.msra.mxu1 %v18773_v19  ;;  %16094 = vmatprep.mubr.f32.mxu1 %v18708_v25 }
 0x2a2   :  { %17469 = vmatprep.subr.bf16.mxu1 %v18757_v4 }
 0x2a4   :  { %16095 = vmatmul.mubr.f32.vlgmr.msra.gmra.mrb[2].mxu1 %v18725_v31 }
 0x2a5   :  { %17471 = vmatpush3.bf16.msra.mxu1 %v18757_v4  ;;  %16097 = vmatprep.mubr.f32.mxu1 %v18727_v32 }
 0x2a6   :  { %17473 = vmatprep.subr.bf16.mxu1 %v18755_v57 }
 0x2a8   :  { %16098 = vmatmul.mubr.f32.gmra.mrb[4].mxu1 %v18734_v35 }
 0x2a9   :  { %16104 = vmatprep.mubr.f32.mxu1 %v18711_v26 }
 0x2ac   :  { %16105 = vmatmul.mubr.f32.vlgmr.msra.gmra.mrb[2].mxu1 %v18732_v34 }
 0x2ad   :  { %17475 = vmatpush3.bf16.msra.mxu1 %v18755_v57  ;;  %16107 = vmatprep.mubr.f32.mxu1 %v18737_v36 }
 0x2ae   :  { %17477 = vmatprep.subr.bf16.mxu1 %v18767_v13 }
 0x2b0   :  { %16108 = vmatmul.mubr.f32.gmra.mrb[4].mxu1 %v18743_v6 }
 0x2b1   :  { %16114 = vmatprep.mubr.f32.mxu1 %v18714_v27 }
 0x2b4   :  { %16115 = vmatmul.mubr.f32.vlgmr.msra.gmra.mrb[2].mxu1 %v18740_v1 }
 0x2b5   :  { %17479 = vmatpush3.bf16.msra.mxu1 %v18767_v13  ;;  %16117 = vmatprep.mubr.f32.mxu1 %v18746_v37 }
 0x2b6   :  { %17481 = vmatprep.subr.bf16.mxu1 %v18755_v57 }
 0x2b8   :  { %16118 = vmatmul.mubr.f32.gmra.mrb[4].mxu1 %v18751_v50 }
 0x2b9   :  { %16124 = vmatprep.mubr.f32.mxu1 %v18708_v25 }
 0x2bc   :  { %16125 = vmatmul.mubr.f32.vlgmr.msra.gmra.mrb[2].mxu1 %v18725_v31 }
 0x2bd   :  { %17483 = vmatpush3.bf16.msra.mxu1 %v18755_v57  ;;  %16127 = vmatprep.mubr.f32.mxu1 %v18727_v32 }
 0x2c0   :  { %16128 = vmatmul.mubr.f32.gmra.mrb[4].mxu1 %v18734_v35 }
 0x2c1   :  { %16134 = vmatprep.mubr.f32.mxu1 %v18708_v25 }
 0x2c4   :  { %16135 = vmatmul.mubr.f32.vlgmr.msra.gmra.mrb[2].mxu1 %v18725_v31 }
 0x2c5   :  { %16137 = vmatprep.mubr.f32.mxu1 %v18727_v32 }
 0x2c8   :  { %16138 = vmatmul.mubr.f32.gmra.mrb[4].mxu1 %v18734_v35 }
 0x2c9   :  { %16210 = vmatprep.mubr.f32.mxu1 %v18676_v56 }
 0x397   :  { %v18807_v20 = vpop.f32.mrb[2].mxu1 }
 0x398   :  { %v18811_v21 = vsub.f32 %v18574_v3, %v18807_v20  ;;  %v18813_v22 = vpop.f32.mrb[3].mxu1 }
 0x399   :  { %v18817_v23 = vsub.f32 %v18569_v2, %v18813_v22 }
 0x39a   :  { %v1721_v24 = vand.u32 4294901760, %v18811_v21 }
 0x39b   :  { %v1718_v28 = vand.u32 4294901760, %v18817_v23  ;;  %v18821_v30 = vpop.f32.mrb[4].mxu1 }
 0x39c   :  { %v1815_v0 = vsub.f32 %v18811_v21, %v1721_v24  ;;  %v18826_v33 = vsub.f32 %v18596_v11, %v18821_v30  ;;  %v18828_v3 = vpop.f32.mrb[5].mxu1 }
 0x39d   :  { %19722 = vst [vmem:[#allocation8_spill] sm:$0xff] %v18828_v3  ;;  %v17484_v40 = vpack.c.bf16 %v1721_v24, %v1718_v28  ;;  %v1808_v41 = vsub.f32 %v18817_v23, %v1718_v28  ;;  %v18833_v2 = vsub.f32 %v18591_v10, %v18828_v3 }
 0x39e   :  { %v1727_v16 = vand.u32 4294901760, %v18826_v33  ;;  %v1816_v45 = vand.u32 4294901760, %v1815_v0 }
 0x39f   :  { %v1724_v48 = vand.u32 4294901760, %v18833_v2  ;;  %17485 = vmatprep.subr.bf16.mxu0 %v17484_v40  ;;  %v1809_v51 = vand.u32 4294901760, %v1808_v41 }
 0x3a0   :  { %v1829_v55 = vsub.f32 %v18826_v33, %v1727_v16  ;;  %17487 = vmatpush3.bf16.msra.mxu0 %v17484_v40  ;;  %v1817_v11 = vsub.f32 %v1815_v0, %v1816_v45 }
 0x3a1   :  { %v17488_v58 = vpack.c.bf16 %v1727_v16, %v1724_v48  ;;  %v1822_v62 = vsub.f32 %v18833_v2, %v1724_v48  ;;  %v1810_v63 = vsub.f32 %v1808_v41, %v1809_v51  ;;  %v17500_v48 = vpack.c.bf16 %v1815_v0, %v1808_v41 }
 0x3a2   :  { %v1818_v7 = vand.u32 4294901760, %v1817_v11  ;;  %v1830_v8 = vand.u32 4294901760, %v1829_v55 }
 0x3a3   :  { %17489 = vmatprep.subr.bf16.mxu0 %v17488_v58  ;;  %v1811_v10 = vand.u32 4294901760, %v1810_v63  ;;  %v1823_v12 = vand.u32 4294901760, %v1822_v62  ;;  %v17504_v11 = vpack.c.bf16 %v1829_v55, %v1822_v62 }
 0x3a4   :  { %17491 = vmatpush3.bf16.msra.mxu0 %v17488_v58  ;;  %v1831_v14 = vsub.f32 %v1829_v55, %v1830_v8 }
 0x3a5   :  { %v17492_v17 = vpack.c.bf16 %v1818_v7, %v1811_v10  ;;  %v1824_v24 = vsub.f32 %v1822_v62, %v1823_v12  ;;  %v17520_v0 = vpack.c.bf16 %v1830_v8, %v1823_v12 }
 0x3a6   :  { %v1832_v28 = vand.u32 4294901760, %v1831_v14 }
 0x3a7   :  { %16149 = vmatmul.mubr.f32.vlgmr.msra.gmra.mrb[2].mxu0 %v18640_v49  ;;  %17493 = vmatprep.subr.bf16.mxu0 %v17492_v17  ;;  %v1825_v3 = vand.u32 4294901760, %v1824_v24 }
 0x3a8   :  { %17495 = vmatpush3.bf16.msra.mxu0 %v17492_v17  ;;  %16159 = vmatprep.mubr.f32.mxu0 %v18616_v38 }
 0x3a9   :  { %v17496_v16 = vpack.c.bf16 %v1832_v28, %v1825_v3  ;;  %v17516_v3 = vpack.c.bf16 %v1816_v45, %v1809_v51 }
 0x3ab   :  { %17497 = vmatprep.subr.bf16.mxu0 %v17496_v16 }
 0x3ac   :  { %17499 = vmatpush3.bf16.msra.mxu0 %v17496_v16  ;;  %v29_v16 = vld [vmem:[%s19696_s0 + $0x20] sm:$0xff] }
 0x3ad   :  { %17501 = vmatprep.subr.bf16.mxu0 %v17500_v48 }
 0x3af   :  { %16160 = vmatmul.mubr.f32.vlgmr.msra.gmra.mrb[2].mxu0 %v18622_v42 }
 0x3b0   :  { %17503 = vmatpush3.bf16.msra.mxu0 %v17500_v48  ;;  %16170 = vmatprep.mubr.f32.mxu0 %v18619_v39  ;;  %v3336_v48 = vsel %vm604_vm1, %v29_v16, 0 }
 0x3b1   :  { %17505 = vmatprep.subr.bf16.mxu0 %v17504_v11 }
 0x3b4   :  { %17507 = vmatpush3.bf16.msra.mxu0 %v17504_v11  ;;  %v18866_v11 = vand.u32 4294901760, %v3336_v48 }
 0x3b5   :  { %17509 = vmatprep.subr.bf16.mxu0 %v17484_v40 }
 0x3b7   :  { %16171 = vmatmul.mubr.f32.vlgmr.msra.gmra.mrb[2].mxu0 %v18628_v44 }
 0x3b8   :  { %17511 = vmatpush3.bf16.msra.mxu0 %v17484_v40  ;;  %16181 = vmatprep.mubr.f32.mxu0 %v18625_v43 }
 0x3b9   :  { %17513 = vmatprep.subr.bf16.mxu0 %v17488_v58 }
 0x3bc   :  { %17515 = vmatpush3.bf16.msra.mxu0 %v17488_v58 }
 0x3bd   :  { %17517 = vmatprep.subr.bf16.mxu0 %v17516_v3 }
 0x3bf   :  { %16182 = vmatmul.mubr.f32.vlgmr.msra.gmra.mrb[2].mxu0 %v18635_v47 }
 0x3c0   :  { %17519 = vmatpush3.bf16.msra.mxu0 %v17516_v3  ;;  %16192 = vmatprep.mubr.f32.mxu0 %v18616_v38  ;;  %v18869_v3 = vsub.f32 %v3336_v48, %v18866_v11 }
 0x3c1   :  { %17521 = vmatprep.subr.bf16.mxu0 %v17520_v0 }
 0x3c4   :  { %17523 = vmatpush3.bf16.msra.mxu0 %v17520_v0  ;;  %v18872_v0 = vand.u32 4294901760, %v18869_v3 }
 0x3c5   :  { %17525 = vmatprep.subr.bf16.mxu0 %v17484_v40 }
 0x3c7   :  { %16193 = vmatmul.mubr.f32.vlgmr.msra.gmra.mrb[2].mxu0 %v18622_v42 }
 0x3c8   :  { %17527 = vmatpush3.bf16.msra.mxu0 %v17484_v40  ;;  %16203 = vmatprep.mubr.f32.mxu0 %v18616_v38 }
 0x3c9   :  { %17529 = vmatprep.subr.bf16.mxu0 %v17488_v58 }
 0x3cc   :  { %17531 = vmatpush3.bf16.msra.mxu0 %v17488_v58 }
 0x3cf   :  { %16204 = vmatmul.mubr.f32.vlgmr.msra.gmra.mrb[2].mxu0 %v18622_v42 }
 0x3d0   :  { %16252 = vmatprep.mubr.f32.mxu0 %v18718_v29 }
 0x4a2   :  { %v16205_v41 = vpop.f32.mrb[2].mxu0 }
 0x4a3   :  { %v2249_v45 = vand.u32 4294901760, %v16205_v41  ;;  %v2235_v51 = vpop.f32.mrb[3].mxu0 }
 0x4a4   :  { %v2246_v55 = vand.u32 4294901760, %v2235_v51 }
 0x4a5   :  { %v2341_v62 = vsub.f32 %v16205_v41, %v2249_v45  ;;  %v3411_v41 = vsub.f32 %v18869_v3, %v18872_v0 }
 0x4a6   :  { %v17532_v63 = vpack.c.bf16 %v2249_v45, %v2246_v55  ;;  %v2334_v7 = vsub.f32 %v2235_v51, %v2246_v55  ;;  %v30_v51 = vld [vmem:[%s19696_s0 + $0x28] sm:$0xff] }
 0x4a7   :  { %v2342_v8 = vand.u32 4294901760, %v2341_v62  ;;  %v18876_v45 = vand.u32 4294901760, %v3411_v41  ;;  %v3339_v55 = vsel %vm604_vm1, %v30_v51, 0 }
 0x4a8   :  { %v2335_v10 = vand.u32 4294901760, %v2334_v7  ;;  %17533 = vmatprep.subr.bf16.mxu1 %v17532_v63  ;;  %v17540_v12 = vpack.c.bf16 %v2341_v62, %v2334_v7 }
 0x4a9   :  { %v2343_v40 = vsub.f32 %v2341_v62, %v2342_v8  ;;  %17535 = vmatpush3.bf16.msra.mxu1 %v17532_v63  ;;  %v18883_v62 = vand.u32 4294901760, %v3339_v55 }
 0x4aa   :  { %v2336_v14 = vsub.f32 %v2334_v7, %v2335_v10  ;;  %v17548_v17 = vpack.c.bf16 %v2342_v8, %v2335_v10 }
 0x4ab   :  { %v2344_v58 = vand.u32 4294901760, %v2343_v40 }
 0x4ac   :  { %16211 = vmatmul.mubr.f32.vlgmr.msra.gmra.mrb[6].mxu1 %v18693_v15  ;;  %v2337_v24 = vand.u32 4294901760, %v2336_v14 }
 0x4ad   :  { %16217 = vmatprep.mubr.f32.mxu1 %v18666_v52 }
 0x4ae   :  { %v17536_v28 = vpack.c.bf16 %v2344_v58, %v2337_v24 }
 0x4b0   :  { %17537 = vmatprep.subr.bf16.mxu1 %v17536_v28 }
 0x4b1   :  { %17539 = vmatpush3.bf16.msra.mxu1 %v17536_v28 }
 0x4b2   :  { %17541 = vmatprep.subr.bf16.mxu1 %v17540_v12 }
 0x4b4   :  { %16218 = vmatmul.mubr.f32.vlgmr.msra.gmra.mrb[6].mxu1 %v18683_v59 }
 0x4b5   :  { %17543 = vmatpush3.bf16.msra.mxu1 %v17540_v12  ;;  %16224 = vmatprep.mubr.f32.mxu1 %v18669_v53 }
 0x4b6   :  { %17545 = vmatprep.subr.bf16.mxu1 %v17532_v63 }
 0x4bc   :  { %16225 = vmatmul.mubr.f32.vlgmr.msra.gmra.mrb[6].mxu1 %v18686_v60 }
 0x4bd   :  { %17547 = vmatpush3.bf16.msra.mxu1 %v17532_v63  ;;  %16231 = vmatprep.mubr.f32.mxu1 %v18672_v54 }
 0x4be   :  { %17549 = vmatprep.subr.bf16.mxu1 %v17548_v17 }
 0x4c4   :  { %16232 = vmatmul.mubr.f32.vlgmr.msra.gmra.mrb[6].mxu1 %v18689_v61 }
 0x4c5   :  { %17551 = vmatpush3.bf16.msra.mxu1 %v17548_v17  ;;  %16238 = vmatprep.mubr.f32.mxu1 %v18666_v52 }
 0x4c6   :  { %17553 = vmatprep.subr.bf16.mxu1 %v17532_v63 }
 0x4cc   :  { %16239 = vmatmul.mubr.f32.vlgmr.msra.gmra.mrb[6].mxu1 %v18683_v59 }
 0x4cd   :  { %17555 = vmatpush3.bf16.msra.mxu1 %v17532_v63  ;;  %16245 = vmatprep.mubr.f32.mxu1 %v18666_v52  ;;  %v18886_v63 = vsub.f32 %v3339_v55, %v18883_v62 }
 0x4cf   :  { %v18889_v7 = vand.u32 4294901760, %v18886_v63 }
 0x4d1   :  { %v3421_v14 = vsub.f32 %v18886_v63, %v18889_v7 }
 0x4d3   :  { %v18893_v41 = vand.u32 4294901760, %v3421_v14 }
 0x4d4   :  { %16246 = vmatmul.mubr.f32.vlgmr.msra.gmra.mrb[6].mxu1 %v18683_v59 }
 0x4d5   :  { %16312 = vmatprep.mubr.f32.mxu1 %v18876_v45 }
 0x5a7   :  { %v16247_v8 = vpop.f32.mrb[6].mxu1 }
 0x5a8   :  { %v2751_v10 = vand.u32 4294901760, %v16247_v8  ;;  %v2737_v12 = vpop.f32.mrb[7].mxu1 }
 0x5a9   :  { %v2748_v40 = vand.u32 4294901760, %v2737_v12 }
 0x5aa   :  { %v2863_v17 = vsub.f32 %v16247_v8, %v2751_v10 }
 0x5ab   :  { %v17556_v58 = vpack.c.bf16 %v2751_v10, %v2748_v40  ;;  %v2856_v24 = vsub.f32 %v2737_v12, %v2748_v40 }
 0x5ac   :  { %v2864_v28 = vand.u32 4294901760, %v2863_v17 }
 0x5ad   :  { %v2857_v16 = vand.u32 4294901760, %v2856_v24  ;;  %v17564_v48 = vpack.c.bf16 %v2863_v17, %v2856_v24  ;;  %17557 = vmatprep.subr.bf16.mxu0 %v17556_v58  ;;  %17581 = vmatprep.subr.bf16.mxu1 %v17556_v58 }
 0x5ae   :  { %v2865_v51 = vsub.f32 %v2863_v17, %v2864_v28  ;;  %17559 = vmatpush3.bf16.msra.mxu0 %v17556_v58  ;;  %17583 = vmatpush3.bf16.msra.mxu1 %v17556_v58 }
 0x5af   :  { %v2858_v55 = vsub.f32 %v2856_v24, %v2857_v16  ;;  %v17572_v29 = vpack.c.bf16 %v2864_v28, %v2857_v16 }
 0x5b0   :  { %v2866_v61 = vand.u32 4294901760, %v2865_v51 }
 0x5b1   :  { %v2859_v54 = vand.u32 4294901760, %v2858_v55  ;;  %16253 = vmatmul.mubr.f32.vlgmr.msra.gmra.mrb[4].mxu0 %v18760_v5  ;;  %16313 = vmatmul.mubr.f32.vlgmr.msra.gmra.mrb[8].mxu1 %v18893_v41 }
 0x5b2   :  { %16255 = vmatprep.mubr.f32.mxu0 %v18765_v9  ;;  %16319 = vmatprep.mubr.f32.mxu1 %v18866_v11 }
 0x5b3   :  { %v17560_v8 = vpack.c.bf16 %v2866_v61, %v2859_v54 }
 0x5b5   :  { %16256 = vmatmul.mubr.f32.gmra.mrb[6].mxu0 %v18770_v18  ;;  %17561 = vmatprep.subr.bf16.mxu0 %v17560_v8 }
 0x5b6   :  { %17585 = vmatprep.subr.bf16.mxu1 %v17560_v8  ;;  %17563 = vmatpush3.bf16.msra.mxu0 %v17560_v8 }
 0x5b7   :  { %17587 = vmatpush3.bf16.msra.mxu1 %v17560_v8  ;;  %17565 = vmatprep.subr.bf16.mxu0 %v17564_v48 }
 0x5b8   :  { %17589 = vmatprep.subr.bf16.mxu1 %v17564_v48  ;;  %16262 = vmatprep.mubr.f32.mxu0 %v18708_v25 }
 0x5b9   :  { %16263 = vmatmul.mubr.f32.vlgmr.msra.gmra.mrb[4].mxu0 %v18725_v31 }
 0x5ba   :  { %16320 = vmatmul.mubr.f32.vlgmr.msra.gmra.mrb[8].mxu1 %v18883_v62  ;;  %17567 = vmatpush3.bf16.msra.mxu0 %v17564_v48 }
 0x5bb   :  { %17591 = vmatpush3.bf16.msra.mxu1 %v17564_v48  ;;  %17569 = vmatprep.subr.bf16.mxu0 %v17556_v58 }
 0x5bc   :  { %17593 = vmatprep.subr.bf16.mxu1 %v17556_v58  ;;  %16265 = vmatprep.mubr.f32.mxu0 %v18727_v32 }
 0x5bd   :  { %16266 = vmatmul.mubr.f32.gmra.mrb[6].mxu0 %v18734_v35  ;;  %16326 = vmatprep.mubr.f32.mxu1 %v18869_v3 }
 0x5be   :  { %16272 = vmatprep.mubr.f32.mxu0 %v18711_v26 }
 0x5c1   :  { %16273 = vmatmul.mubr.f32.vlgmr.msra.gmra.mrb[4].mxu0 %v18732_v34 }
 0x5c2   :  { %17571 = vmatpush3.bf16.msra.mxu0 %v17556_v58  ;;  %16327 = vmatmul.mubr.f32.vlgmr.msra.gmra.mrb[8].mxu1 %v18886_v63 }
 0x5c3   :  { %17595 = vmatpush3.bf16.msra.mxu1 %v17556_v58  ;;  %17573 = vmatprep.subr.bf16.mxu0 %v17572_v29 }
 0x5c4   :  { %17597 = vmatprep.subr.bf16.mxu1 %v17572_v29  ;;  %16275 = vmatprep.mubr.f32.mxu0 %v18737_v36 }
 0x5c5   :  { %16276 = vmatmul.mubr.f32.gmra.mrb[6].mxu0 %v18743_v6  ;;  %16333 = vmatprep.mubr.f32.mxu1 %v18872_v0 }
 0x5c6   :  { %16282 = vmatprep.mubr.f32.mxu0 %v18714_v27 }
 0x5c9   :  { %16283 = vmatmul.mubr.f32.vlgmr.msra.gmra.mrb[4].mxu0 %v18740_v1 }
 0x5ca   :  { %17575 = vmatpush3.bf16.msra.mxu0 %v17572_v29  ;;  %16334 = vmatmul.mubr.f32.vlgmr.msra.gmra.mrb[8].mxu1 %v18889_v7 }
 0x5cb   :  { %17599 = vmatpush3.bf16.msra.mxu1 %v17572_v29  ;;  %17577 = vmatprep.subr.bf16.mxu0 %v17556_v58 }
 0x5cc   :  { %17601 = vmatprep.subr.bf16.mxu1 %v17556_v58  ;;  %16285 = vmatprep.mubr.f32.mxu0 %v18746_v37 }
 0x5cd   :  { %16286 = vmatmul.mubr.f32.gmra.mrb[6].mxu0 %v18751_v50  ;;  %16340 = vmatprep.mubr.f32.mxu1 %v18866_v11 }
 0x5ce   :  { %16292 = vmatprep.mubr.f32.mxu0 %v18708_v25 }
 0x5d1   :  { %16293 = vmatmul.mubr.f32.vlgmr.msra.gmra.mrb[4].mxu0 %v18725_v31 }
 0x5d2   :  { %17579 = vmatpush3.bf16.msra.mxu0 %v17556_v58  ;;  %16341 = vmatmul.mubr.f32.vlgmr.msra.gmra.mrb[8].mxu1 %v18883_v62 }
 0x5d3   :  { %17603 = vmatpush3.bf16.msra.mxu1 %v17556_v58  ;;  %16295 = vmatprep.mubr.f32.mxu0 %v18727_v32  ;;  %v19723_v58 = vld [vmem:[#allocation8_spill] sm:$0xff] }
 0x5d4   :  { %17605 = vmatprep.subr.bf16.mxu1 %v18755_v57  ;;  %16347 = vmatprep.mubr.f32.mxu1 %v18866_v11 }
 0x5d5   :  { %16296 = vmatmul.mubr.f32.gmra.mrb[6].mxu0 %v18734_v35 }
 0x5d6   :  { %16302 = vmatprep.mubr.f32.mxu0 %v18708_v25 }
 0x5d9   :  { %16303 = vmatmul.mubr.f32.vlgmr.msra.gmra.mrb[4].mxu0 %v18725_v31 }
 0x5da   :  { %16348 = vmatmul.mubr.f32.vlgmr.msra.gmra.mrb[8].mxu1 %v18883_v62  ;;  %16305 = vmatprep.mubr.f32.mxu0 %v18727_v32 }
 0x5db   :  { %17607 = vmatpush3.bf16.msra.mxu1 %v18755_v57  ;;  %16354 = vmatprep.mubr.f32.mxu1 %v18876_v45 }
 0x5dc   :  { %17609 = vmatprep.subr.bf16.mxu1 %v18773_v19 }
 0x5dd   :  { %16306 = vmatmul.mubr.f32.gmra.mrb[6].mxu0 %v18734_v35 }
 0x5de   :  { %16400 = vmatprep.mubr.f32.mxu0 %v18632_v46 }
 0x5e2   :  { %16355 = vmatmul.mubr.f32.vlgmr.msra.gmra.mrb[8].mxu1 %v18893_v41 }
 0x5e3   :  { %17611 = vmatpush3.bf16.msra.mxu1 %v18773_v19  ;;  %16361 = vmatprep.mubr.f32.mxu1 %v18866_v11 }
 0x5e4   :  { %17613 = vmatprep.subr.bf16.mxu1 %v18757_v4 }
 0x5ea   :  { %16362 = vmatmul.mubr.f32.vlgmr.msra.gmra.mrb[8].mxu1 %v18883_v62 }
 0x5eb   :  { %17615 = vmatpush3.bf16.msra.mxu1 %v18757_v4  ;;  %16368 = vmatprep.mubr.f32.mxu1 %v18869_v3 }
 0x5ec   :  { %17617 = vmatprep.subr.bf16.mxu1 %v18755_v57 }
 0x5f2   :  { %16369 = vmatmul.mubr.f32.vlgmr.msra.gmra.mrb[8].mxu1 %v18886_v63 }
 0x5f3   :  { %17619 = vmatpush3.bf16.msra.mxu1 %v18755_v57  ;;  %16375 = vmatprep.mubr.f32.mxu1 %v18872_v0 }
 0x5f4   :  { %17621 = vmatprep.subr.bf16.mxu1 %v18767_v13 }
 0x5fa   :  { %16376 = vmatmul.mubr.f32.vlgmr.msra.gmra.mrb[8].mxu1 %v18889_v7 }
 0x5fb   :  { %17623 = vmatpush3.bf16.msra.mxu1 %v18767_v13  ;;  %16382 = vmatprep.mubr.f32.mxu1 %v18866_v11 }
 0x5fc   :  { %17625 = vmatprep.subr.bf16.mxu1 %v18755_v57 }
 0x602   :  { %16383 = vmatmul.mubr.f32.vlgmr.msra.gmra.mrb[8].mxu1 %v18883_v62 }
 0x603   :  { %17627 = vmatpush3.bf16.msra.mxu1 %v18755_v57  ;;  %16389 = vmatprep.mubr.f32.mxu1 %v18866_v11 }
 0x60a   :  { %16390 = vmatmul.mubr.f32.vlgmr.msra.gmra.mrb[8].mxu1 %v18883_v62 }
 0x60b   :  { %16462 = vmatprep.mubr.f32.mxu1 %v18676_v56 }
 0x6ac   :  { %v16304_v46 = vpop.f32.mrb[4].mxu0 }
 0x6ad   :  { %v18956_v54 = vadd.f32 %v16304_v46, %v18807_v20  ;;  %v4350_v61 = vsub.f32 %v18811_v21, %v16304_v46  ;;  %v3313_v29 = vpop.f32.mrb[5].mxu0 }
 0x6ae   :  { %v18960_v4 = vadd.f32 %v3313_v29, %v18813_v22  ;;  %v4349_v13 = vsub.f32 %v18817_v23, %v3313_v29 }
 0x6af   :  { %v4357_v19 = vand.u32 4294901760, %v4350_v61 }
 0x6b0   :  { %v4354_v57 = vand.u32 4294901760, %v4349_v13  ;;  %v16307_v10 = vpop.f32.mrb[6].mxu0 }
 0x6b1   :  { %v4451_v12 = vsub.f32 %v4350_v61, %v4357_v19  ;;  %v18964_v40 = vadd.f32 %v16307_v10, %v18821_v30  ;;  %v4352_v56 = vsub.f32 %v18826_v33, %v16307_v10  ;;  %v3325_v14 = vpop.f32.mrb[7].mxu0 }
 0x6b2   :  { %v17628_v20 = vpack.c.bf16 %v4357_v19, %v4354_v57  ;;  %v4444_v17 = vsub.f32 %v4349_v13, %v4354_v57  ;;  %v18968_v21 = vadd.f32 %v3325_v14, %v19723_v58  ;;  %v4351_v22 = vsub.f32 %v18833_v2, %v3325_v14 }
 0x6b3   :  { %v4452_v24 = vand.u32 4294901760, %v4451_v12  ;;  %v4363_v28 = vand.u32 4294901760, %v4352_v56 }
 0x6b4   :  { %19724 = vst [vmem:[#allocation8_spill] sm:$0xff] %v18968_v21  ;;  %v4445_v23 = vand.u32 4294901760, %v4444_v17  ;;  %v4360_v16 = vand.u32 4294901760, %v4351_v22  ;;  %17629 = vmatprep.subr.bf16.mxu0 %v17628_v20  ;;  %v17644_v48 = vpack.c.bf16 %v4451_v12, %v4444_v17 }
 0x6b5   :  { %v4465_v51 = vsub.f32 %v4352_v56, %v4363_v28  ;;  %17631 = vmatpush3.bf16.msra.mxu0 %v17628_v20  ;;  %v4453_v30 = vsub.f32 %v4451_v12, %v4452_v24 }
 0x6b6   :  { %v17632_v55 = vpack.c.bf16 %v4363_v28, %v4360_v16  ;;  %v4458_v8 = vsub.f32 %v4351_v22, %v4360_v16  ;;  %v4446_v33 = vsub.f32 %v4444_v17, %v4445_v23  ;;  %v17660_v46 = vpack.c.bf16 %v4452_v24, %v4445_v23 }
 0x6b7   :  { %v4466_v61 = vand.u32 4294901760, %v4465_v51  ;;  %v4454_v29 = vand.u32 4294901760, %v4453_v30 }
 0x6b8   :  { %v4459_v13 = vand.u32 4294901760, %v4458_v8  ;;  %17633 = vmatprep.subr.bf16.mxu0 %v17632_v55  ;;  %v4447_v19 = vand.u32 4294901760, %v4446_v33  ;;  %v17648_v57 = vpack.c.bf16 %v4465_v51, %v4458_v8  ;;  %v19725_v33 = vld [vmem:[#allocation5_spill] sm:$0xff] }
 0x6b9   :  { %17635 = vmatpush3.bf16.msra.mxu0 %v17632_v55  ;;  %v4467_v2 = vsub.f32 %v4465_v51, %v4466_v61 }
 0x6ba   :  { %v17636_v10 = vpack.c.bf16 %v4454_v29, %v4447_v19  ;;  %v4460_v14 = vsub.f32 %v4458_v8, %v4459_v13  ;;  %v17664_v58 = vpack.c.bf16 %v4466_v61, %v4459_v13 }
 0x6bb   :  { %v4468_v21 = vand.u32 4294901760, %v4467_v2 }
 0x6bc   :  { %16401 = vmatmul.mubr.f32.vlgmr.msra.gmra.mrb[8].mxu0 %v18640_v49  ;;  %17637 = vmatprep.subr.bf16.mxu0 %v17636_v10  ;;  %v4461_v12 = vand.u32 4294901760, %v4460_v14 }
 0x6bd   :  { %17639 = vmatpush3.bf16.msra.mxu0 %v17636_v10  ;;  %16411 = vmatprep.mubr.f32.mxu0 %v18616_v38 }
 0x6be   :  { %v17640_v56 = vpack.c.bf16 %v4468_v21, %v4461_v12 }
 0x6c0   :  { %17641 = vmatprep.subr.bf16.mxu0 %v17640_v56 }
 0x6c1   :  { %17643 = vmatpush3.bf16.msra.mxu0 %v17640_v56 }
 0x6c2   :  { %17645 = vmatprep.subr.bf16.mxu0 %v17644_v48 }
 0x6c4   :  { %16412 = vmatmul.mubr.f32.vlgmr.msra.gmra.mrb[8].mxu0 %v18622_v42 }
 0x6c5   :  { %17647 = vmatpush3.bf16.msra.mxu0 %v17644_v48  ;;  %16422 = vmatprep.mubr.f32.mxu0 %v18619_v39  ;;  %v18985_v39 = vld [vmem:[%s19696_s0 + $0x30] sm:$0xff] }
 0x6c6   :  { %17649 = vmatprep.subr.bf16.mxu0 %v17648_v57  ;;  %7589 = vxpose.xlu1.b32.start [1/4] (short) (narrow) %v18985_v39, 16 }
 0x6c9   :  { %17651 = vmatpush3.bf16.msra.mxu0 %v17648_v57 }
 0x6ca   :  { %17653 = vmatprep.subr.bf16.mxu0 %v17628_v20 }
 0x6cc   :  { %16423 = vmatmul.mubr.f32.vlgmr.msra.gmra.mrb[8].mxu0 %v18628_v44 }
 0x6cd   :  { %17655 = vmatpush3.bf16.msra.mxu0 %v17628_v20  ;;  %16433 = vmatprep.mubr.f32.mxu0 %v18625_v43  ;;  %v18991_v43 = vld [vmem:[%s19696_s0 + $0x38] sm:$0xff] }
 0x6ce   :  { %17657 = vmatprep.subr.bf16.mxu0 %v17632_v55  ;;  %7590 = vxpose.xlu1.b32.cont [2/4] (short) (narrow) %v18991_v43, 16 }
 0x6d1   :  { %17659 = vmatpush3.bf16.msra.mxu0 %v17632_v55 }
 0x6d2   :  { %17661 = vmatprep.subr.bf16.mxu0 %v17660_v46 }
 0x6d4   :  { %16434 = vmatmul.mubr.f32.vlgmr.msra.gmra.mrb[8].mxu0 %v18635_v47 }
 0x6d5   :  { %17663 = vmatpush3.bf16.msra.mxu0 %v17660_v46  ;;  %16444 = vmatprep.mubr.f32.mxu0 %v18616_v38 }
 0x6d6   :  { %17665 = vmatprep.subr.bf16.mxu0 %v17664_v58 }
 0x6d9   :  { %17667 = vmatpush3.bf16.msra.mxu0 %v17664_v58 }
 0x6da   :  { %17669 = vmatprep.subr.bf16.mxu0 %v17628_v20 }
 0x6dc   :  { %16445 = vmatmul.mubr.f32.vlgmr.msra.gmra.mrb[8].mxu0 %v18622_v42 }
 0x6dd   :  { %17671 = vmatpush3.bf16.msra.mxu0 %v17628_v20  ;;  %16455 = vmatprep.mubr.f32.mxu0 %v18616_v38  ;;  %v18997_v38 = vld [vmem:[%s19696_s0 + $0x40] sm:$0xff] }
 0x6de   :  { %17673 = vmatprep.subr.bf16.mxu0 %v17632_v55  ;;  %7591 = vxpose.xlu1.b32.cont [3/4] (short) (narrow) %v18997_v38, 16 }
 0x6e1   :  { %17675 = vmatpush3.bf16.msra.mxu0 %v17632_v55 }
 0x6e4   :  { %16456 = vmatmul.mubr.f32.vlgmr.msra.gmra.mrb[8].mxu0 %v18622_v42  ;;  %v19003_v42 = vld [vmem:[%s19696_s0 + $0x48] sm:$0xff] }
 0x6e5   :  { %7592 = vxpose.xlu1.b32.end [4/4] (short) (narrow) %v19003_v42, 16 }
 0x7b7   :  { %v16457_v44 = vpop.f32.mrb[8].mxu0 }
 0x7b8   :  { %v4885_v47 = vand.u32 4294901760, %v16457_v44  ;;  %v4871_v49 = vpop.f32.mrb[9].mxu0 }
 0x7b9   :  { %v4882_v20 = vand.u32 4294901760, %v4871_v49 }
 0x7ba   :  { %v4977_v17 = vsub.f32 %v16457_v44, %v4885_v47 }
 0x7bb   :  { %v17676_v21 = vpack.c.bf16 %v4885_v47, %v4882_v20  ;;  %v4970_v22 = vsub.f32 %v4871_v49, %v4882_v20 }
 0x7bc   :  { %v4978_v24 = vand.u32 4294901760, %v4977_v17 }
 0x7bd   :  { %v4971_v28 = vand.u32 4294901760, %v4970_v22  ;;  %17677 = vmatprep.subr.bf16.mxu1 %v17676_v21  ;;  %v17684_v23 = vpack.c.bf16 %v4977_v17, %v4970_v22 }
 0x7be   :  { %v4979_v16 = vsub.f32 %v4977_v17, %v4978_v24  ;;  %17679 = vmatpush3.bf16.msra.mxu1 %v17676_v21 }
 0x7bf   :  { %v4972_v48 = vsub.f32 %v4970_v22, %v4971_v28  ;;  %v17692_v51 = vpack.c.bf16 %v4978_v24, %v4971_v28 }
 0x7c0   :  { %v4980_v30 = vand.u32 4294901760, %v4979_v16 }
 0x7c1   :  { %16463 = vmatmul.mubr.f32.vlgmr.msra.gmra.mrb[10].mxu1 %v18693_v15  ;;  %v4973_v55 = vand.u32 4294901760, %v4972_v48  ;;  %v19726_v15 = vld [vmem:[#allocation6_spill] sm:$0xff] }
 0x7c2   :  { %16469 = vmatprep.mubr.f32.mxu1 %v18666_v52 }
 0x7c3   :  { %v17680_v8 = vpack.c.bf16 %v4980_v30, %v4973_v55 }
 0x7c5   :  { %17681 = vmatprep.subr.bf16.mxu1 %v17680_v8 }
 0x7c6   :  { %17683 = vmatpush3.bf16.msra.mxu1 %v17680_v8 }
 0x7c7   :  { %17685 = vmatprep.subr.bf16.mxu1 %v17684_v23 }
 0x7c9   :  { %16470 = vmatmul.mubr.f32.vlgmr.msra.gmra.mrb[10].mxu1 %v18683_v59 }
 0x7ca   :  { %17687 = vmatpush3.bf16.msra.mxu1 %v17684_v23  ;;  %16476 = vmatprep.mubr.f32.mxu1 %v18669_v53  ;;  %v19727_v53 = vld [vmem:[#allocation7_spill] sm:$0xff] }
 0x7cb   :  { %17689 = vmatprep.subr.bf16.mxu1 %v17676_v21 }
 0x7d1   :  { %16477 = vmatmul.mubr.f32.vlgmr.msra.gmra.mrb[10].mxu1 %v18686_v60 }
 0x7d2   :  { %17691 = vmatpush3.bf16.msra.mxu1 %v17676_v21  ;;  %16483 = vmatprep.mubr.f32.mxu1 %v19725_v33 }
 0x7d3   :  { %17693 = vmatprep.subr.bf16.mxu1 %v17692_v51 }
 0x7d9   :  { %16484 = vmatmul.mubr.f32.vlgmr.msra.gmra.mrb[10].mxu1 %v19726_v15 }
 0x7da   :  { %17695 = vmatpush3.bf16.msra.mxu1 %v17692_v51  ;;  %16490 = vmatprep.mubr.f32.mxu1 %v18666_v52 }
 0x7db   :  { %17697 = vmatprep.subr.bf16.mxu1 %v17676_v21 }
 0x7e1   :  { %16491 = vmatmul.mubr.f32.vlgmr.msra.gmra.mrb[10].mxu1 %v18683_v59 }
 0x7e2   :  { %17699 = vmatpush3.bf16.msra.mxu1 %v17676_v21  ;;  %16497 = vmatprep.mubr.f32.mxu1 %v18666_v52 }
 0x7e9   :  { %16498 = vmatmul.mubr.f32.vlgmr.msra.gmra.mrb[10].mxu1 %v18683_v59 }
 0x7ea   :  { %16504 = vmatprep.mubr.f32.mxu1 %v19727_v53 }
 0x8bc   :  { %v16499_v60 = vpop.f32.mrb[10].mxu1 }
 0x8bd   :  { %v5387_v46 = vand.u32 4294901760, %v16499_v60  ;;  %v5373_v61 = vpop.f32.mrb[11].mxu1 }
 0x8be   :  { %v5384_v29 = vand.u32 4294901760, %v5373_v61 }
 0x8bf   :  { %v5499_v13 = vsub.f32 %v16499_v60, %v5387_v46 }
 0x8c0   :  { %v19018_v19 = vpack.c.bf16 %v5387_v46, %v5384_v29  ;;  %v5492_v57 = vsub.f32 %v5373_v61, %v5384_v29 }
 0x8c1   :  { %v5500_v2 = vand.u32 4294901760, %v5499_v13 }
 0x8c2   :  { %v5493_v10 = vand.u32 4294901760, %v5492_v57  ;;  %v17708_v14 = vpack.c.bf16 %v5499_v13, %v5492_v57  ;;  %17701 = vmatprep.subr.bf16.mxu1 %v19018_v19 }
 0x8c3   :  { %v5501_v58 = vsub.f32 %v5499_v13, %v5500_v2  ;;  %17703 = vmatpush3.bf16.msra.mxu1 %v19018_v19 }
 0x8c4   :  { %v5494_v52 = vsub.f32 %v5492_v57, %v5493_v10  ;;  %v19022_v59 = vpack.c.bf16 %v5500_v2, %v5493_v10 }
 0x8c5   :  { %v5502_v12 = vand.u32 4294901760, %v5501_v58 }
 0x8c6   :  { %v5495_v56 = vand.u32 4294901760, %v5494_v52  ;;  %16505 = vmatmul.mubr.f32.vlgmr.msra.gmra.mrb[12].mxu1 %v18760_v5 }
 0x8c7   :  { %16507 = vmatprep.mubr.f32.mxu1 %v18765_v9 }
 0x8c8   :  { %v17704_v44 = vpack.c.bf16 %v5502_v12, %v5495_v56 }
 0x8ca   :  { %16508 = vmatmul.mubr.f32.gmra.mrb[14].mxu1 %v18770_v18  ;;  %17705 = vmatprep.subr.bf16.mxu1 %v17704_v44 }
 0x8cb   :  { %17707 = vmatpush3.bf16.msra.mxu1 %v17704_v44  ;;  %16514 = vmatprep.mubr.f32.mxu1 %v18708_v25 }
 0x8cc   :  { %17709 = vmatprep.subr.bf16.mxu1 %v17708_v14 }
 0x8ce   :  { %16515 = vmatmul.mubr.f32.vlgmr.msra.gmra.mrb[12].mxu1 %v18725_v31 }
 0x8cf   :  { %17711 = vmatpush3.bf16.msra.mxu1 %v17708_v14  ;;  %16517 = vmatprep.mubr.f32.mxu1 %v18727_v32 }
 0x8d0   :  { %17713 = vmatprep.subr.bf16.mxu1 %v19018_v19 }
 0x8d2   :  { %16518 = vmatmul.mubr.f32.gmra.mrb[14].mxu1 %v18734_v35 }
 0x8d3   :  { %16524 = vmatprep.mubr.f32.mxu1 %v18711_v26 }
 0x8d6   :  { %16525 = vmatmul.mubr.f32.vlgmr.msra.gmra.mrb[12].mxu1 %v18732_v34 }
 0x8d7   :  { %17715 = vmatpush3.bf16.msra.mxu1 %v19018_v19  ;;  %16527 = vmatprep.mubr.f32.mxu1 %v18737_v36 }
 0x8d8   :  { %17717 = vmatprep.subr.bf16.mxu1 %v19022_v59 }
 0x8da   :  { %16528 = vmatmul.mubr.f32.gmra.mrb[14].mxu1 %v18743_v6  ;;  %v19088_v6 = vld [vmem:[%s19697_s1 + $0x38] sm:$0xff] }
 0x8db   :  { %16534 = vmatprep.mubr.f32.mxu1 %v18714_v27  ;;  %v19069_v27 = vld [vmem:[%s19697_s1 + $0x20] sm:$0xff]  ;;  %v7637_v9 = vand.u32 4294901760, %v19088_v6 }
 0x8dd   :  { %v7739_v49 = vsub.f32 %v19088_v6, %v7637_v9 }
 0x8de   :  { %16535 = vmatmul.mubr.f32.vlgmr.msra.gmra.mrb[12].mxu1 %v18740_v1  ;;  %v19083_v1 = vld [vmem:[%s19697_s1 + $0x30] sm:$0xff] }
 0x8df   :  { %17719 = vmatpush3.bf16.msra.mxu1 %v19022_v59  ;;  %16537 = vmatprep.mubr.f32.mxu1 %v18746_v37  ;;  %v7634_v5 = vand.u32 4294901760, %v19083_v1  ;;  %v7740_v28 = vand.u32 4294901760, %v7739_v49 }
 0x8e0   :  { %17721 = vmatprep.subr.bf16.mxu1 %v19018_v19 }
 0x8e1   :  { %v7732_v47 = vsub.f32 %v19083_v1, %v7634_v5  ;;  %v17752_v48 = vpack.c.bf16 %v7637_v9, %v7634_v5  ;;  %v7741_v8 = vsub.f32 %v7739_v49, %v7740_v28  ;;  %v19732_v9 = vld [vmem:[#allocation8_spill] sm:$0xff] }
 0x8e2   :  { %16538 = vmatmul.mubr.f32.gmra.mrb[14].mxu1 %v18751_v50 }
 0x8e3   :  { %16544 = vmatprep.mubr.f32.mxu1 %v18708_v25  ;;  %v7733_v24 = vand.u32 4294901760, %v7732_v47  ;;  %v7742_v53 = vand.u32 4294901760, %v7741_v8  ;;  %v17768_v61 = vpack.c.bf16 %v7739_v49, %v7732_v47 }
 0x8e5   :  { %v7734_v55 = vsub.f32 %v7732_v47, %v7733_v24  ;;  %v17784_v13 = vpack.c.bf16 %v7740_v28, %v7733_v24 }
 0x8e6   :  { %16545 = vmatmul.mubr.f32.vlgmr.msra.gmra.mrb[12].mxu1 %v18725_v31 }
 0x8e7   :  { %17723 = vmatpush3.bf16.msra.mxu1 %v19018_v19  ;;  %16547 = vmatprep.mubr.f32.mxu1 %v18727_v32  ;;  %v7735_v15 = vand.u32 4294901760, %v7734_v55 }
 0x8e8   :  { %17725 = vmatprep.subr.bf16.mxu1 %v19018_v19 }
 0x8e9   :  { %v17760_v46 = vpack.c.bf16 %v7742_v53, %v7735_v15 }
 0x8ea   :  { %16548 = vmatmul.mubr.f32.gmra.mrb[14].mxu1 %v18734_v35 }
 0x8eb   :  { %16554 = vmatprep.mubr.f32.mxu1 %v18708_v25  ;;  %v7605_v25 = vpop.trf.xlu1 }
 0x8ec   :  { %v7622_v26 = vsel %vm69_vm0, %v7605_v25, 0 }
 0x8ee   :  { %16555 = vmatmul.mubr.f32.vlgmr.msra.gmra.mrb[12].mxu1 %v18725_v31  ;;  %v19074_v31 = vld [vmem:[%s19697_s1 + $0x28] sm:$0xff] }
 0x8ef   :  { %17727 = vmatpush3.bf16.msra.mxu1 %v19018_v19  ;;  %16557 = vmatprep.mubr.f32.mxu1 %v18727_v32  ;;  %v19076_v32 = vand.u32 4294901760, %v7622_v26  ;;  %v7606_v34 = vpop.trf.xlu1  ;;  %v7631_v36 = vand.u32 4294901760, %v19074_v31 }
 0x8f0   :  { %17729 = vmatprep.subr.bf16.mxu1 %v17704_v44  ;;  %v7625_v50 = vsel %vm69_vm0, %v7606_v34, 0 }
 0x8f1   :  { %v19093_v37 = vsub.f32 %v7622_v26, %v19076_v32 }
 0x8f2   :  { %16558 = vmatmul.mubr.f32.gmra.mrb[14].mxu1 %v18734_v35  ;;  %v7628_v35 = vand.u32 4294901760, %v19069_v27 }
 0x8f3   :  { %16564 = vmatprep.mubr.f32.mxu1 %v18876_v45 }
 0x8f4   :  { %v7718_v18 = vsub.f32 %v19069_v27, %v7628_v35  ;;  %v19104_v45 = vpack.c.bf16 %v7631_v36, %v7628_v35 }
 0x8f6   :  { %16565 = vmatmul.mubr.f32.vlgmr.msra.gmra.mrb[8].mxu1 %v18893_v41 }
 0x8f7   :  { %17731 = vmatpush3.bf16.msra.mxu1 %v17704_v44  ;;  %16571 = vmatprep.mubr.f32.mxu1 %v18866_v11 }
 0x8f8   :  { %17733 = vmatprep.subr.bf16.mxu1 %v17708_v14 }
 0x8fe   :  { %16572 = vmatmul.mubr.f32.vlgmr.msra.gmra.mrb[8].mxu1 %v18883_v62 }
 0x8ff   :  { %17735 = vmatpush3.bf16.msra.mxu1 %v17708_v14  ;;  %16578 = vmatprep.mubr.f32.mxu1 %v18869_v3  ;;  %v7725_v3 = vsub.f32 %v19074_v31, %v7631_v36 }
 0x900   :  { %17737 = vmatprep.subr.bf16.mxu1 %v19018_v19 }
 0x901   :  { %v7726_v41 = vand.u32 4294901760, %v7725_v3 }
 0x903   :  { %v7727_v22 = vsub.f32 %v7725_v3, %v7726_v41 }
 0x905   :  { %v7728_v30 = vand.u32 4294901760, %v7727_v22 }
 0x906   :  { %16579 = vmatmul.mubr.f32.vlgmr.msra.gmra.mrb[8].mxu1 %v18886_v63  ;;  %v19107_v63 = vand.u32 4294901760, %v19093_v37 }
 0x907   :  { %17739 = vmatpush3.bf16.msra.mxu1 %v19018_v19  ;;  %16585 = vmatprep.mubr.f32.mxu1 %v18872_v0  ;;  %v19102_v0 = vand.u32 4294901760, %v7625_v50 }
 0x908   :  { %17741 = vmatprep.subr.bf16.mxu1 %v19022_v59  ;;  %v7699_v17 = vsub.f32 %v19093_v37, %v19107_v63 }
 0x909   :  { %v19113_v20 = vsub.f32 %v7625_v50, %v19102_v0 }
 0x90a   :  { %v19123_v16 = vand.u32 4294901760, %v7699_v17 }
 0x90b   :  { %v19121_v23 = vand.u32 4294901760, %v19113_v20 }
 0x90e   :  { %16586 = vmatmul.mubr.f32.vlgmr.msra.gmra.mrb[8].mxu1 %v18889_v7  ;;  %v7719_v7 = vand.u32 4294901760, %v7718_v18 }
 0x90f   :  { %17743 = vmatpush3.bf16.msra.mxu1 %v19022_v59  ;;  %16592 = vmatprep.mubr.f32.mxu1 %v18866_v11 }
 0x910   :  { %17745 = vmatprep.subr.bf16.mxu1 %v19018_v19  ;;  %v7720_v21 = vsub.f32 %v7718_v18, %v7719_v7  ;;  %v17780_v29 = vpack.c.bf16 %v7726_v41, %v7719_v7 }
 0x912   :  { %v7721_v51 = vand.u32 4294901760, %v7720_v21 }
 0x914   :  { %v17756_v33 = vpack.c.bf16 %v7728_v30, %v7721_v51 }
 0x916   :  { %16593 = vmatmul.mubr.f32.vlgmr.msra.gmra.mrb[8].mxu1 %v18883_v62 }
 0x917   :  { %17747 = vmatpush3.bf16.msra.mxu1 %v19018_v19  ;;  %16599 = vmatprep.mubr.f32.mxu1 %v18866_v11  ;;  %v7709_v11 = vsub.f32 %v19113_v20, %v19121_v23  ;;  %v23_v19 = vld [vmem:[%s19699_s3] sm:$0xff]  ;;  %s15126_s3 = sshll.u32 %s18517_s13, 4  ;;  %s15127_s3 = int_to_ptr.vmem [resolvable:$true] %s15126_s3 }
 0x918   :  { %17749 = vmatprep.subr.bf16.mxu1 %v19104_v45  ;;  %v19149_v57 = vand.u32 4294901760, %v23_v19  ;;  %s18493_s14 = scalar_lea.vmem %s15127_s3, 512  ;;  %p18498_p1 = scmp.lt.s32.totalorder %s15127_s3, %s15127_s3 }
 0x919   :  { %v19130_v60 = vand.u32 4294901760, %v7709_v11  ;;  %p18494_p0 = scmp.ne.s32.totalorder %s15127_s3, %s18493_s14  ;;  %p18499_p2 = scmp.lt.s32.totalorder %s18493_s14, %s18493_s14 }
 0x91a   :  { %19728 = vst [vmem:[#allocation5_spill] sm:$0xff] %v19149_v57  ;;  %16602 = vmatprep.subr.mxu0 %v19149_v57  ;;  %v19156_v2 = vsub.f32 %v23_v19, %v19149_v57 }
 0x91b   :  { %16603 = vmatpush3.msra.mxu0 %v19149_v57  ;;  %p18500_p3 = por %p18499_p2, %p18498_p1 }
 0x91c   :  { %19729 = vst [vmem:[#allocation6_spill] sm:$0xff] %v19156_v2  ;;  %v19159_v10 = vand.u32 4294901760, %v19156_v2 }
 0x91d   :  { %p18501_p4 = pnand %p18500_p3, %p18494_p0 }
 0x91e   :  { %16600 = vmatmul.mubr.f32.vlgmr.msra.gmra.mrb[8].mxu1 %v18883_v62  ;;  %v17764_v62 = vpack.c.bf16 %v7725_v3, %v7718_v18  ;;  %19730 = vst [vmem:[#allocation7_spill] sm:$0xff] %v19159_v10  ;;  %v6608_v14 = vsub.f32 %v19156_v2, %v19159_v10 }
 0x91f   :  { %17751 = vmatpush3.bf16.msra.mxu1 %v19104_v45  ;;  %16688 = vmatprep.mubr.f32.mxu1 %v19123_v16 }
 0x920   :  { %17753 = vmatprep.subr.bf16.mxu1 %v17752_v48  ;;  %v19163_v58 = vand.u32 4294901760, %v6608_v14 }
 0x922   :  { %19731 = vst [vmem:[#allocation9_spill] sm:$0xff] %v19163_v58  ;;  %16610 = vmatprep.subr.mxu0 %v19163_v58 }
 0x923   :  { %17755 = vmatpush3.bf16.msra.mxu1 %v17752_v48 }
 0x924   :  { %17757 = vmatprep.subr.bf16.mxu1 %v17756_v33 }
 0x926   :  { %16689 = vmatmul.mubr.f32.vlgmr.msra.gmra.mrb[16].mxu1 %v19130_v60 }
 0x927   :  { %17759 = vmatpush3.bf16.msra.mxu1 %v17756_v33  ;;  %16699 = vmatprep.mubr.f32.mxu1 %v19076_v32 }
 0x928   :  { %17761 = vmatprep.subr.bf16.mxu1 %v17760_v46 }
 0x92b   :  { %17763 = vmatpush3.bf16.msra.mxu1 %v17760_v46 }
 0x92c   :  { %17765 = vmatprep.subr.bf16.mxu1 %v17764_v62 }
 0x92e   :  { %16700 = vmatmul.mubr.f32.vlgmr.msra.gmra.mrb[16].mxu1 %v19102_v0 }
 0x92f   :  { %17767 = vmatpush3.bf16.msra.mxu1 %v17764_v62  ;;  %16710 = vmatprep.mubr.f32.mxu1 %v19093_v37 }
 0x930   :  { %17769 = vmatprep.subr.bf16.mxu1 %v17768_v61 }
 0x933   :  { %17771 = vmatpush3.bf16.msra.mxu1 %v17768_v61 }
 0x934   :  { %17773 = vmatprep.subr.bf16.mxu1 %v19104_v45 }
 0x936   :  { %16711 = vmatmul.mubr.f32.vlgmr.msra.gmra.mrb[16].mxu1 %v19113_v20 }
 0x937   :  { %17775 = vmatpush3.bf16.msra.mxu1 %v19104_v45  ;;  %16721 = vmatprep.mubr.f32.mxu1 %v19107_v63 }
 0x938   :  { %17777 = vmatprep.subr.bf16.mxu1 %v17752_v48 }
 0x93b   :  { %17779 = vmatpush3.bf16.msra.mxu1 %v17752_v48 }
 0x93c   :  { %17781 = vmatprep.subr.bf16.mxu1 %v17780_v29 }
 0x93e   :  { %16722 = vmatmul.mubr.f32.vlgmr.msra.gmra.mrb[16].mxu1 %v19121_v23 }
 0x93f   :  { %17783 = vmatpush3.bf16.msra.mxu1 %v17780_v29  ;;  %16732 = vmatprep.mubr.f32.mxu1 %v19076_v32 }
 0x940   :  { %17785 = vmatprep.subr.bf16.mxu1 %v17784_v13 }
 0x943   :  { %17787 = vmatpush3.bf16.msra.mxu1 %v17784_v13 }
 0x944   :  { %17789 = vmatprep.subr.bf16.mxu1 %v19104_v45 }
 0x946   :  { %16733 = vmatmul.mubr.f32.vlgmr.msra.gmra.mrb[16].mxu1 %v19102_v0 }
 0x947   :  { %17791 = vmatpush3.bf16.msra.mxu1 %v19104_v45  ;;  %16743 = vmatprep.mubr.f32.mxu1 %v19076_v32 }
 0x948   :  { %17793 = vmatprep.subr.bf16.mxu1 %v17752_v48 }
 0x94b   :  { %17795 = vmatpush3.bf16.msra.mxu1 %v17752_v48 }
 0x94e   :  { %16744 = vmatmul.mubr.f32.vlgmr.msra.gmra.mrb[16].mxu1 %v19102_v0 }
 0x94f   :  { %16856 = vmatprep.mubr.f32.mxu1 %v19123_v16 }
 0x9c1   :  { %v16556_v52 = vpop.f32.mrb[12].mxu1 }
 0x9c2   :  { %v6474_v59 = vadd.f32 %v16556_v52, %v18956_v54  ;;  %v5949_v12 = vpop.f32.mrb[13].mxu1 }
 0x9c3   :  { %v6473_v56 = vadd.f32 %v5949_v12, %v18960_v4 }
 0x9c4   :  { %v6490_v44 = vsel %vm6485_vm2, %v6474_v59, 0 }
 0x9c5   :  { %v19169_v25 = vand.u32 4294901760, %v6490_v44  ;;  %v6487_v26 = vsel %vm6485_vm2, %v6473_v56, 0  ;;  %v16559_v34 = vpop.f32.mrb[14].mxu1  ;;  %v15146_v56 = vld [vmem:[%s19698_s2 + $0x10] sm:$0xff] }
 0x9c6   :  { %v6564_v35 = vand.u32 4294901760, %v6487_v26  ;;  %v6476_v36 = vadd.f32 %v16559_v34, %v18964_v40  ;;  %v5961_v50 = vpop.f32.mrb[15].mxu1 }
 0x9c7   :  { %v6575_v5 = vsub.f32 %v6490_v44, %v19169_v25  ;;  %v6475_v18 = vadd.f32 %v5961_v50, %v19732_v9  ;;  %v8156_v44 = vsel %vm604_vm1, %v15146_v56, 0 }
 0x9c8   :  { %v6565_v3 = vsub.f32 %v6487_v26, %v6564_v35  ;;  %v6496_v54 = vsel %vm6485_vm2, %v6476_v36, 0  ;;  %v19217_v26 = vand.u32 4294901760, %v8156_v44 }
 0x9c9   :  { %v6576_v45 = vand.u32 4294901760, %v6575_v5  ;;  %v19176_v4 = vand.u32 4294901760, %v6496_v54  ;;  %v6493_v7 = vsel %vm6485_vm2, %v6475_v18, 0 }
 0x9ca   :  { %v6584_v41 = vand.u32 4294901760, %v6493_v7  ;;  %v6566_v47 = vand.u32 4294901760, %v6565_v3  ;;  %v19224_v36 = vsub.f32 %v8156_v44, %v19217_v26 }
 0x9cb   :  { %v6595_v49 = vsub.f32 %v6496_v54, %v19176_v4  ;;  %v6577_v17 = vsub.f32 %v6575_v5, %v6576_v45 }
 0x9cc   :  { %v6585_v21 = vsub.f32 %v6493_v7, %v6584_v41  ;;  %v6567_v40 = vsub.f32 %v6565_v3, %v6566_v47 }
 0x9cd   :  { %v6596_v22 = vand.u32 4294901760, %v6595_v49  ;;  %v6578_v48 = vand.u32 4294901760, %v6577_v17 }
 0x9ce   :  { %v6568_v24 = vand.u32 4294901760, %v6567_v40  ;;  %v6586_v28 = vand.u32 4294901760, %v6585_v21 }
 0x9cf   :  { %v6597_v51 = vsub.f32 %v6595_v49, %v6596_v22 }
 0x9d0   :  { %16604 = vmatprep.mubr.f32.mxu0 %v6568_v24  ;;  %v6587_v30 = vsub.f32 %v6585_v21, %v6586_v28 }
 0x9d1   :  { %16605 = vmatmul.mubr.f32.vlgmr.msra.gmra.mrb[10].mxu0 %v6578_v48  ;;  %v6598_v8 = vand.u32 4294901760, %v6597_v51 }
 0x9d2   :  { %v6588_v55 = vand.u32 4294901760, %v6587_v30  ;;  %16611 = vmatpush3.msra.mxu0 %v19163_v58 }
 0x9d3   :  { %16618 = vmatprep.subr.mxu0 %v19156_v2 }
 0x9d4   :  { %16607 = vmatprep.mubr.f32.mxu0 %v6588_v55 }
 0x9d5   :  { %16608 = vmatmul.mubr.f32.gmra.mrb[12].mxu0 %v6598_v8 }
 0x9d6   :  { %16612 = vmatprep.mubr.f32.mxu0 %v6564_v35 }
 0x9d9   :  { %16613 = vmatmul.mubr.f32.vlgmr.msra.gmra.mrb[10].mxu0 %v19169_v25 }
 0x9da   :  { %16615 = vmatprep.mubr.f32.mxu0 %v6584_v41  ;;  %16619 = vmatpush3.msra.mxu0 %v19156_v2 }
 0x9db   :  { %16626 = vmatprep.subr.mxu0 %v19149_v57 }
 0x9dd   :  { %16616 = vmatmul.mubr.f32.gmra.mrb[12].mxu0 %v19176_v4 }
 0x9de   :  { %16620 = vmatprep.mubr.f32.mxu0 %v6565_v3 }
 0x9e1   :  { %16621 = vmatmul.mubr.f32.vlgmr.msra.gmra.mrb[10].mxu0 %v6575_v5  ;;  %v19231_v5 = vand.u32 4294901760, %v19224_v36 }
 0x9e2   :  { %16623 = vmatprep.mubr.f32.mxu0 %v6585_v21  ;;  %16627 = vmatpush3.msra.mxu0 %v19149_v57 }
 0x9e3   :  { %16634 = vmatprep.subr.mxu0 %v19159_v10  ;;  %19733 = vst [vmem:[#allocation8_spill] sm:$0xff] %v19231_v5 }
 0x9e5   :  { %16624 = vmatmul.mubr.f32.gmra.mrb[12].mxu0 %v6595_v49 }
 0x9e6   :  { %16628 = vmatprep.mubr.f32.mxu0 %v6566_v47 }
 0x9e9   :  { %16629 = vmatmul.mubr.f32.vlgmr.msra.gmra.mrb[10].mxu0 %v6576_v45  ;;  %v8231_v45 = vsub.f32 %v19224_v36, %v19231_v5 }
 0x9ea   :  { %16631 = vmatprep.mubr.f32.mxu0 %v6586_v28  ;;  %16635 = vmatpush3.msra.mxu0 %v19159_v10 }
 0x9eb   :  { %16642 = vmatprep.subr.mxu0 %v19149_v57  ;;  %v19242_v21 = vand.u32 4294901760, %v8231_v45 }
 0x9ed   :  { %16632 = vmatmul.mubr.f32.gmra.mrb[12].mxu0 %v6596_v22 }
 0x9ee   :  { %16636 = vmatprep.mubr.f32.mxu0 %v6564_v35 }
 0x9f1   :  { %v16601_v11 = vpop.f32.mrb[8].mxu1  ;;  %16637 = vmatmul.mubr.f32.vlgmr.msra.gmra.mrb[10].mxu0 %v19169_v25 }
 0x9f2   :  { %v7081_v33 = vsel %vm6485_vm2, %v16601_v11, 0  ;;  %v6463_v15 = vpop.f32.mrb[9].mxu1  ;;  %16639 = vmatprep.mubr.f32.mxu0 %v6584_v41  ;;  %16643 = vmatpush3.msra.mxu0 %v19149_v57  ;;  %v8664_v11 = vsel %vm604_vm1, %v18985_v39, 0 }
 0x9f3   :  { %v19193_v53 = vand.u32 4294901760, %v7081_v33  ;;  %v7078_v46 = vsel %vm6485_vm2, %v6463_v15, 0  ;;  %16650 = vmatprep.subr.mxu0 %v19149_v57 }
 0x9f4   :  { %v7149_v62 = vand.u32 4294901760, %v7078_v46 }
 0x9f5   :  { %v7160_v61 = vsub.f32 %v7081_v33, %v19193_v53  ;;  %16640 = vmatmul.mubr.f32.gmra.mrb[12].mxu0 %v19176_v4  ;;  %v19261_v33 = vand.u32 4294901760, %v8664_v11 }
 0x9f6   :  { %v7150_v29 = vsub.f32 %v7078_v46, %v7149_v62  ;;  %16644 = vmatprep.mubr.f32.mxu0 %v6564_v35 }
 0x9f7   :  { %v7161_v13 = vand.u32 4294901760, %v7160_v61  ;;  %v19264_v15 = vsub.f32 %v8664_v11, %v19261_v33 }
 0x9f8   :  { %v7151_v19 = vand.u32 4294901760, %v7150_v29 }
 0x9f9   :  { %16645 = vmatmul.mubr.f32.vlgmr.msra.gmra.mrb[10].mxu0 %v19169_v25  ;;  %v7162_v52 = vsub.f32 %v7160_v61, %v7161_v13  ;;  %v15147_v25 = vld [vmem:[%s19698_s2 + $0x18] sm:$0xff] }
 0x9fa   :  { %16647 = vmatprep.mubr.f32.mxu0 %v6584_v41  ;;  %16651 = vmatpush3.msra.mxu0 %v19149_v57  ;;  %v7152_v14 = vsub.f32 %v7150_v29, %v7151_v19  ;;  %v8159_v34 = vsel %vm604_vm1, %v15147_v25, 0 }
 0x9fb   :  { %16655 = vmatprep.subr.mxu0 %v19163_v58  ;;  %v7163_v12 = vand.u32 4294901760, %v7162_v52  ;;  %v19220_v35 = vand.u32 4294901760, %v8159_v34 }
 0x9fc   :  { %v7153_v59 = vand.u32 4294901760, %v7152_v14 }
 0x9fd   :  { %16648 = vmatmul.mubr.f32.gmra.mrb[12].mxu0 %v19176_v4  ;;  %v19228_v50 = vsub.f32 %v8159_v34, %v19220_v35 }
 0x9fe   :  { %16652 = vmatprep.mubr.f32.mxu0 %v7153_v59 }
 0x9ff   :  { %v19235_v18 = vand.u32 4294901760, %v19228_v50 }
 0xa01   :  { %16653 = vmatmul.mubr.f32.vlgmr.msra.gmra.mrb[14].mxu0 %v7163_v12  ;;  %19734 = vst [vmem:[#allocation10_spill] sm:$0xff] %v19235_v18  ;;  %v8241_v49 = vsub.f32 %v19228_v50, %v19235_v18 }
 0xa02   :  { %16657 = vmatprep.mubr.f32.mxu0 %v7149_v62  ;;  %16656 = vmatpush3.msra.mxu0 %v19163_v58 }
 0xa03   :  { %16660 = vmatprep.subr.mxu0 %v19156_v2  ;;  %v19245_v48 = vand.u32 4294901760, %v8241_v49 }
 0xa09   :  { %16658 = vmatmul.mubr.f32.vlgmr.msra.gmra.mrb[14].mxu0 %v19193_v53 }
 0xa0a   :  { %16662 = vmatprep.mubr.f32.mxu0 %v7150_v29  ;;  %16661 = vmatpush3.msra.mxu0 %v19156_v2 }
 0xa0b   :  { %16665 = vmatprep.subr.mxu0 %v19149_v57 }
 0xa11   :  { %16663 = vmatmul.mubr.f32.vlgmr.msra.gmra.mrb[14].mxu0 %v7160_v61  ;;  %v15139_v61 = vld [vmem:[%s19700_s4] ss:$0 sm:$0xff] }
 0xa12   :  { %16667 = vmatprep.mubr.f32.mxu0 %v7151_v19  ;;  %16666 = vmatpush3.msra.mxu0 %v19149_v57 }
 0xa13   :  { %16670 = vmatprep.subr.mxu0 %v19159_v10 }
 0xa19   :  { %16668 = vmatmul.mubr.f32.vlgmr.msra.gmra.mrb[14].mxu0 %v7161_v13 }
 0xa1a   :  { %16672 = vmatprep.mubr.f32.mxu0 %v7149_v62  ;;  %16671 = vmatpush3.msra.mxu0 %v19159_v10 }
 0xa1b   :  { %16675 = vmatprep.subr.mxu0 %v19149_v57 }
 0xa21   :  { %v16745_v9 = vpop.f32.mrb[16].mxu1  ;;  %16673 = vmatmul.mubr.f32.vlgmr.msra.gmra.mrb[14].mxu0 %v19193_v53 }
 0xa22   :  { %v8165_v3 = vand.u32 4294901760, %v16745_v9  ;;  %v8145_v54 = vpop.f32.mrb[17].mxu1  ;;  %16677 = vmatprep.mubr.f32.mxu0 %v7149_v62  ;;  %16676 = vmatpush3.msra.mxu0 %v19149_v57 }
 0xa23   :  { %v8162_v4 = vand.u32 4294901760, %v8145_v54 }
 0xa24   :  { %v8257_v7 = vsub.f32 %v16745_v9, %v8165_v3  ;;  %v8667_v9 = vsel %vm604_vm1, %v18991_v43, 0 }
 0xa25   :  { %v17796_v41 = vpack.c.bf16 %v8165_v3, %v8162_v4  ;;  %v8250_v47 = vsub.f32 %v8145_v54, %v8162_v4  ;;  %v8670_v3 = vsel %vm604_vm1, %v18997_v38, 0  ;;  %v19299_v54 = vand.u32 4294901760, %v8667_v9 }
 0xa26   :  { %v8258_v17 = vand.u32 4294901760, %v8257_v7  ;;  %v19301_v45 = vand.u32 4294901760, %v8670_v3  ;;  %v8673_v4 = vsel %vm604_vm1, %v19003_v42, 0 }
 0xa27   :  { %v8251_v40 = vand.u32 4294901760, %v8250_v47  ;;  %17797 = vmatprep.subr.bf16.mxu0 %v17796_v41  ;;  %v17804_v22 = vpack.c.bf16 %v8257_v7, %v8250_v47 }
 0xa28   :  { %v8259_v24 = vsub.f32 %v8257_v7, %v8258_v17  ;;  %v19306_v7 = vsub.f32 %v8667_v9, %v19299_v54 }
 0xa29   :  { %v8252_v28 = vsub.f32 %v8250_v47, %v8251_v40  ;;  %16678 = vmatmul.mubr.f32.vlgmr.msra.gmra.mrb[14].mxu0 %v19193_v53  ;;  %v17812_v51 = vpack.c.bf16 %v8258_v17, %v8251_v40  ;;  %v19267_v53 = vand.u32 4294901760, %v19264_v15  ;;  %v19311_v47 = vsub.f32 %v8670_v3, %v19301_v45 }
 0xa2a   :  { %17799 = vmatpush3.bf16.msra.mxu0 %v17796_v41  ;;  %16750 = vmatprep.mubr.f32.mxu0 %v19242_v21  ;;  %v8260_v30 = vand.u32 4294901760, %v8259_v24  ;;  %v19314_v43 = vand.u32 4294901760, %v19306_v7 }
 0xa2b   :  { %v8253_v55 = vand.u32 4294901760, %v8252_v28  ;;  %v8745_v46 = vsub.f32 %v19264_v15, %v19267_v53  ;;  %v19320_v49 = vand.u32 4294901760, %v19311_v47 }
 0xa2c   :  { %v8755_v24 = vsub.f32 %v19306_v7, %v19314_v43 }
 0xa2d   :  { %16751 = vmatmul.mubr.f32.vlgmr.msra.gmra.mrb[16].mxu0 %v19245_v48  ;;  %v17800_v8 = vpack.c.bf16 %v8260_v30, %v8253_v55  ;;  %v19271_v62 = vand.u32 4294901760, %v8745_v46  ;;  %v8765_v30 = vsub.f32 %v19311_v47, %v19320_v49 }
 0xa2e   :  { %16757 = vmatprep.mubr.f32.mxu0 %v19217_v26 }
 0xa2f   :  { %17801 = vmatprep.subr.bf16.mxu0 %v17800_v8  ;;  %19735 = vst [vmem:[#allocation11_spill] sm:$0xff] %v19271_v62 }
 0xa30   :  { %17803 = vmatpush3.bf16.msra.mxu0 %v17800_v8 }
 0xa31   :  { %17805 = vmatprep.subr.bf16.mxu0 %v17804_v22 }
 0xa35   :  { %16758 = vmatmul.mubr.f32.vlgmr.msra.gmra.mrb[16].mxu0 %v19220_v35 }
 0xa36   :  { %17807 = vmatpush3.bf16.msra.mxu0 %v17804_v22  ;;  %16764 = vmatprep.mubr.f32.mxu0 %v19224_v36 }
 0xa37   :  { %17809 = vmatprep.subr.bf16.mxu0 %v17796_v41 }
 0xa3d   :  { %16765 = vmatmul.mubr.f32.vlgmr.msra.gmra.mrb[16].mxu0 %v19228_v50 }
 0xa3e   :  { %17811 = vmatpush3.bf16.msra.mxu0 %v17796_v41  ;;  %16771 = vmatprep.mubr.f32.mxu0 %v19231_v5 }
 0xa3f   :  { %17813 = vmatprep.subr.bf16.mxu0 %v17812_v51 }
 0xa45   :  { %16772 = vmatmul.mubr.f32.vlgmr.msra.gmra.mrb[16].mxu0 %v19235_v18 }
 0xa46   :  { %17815 = vmatpush3.bf16.msra.mxu0 %v17812_v51  ;;  %16778 = vmatprep.mubr.f32.mxu0 %v19217_v26 }
 0xa47   :  { %17817 = vmatprep.subr.bf16.mxu0 %v17796_v41 }
 0xa4d   :  { %16779 = vmatmul.mubr.f32.vlgmr.msra.gmra.mrb[16].mxu0 %v19220_v35 }
 0xa4e   :  { %17819 = vmatpush3.bf16.msra.mxu0 %v17796_v41  ;;  %16785 = vmatprep.mubr.f32.mxu0 %v19217_v26  ;;  %v19308_v41 = vand.u32 4294901760, %v8673_v4 }
 0xa50   :  { %v19317_v38 = vsub.f32 %v8673_v4, %v19308_v41 }
 0xa52   :  { %v19325_v28 = vand.u32 4294901760, %v19317_v38 }
 0xa55   :  { %16786 = vmatmul.mubr.f32.vlgmr.msra.gmra.mrb[16].mxu0 %v19220_v35 }
 0xa56   :  { %16792 = vmatprep.mubr.f32.mxu0 %v19271_v62 }
 0xacc   :  { %v16646_v39 = vpop.f32.mrb[10].mxu0 }
 0xacd   :  { %v18108_v29 = vadd.f32 %v16646_v39, %v15139_v61  ;;  %v7051_v13 = vpop.f32.mrb[11].mxu0  ;;  %v19334_v39 = vand.u32 4294901760, %v8755_v24 }
 0xace   :  { %v18109_v19 = vadd.f32 %v15139_v61, %v7051_v13 }
 0xacf   :  { %7074 = vst.msk [vmem:[%s19701_s5 + $0x8] sm:$0xff] %vm604_vm1, %v18108_v29  ;;  %v8775_v29 = vsub.f32 %v19317_v38, %v19325_v28 }
 0xad0   :  { %7073 = vst.msk [vmem:[%s19701_s5] sm:$0xff] %vm604_vm1, %v18109_v19  ;;  %v16649_v14 = vpop.f32.mrb[12].mxu0  ;;  %v19339_v19 = vand.u32 4294901760, %v8765_v30 }
 0xad1   :  { %v18110_v52 = vadd.f32 %v16649_v14, %v15139_v61  ;;  %v7063_v59 = vpop.f32.mrb[13].mxu0 }
 0xad2   :  { %v18111_v12 = vadd.f32 %v15139_v61, %v7063_v59 }
 0xad3   :  { %7076 = vst.msk [vmem:[%s19701_s5 + $0x18] sm:$0xff] %vm604_vm1, %v18110_v52 }
 0xad4   :  { %7075 = vst.msk [vmem:[%s19701_s5 + $0x10] sm:$0xff] %vm604_vm1, %v18111_v12 }
 0xafc   :  { %v16679_v56 = vpop.f32.mrb[14].mxu0 }
 0xafd   :  { %v18112_v44 = vadd.f32 %v16679_v56, %v15139_v61  ;;  %v7562_v25 = vpop.f32.mrb[15].mxu0  ;;  %v19344_v56 = vand.u32 4294901760, %v8775_v29 }
 0xafe   :  { %v18113_v34 = vadd.f32 %v15139_v61, %v7562_v25 }
 0xaff   :  { %7573 = vst.msk [vmem:[#allocation2 + $0x8] sm:$0xff] %vm604_vm1, %v18112_v44 }
 0xb00   :  { %7572 = vst.msk [vmem:[#allocation2] sm:$0xff] %vm604_vm1, %v18113_v34 }
 0xb28   :  { %v16787_v17 = vpop.f32.mrb[16].mxu0 }
 0xb29   :  { %v8679_v40 = vand.u32 4294901760, %v16787_v17  ;;  %v8653_v42 = vpop.f32.mrb[17].mxu0 }
 0xb2a   :  { %v8676_v22 = vand.u32 4294901760, %v8653_v42 }
 0xb2b   :  { %v8791_v51 = vsub.f32 %v16787_v17, %v8679_v40 }
 0xb2c   :  { %v19329_v55 = vpack.c.bf16 %v8679_v40, %v8676_v22  ;;  %v8784_v8 = vsub.f32 %v8653_v42, %v8676_v22 }
 0xb2d   :  { %v8792_v11 = vand.u32 4294901760, %v8791_v51 }
 0xb2e   :  { %v8785_v46 = vand.u32 4294901760, %v8784_v8  ;;  %v19331_v61 = vpack.c.bf16 %v8791_v51, %v8784_v8  ;;  %17821 = vmatprep.subr.bf16.mxu0 %v19329_v55 }
 0xb2f   :  { %v8793_v13 = vsub.f32 %v8791_v51, %v8792_v11  ;;  %17823 = vmatpush3.bf16.msra.mxu0 %v19329_v55 }
 0xb30   :  { %v8786_v14 = vsub.f32 %v8784_v8, %v8785_v46  ;;  %v19341_v52 = vpack.c.bf16 %v8792_v11, %v8785_v46 }
 0xb31   :  { %v8794_v59 = vand.u32 4294901760, %v8793_v13 }
 0xb32   :  { %v8787_v12 = vand.u32 4294901760, %v8786_v14  ;;  %16793 = vmatmul.mubr.f32.vlgmr.msra.gmra.mrb[18].mxu0 %v19334_v39 }
 0xb33   :  { %16795 = vmatprep.mubr.f32.mxu0 %v19339_v19 }
 0xb34   :  { %v19347_v44 = vpack.c.bf16 %v8794_v59, %v8787_v12 }
 0xb36   :  { %16796 = vmatmul.mubr.f32.gmra.mrb[20].mxu0 %v19344_v56  ;;  %17825 = vmatprep.subr.bf16.mxu0 %v19347_v44 }
 0xb37   :  { %17827 = vmatpush3.bf16.msra.mxu0 %v19347_v44  ;;  %16802 = vmatprep.mubr.f32.mxu0 %v19261_v33 }
 0xb38   :  { %17829 = vmatprep.subr.bf16.mxu0 %v19331_v61 }
 0xb3a   :  { %16803 = vmatmul.mubr.f32.vlgmr.msra.gmra.mrb[18].mxu0 %v19299_v54 }
 0xb3b   :  { %17831 = vmatpush3.bf16.msra.mxu0 %v19331_v61  ;;  %16805 = vmatprep.mubr.f32.mxu0 %v19301_v45 }
 0xb3c   :  { %17833 = vmatprep.subr.bf16.mxu0 %v19329_v55 }
 0xb3e   :  { %16806 = vmatmul.mubr.f32.gmra.mrb[20].mxu0 %v19308_v41 }
 0xb3f   :  { %16812 = vmatprep.mubr.f32.mxu0 %v19264_v15 }
 0xb42   :  { %16813 = vmatmul.mubr.f32.vlgmr.msra.gmra.mrb[18].mxu0 %v19306_v7 }
 0xb43   :  { %17835 = vmatpush3.bf16.msra.mxu0 %v19329_v55  ;;  %16815 = vmatprep.mubr.f32.mxu0 %v19311_v47 }
 0xb44   :  { %17837 = vmatprep.subr.bf16.mxu0 %v19341_v52 }
 0xb46   :  { %16816 = vmatmul.mubr.f32.gmra.mrb[20].mxu0 %v19317_v38 }
 0xb47   :  { %16822 = vmatprep.mubr.f32.mxu0 %v19267_v53 }
 0xb4a   :  { %16823 = vmatmul.mubr.f32.vlgmr.msra.gmra.mrb[18].mxu0 %v19314_v43 }
 0xb4b   :  { %17839 = vmatpush3.bf16.msra.mxu0 %v19341_v52  ;;  %16825 = vmatprep.mubr.f32.mxu0 %v19320_v49 }
 0xb4c   :  { %17841 = vmatprep.subr.bf16.mxu0 %v19329_v55 }
 0xb4e   :  { %16826 = vmatmul.mubr.f32.gmra.mrb[20].mxu0 %v19325_v28 }
 0xb4f   :  { %16832 = vmatprep.mubr.f32.mxu0 %v19261_v33 }
 0xb52   :  { %16833 = vmatmul.mubr.f32.vlgmr.msra.gmra.mrb[18].mxu0 %v19299_v54 }
 0xb53   :  { %17843 = vmatpush3.bf16.msra.mxu0 %v19329_v55  ;;  %16835 = vmatprep.mubr.f32.mxu0 %v19301_v45 }
 0xb56   :  { %16836 = vmatmul.mubr.f32.gmra.mrb[20].mxu0 %v19308_v41 }
 0xb57   :  { %16842 = vmatprep.mubr.f32.mxu0 %v19261_v33 }
 0xb5a   :  { %16843 = vmatmul.mubr.f32.vlgmr.msra.gmra.mrb[18].mxu0 %v19299_v54 }
 0xb5b   :  { %16845 = vmatprep.mubr.f32.mxu0 %v19301_v45 }
 0xb5e   :  { %16846 = vmatmul.mubr.f32.gmra.mrb[20].mxu0 %v19308_v41 }
 0xb5f   :  { %16918 = vmatprep.mubr.f32.mxu0 %v19242_v21 }
 0xc2d   :  { %v19381_v25 = vpop.f32.mrb[18].mxu0 }
 0xc2e   :  { %v19385_v34 = vsub.f32 %v19074_v31, %v19381_v25  ;;  %v19387_v9 = vpop.f32.mrb[19].mxu0 }
 0xc2f   :  { %v19391_v3 = vsub.f32 %v19069_v27, %v19387_v9 }
 0xc30   :  { %v9271_v4 = vand.u32 4294901760, %v19385_v34 }
 0xc31   :  { %v9268_v17 = vand.u32 4294901760, %v19391_v3  ;;  %v19395_v40 = vpop.f32.mrb[20].mxu0 }
 0xc32   :  { %v9365_v42 = vsub.f32 %v19385_v34, %v9271_v4  ;;  %v19400_v22 = vsub.f32 %v19088_v6, %v19395_v40  ;;  %v19402_v31 = vpop.f32.mrb[21].mxu0 }
 0xc33   :  { %19736 = vst [vmem:[#allocation12_spill] sm:$0xff] %v19402_v31  ;;  %v17844_v24 = vpack.c.bf16 %v9271_v4, %v9268_v17  ;;  %v9358_v51 = vsub.f32 %v19391_v3, %v9268_v17  ;;  %v19407_v27 = vsub.f32 %v19083_v1, %v19402_v31 }
 0xc34   :  { %v9277_v30 = vand.u32 4294901760, %v19400_v22  ;;  %v9366_v8 = vand.u32 4294901760, %v9365_v42 }
 0xc35   :  { %v9274_v11 = vand.u32 4294901760, %v19407_v27  ;;  %17845 = vmatprep.subr.bf16.mxu1 %v17844_v24  ;;  %v9359_v46 = vand.u32 4294901760, %v9358_v51 }
 0xc36   :  { %v9379_v29 = vsub.f32 %v19400_v22, %v9277_v30  ;;  %17847 = vmatpush3.bf16.msra.mxu1 %v17844_v24  ;;  %v9367_v6 = vsub.f32 %v9365_v42, %v9366_v8 }
 0xc37   :  { %v17848_v13 = vpack.c.bf16 %v9277_v30, %v9274_v11  ;;  %v9372_v14 = vsub.f32 %v19407_v27, %v9274_v11  ;;  %v9360_v59 = vsub.f32 %v9358_v51, %v9359_v46  ;;  %v17860_v11 = vpack.c.bf16 %v9365_v42, %v9358_v51 }
 0xc38   :  { %v9368_v12 = vand.u32 4294901760, %v9367_v6  ;;  %v9380_v4 = vand.u32 4294901760, %v9379_v29 }
 0xc39   :  { %17849 = vmatprep.subr.bf16.mxu1 %v17848_v13  ;;  %v9361_v1 = vand.u32 4294901760, %v9360_v59  ;;  %v9373_v17 = vand.u32 4294901760, %v9372_v14  ;;  %v17864_v6 = vpack.c.bf16 %v9379_v29, %v9372_v14 }
 0xc3a   :  { %17851 = vmatpush3.bf16.msra.mxu1 %v17848_v13  ;;  %v9381_v10 = vsub.f32 %v9379_v29, %v9380_v4 }
 0xc3b   :  { %v17852_v2 = vpack.c.bf16 %v9368_v12, %v9361_v1  ;;  %v9374_v58 = vsub.f32 %v9372_v14, %v9373_v17 }
 0xc3c   :  { %v9382_v57 = vand.u32 4294901760, %v9381_v10 }
 0xc3d   :  { %16857 = vmatmul.mubr.f32.vlgmr.msra.gmra.mrb[18].mxu1 %v19130_v60  ;;  %17853 = vmatprep.subr.bf16.mxu1 %v17852_v2  ;;  %v9375_v31 = vand.u32 4294901760, %v9374_v58 }
 0xc3e   :  { %17855 = vmatpush3.bf16.msra.mxu1 %v17852_v2  ;;  %16867 = vmatprep.mubr.f32.mxu1 %v19076_v32  ;;  %v17880_v2 = vpack.c.bf16 %v9380_v4, %v9373_v17 }
 0xc3f   :  { %v17856_v30 = vpack.c.bf16 %v9382_v57, %v9375_v31  ;;  %v17876_v57 = vpack.c.bf16 %v9366_v8, %v9359_v46 }
 0xc41   :  { %17857 = vmatprep.subr.bf16.mxu1 %v17856_v30 }
 0xc42   :  { %17859 = vmatpush3.bf16.msra.mxu1 %v17856_v30  ;;  %v15144_v30 = vld [vmem:[%s19696_s0 + $0x50] sm:$0xff] }
 0xc43   :  { %17861 = vmatprep.subr.bf16.mxu1 %v17860_v11 }
 0xc45   :  { %16868 = vmatmul.mubr.f32.vlgmr.msra.gmra.mrb[18].mxu1 %v19102_v0 }
 0xc46   :  { %17863 = vmatpush3.bf16.msra.mxu1 %v17860_v11  ;;  %16878 = vmatprep.mubr.f32.mxu1 %v19093_v37  ;;  %v10886_v11 = vsel %vm604_vm1, %v15144_v30, 0 }
 0xc47   :  { %17865 = vmatprep.subr.bf16.mxu1 %v17864_v6 }
 0xc4a   :  { %17867 = vmatpush3.bf16.msra.mxu1 %v17864_v6  ;;  %v19440_v6 = vand.u32 4294901760, %v10886_v11 }
 0xc4b   :  { %17869 = vmatprep.subr.bf16.mxu1 %v17844_v24 }
 0xc4d   :  { %16879 = vmatmul.mubr.f32.vlgmr.msra.gmra.mrb[18].mxu1 %v19113_v20 }
 0xc4e   :  { %17871 = vmatpush3.bf16.msra.mxu1 %v17844_v24  ;;  %16889 = vmatprep.mubr.f32.mxu1 %v19107_v63 }
 0xc4f   :  { %17873 = vmatprep.subr.bf16.mxu1 %v17848_v13 }
 0xc52   :  { %17875 = vmatpush3.bf16.msra.mxu1 %v17848_v13 }
 0xc53   :  { %17877 = vmatprep.subr.bf16.mxu1 %v17876_v57 }
 0xc55   :  { %16890 = vmatmul.mubr.f32.vlgmr.msra.gmra.mrb[18].mxu1 %v19121_v23 }
 0xc56   :  { %17879 = vmatpush3.bf16.msra.mxu1 %v17876_v57  ;;  %16900 = vmatprep.mubr.f32.mxu1 %v19076_v32  ;;  %v19443_v57 = vsub.f32 %v10886_v11, %v19440_v6 }
 0xc57   :  { %17881 = vmatprep.subr.bf16.mxu1 %v17880_v2 }
 0xc5a   :  { %17883 = vmatpush3.bf16.msra.mxu1 %v17880_v2  ;;  %v19446_v2 = vand.u32 4294901760, %v19443_v57 }
 0xc5b   :  { %17885 = vmatprep.subr.bf16.mxu1 %v17844_v24 }
 0xc5d   :  { %16901 = vmatmul.mubr.f32.vlgmr.msra.gmra.mrb[18].mxu1 %v19102_v0 }
 0xc5e   :  { %17887 = vmatpush3.bf16.msra.mxu1 %v17844_v24  ;;  %16911 = vmatprep.mubr.f32.mxu1 %v19076_v32 }
 0xc5f   :  { %17889 = vmatprep.subr.bf16.mxu1 %v17848_v13 }
 0xc62   :  { %17891 = vmatpush3.bf16.msra.mxu1 %v17848_v13 }
 0xc65   :  { %16912 = vmatmul.mubr.f32.vlgmr.msra.gmra.mrb[18].mxu1 %v19102_v0 }
 0xc66   :  { %16960 = vmatprep.mubr.f32.mxu1 %v19271_v62 }
 0xd38   :  { %v16913_v10 = vpop.f32.mrb[18].mxu1 }
 0xd39   :  { %v9799_v58 = vand.u32 4294901760, %v16913_v10  ;;  %v9785_v42 = vpop.f32.mrb[19].mxu1 }
 0xd3a   :  { %v9796_v31 = vand.u32 4294901760, %v9785_v42 }
 0xd3b   :  { %v9891_v51 = vsub.f32 %v16913_v10, %v9799_v58  ;;  %v10961_v10 = vsub.f32 %v19443_v57, %v19446_v2 }
 0xd3c   :  { %v17892_v8 = vpack.c.bf16 %v9799_v58, %v9796_v31  ;;  %v9884_v46 = vsub.f32 %v9785_v42, %v9796_v31  ;;  %v15145_v42 = vld [vmem:[%s19696_s0 + $0x58] sm:$0xff] }
 0xd3d   :  { %v9892_v29 = vand.u32 4294901760, %v9891_v51  ;;  %v19450_v58 = vand.u32 4294901760, %v10961_v10  ;;  %v10889_v31 = vsel %vm604_vm1, %v15145_v42, 0 }
 0xd3e   :  { %v9885_v14 = vand.u32 4294901760, %v9884_v46  ;;  %17893 = vmatprep.subr.bf16.mxu0 %v17892_v8  ;;  %v17900_v59 = vpack.c.bf16 %v9891_v51, %v9884_v46 }
 0xd3f   :  { %v9893_v24 = vsub.f32 %v9891_v51, %v9892_v29  ;;  %17895 = vmatpush3.bf16.msra.mxu0 %v17892_v8  ;;  %v19457_v51 = vand.u32 4294901760, %v10889_v31 }
 0xd40   :  { %v9886_v12 = vsub.f32 %v9884_v46, %v9885_v14  ;;  %v17908_v4 = vpack.c.bf16 %v9892_v29, %v9885_v14 }
 0xd41   :  { %v9894_v13 = vand.u32 4294901760, %v9893_v24 }
 0xd42   :  { %16919 = vmatmul.mubr.f32.vlgmr.msra.gmra.mrb[22].mxu0 %v19245_v48  ;;  %v9887_v1 = vand.u32 4294901760, %v9886_v12 }
 0xd43   :  { %16925 = vmatprep.mubr.f32.mxu0 %v19217_v26 }
 0xd44   :  { %v17896_v17 = vpack.c.bf16 %v9894_v13, %v9887_v1 }
 0xd46   :  { %17897 = vmatprep.subr.bf16.mxu0 %v17896_v17 }
 0xd47   :  { %17899 = vmatpush3.bf16.msra.mxu0 %v17896_v17 }
 0xd48   :  { %17901 = vmatprep.subr.bf16.mxu0 %v17900_v59 }
 0xd4a   :  { %16926 = vmatmul.mubr.f32.vlgmr.msra.gmra.mrb[22].mxu0 %v19220_v35 }
 0xd4b   :  { %17903 = vmatpush3.bf16.msra.mxu0 %v17900_v59  ;;  %16932 = vmatprep.mubr.f32.mxu0 %v19224_v36 }
 0xd4c   :  { %17905 = vmatprep.subr.bf16.mxu0 %v17892_v8 }
 0xd52   :  { %16933 = vmatmul.mubr.f32.vlgmr.msra.gmra.mrb[22].mxu0 %v19228_v50 }
 0xd53   :  { %17907 = vmatpush3.bf16.msra.mxu0 %v17892_v8  ;;  %16939 = vmatprep.mubr.f32.mxu0 %v19231_v5 }
 0xd54   :  { %17909 = vmatprep.subr.bf16.mxu0 %v17908_v4 }
 0xd5a   :  { %16940 = vmatmul.mubr.f32.vlgmr.msra.gmra.mrb[22].mxu0 %v19235_v18 }
 0xd5b   :  { %17911 = vmatpush3.bf16.msra.mxu0 %v17908_v4  ;;  %16946 = vmatprep.mubr.f32.mxu0 %v19217_v26 }
 0xd5c   :  { %17913 = vmatprep.subr.bf16.mxu0 %v17892_v8 }
 0xd62   :  { %16947 = vmatmul.mubr.f32.vlgmr.msra.gmra.mrb[22].mxu0 %v19220_v35 }
 0xd63   :  { %17915 = vmatpush3.bf16.msra.mxu0 %v17892_v8  ;;  %16953 = vmatprep.mubr.f32.mxu0 %v19217_v26  ;;  %v19460_v8 = vsub.f32 %v10889_v31, %v19457_v51 }
 0xd65   :  { %v19463_v46 = vand.u32 4294901760, %v19460_v8 }
 0xd67   :  { %v10971_v12 = vsub.f32 %v19460_v8, %v19463_v46 }
 0xd69   :  { %v19467_v10 = vand.u32 4294901760, %v10971_v12 }
 0xd6a   :  { %16954 = vmatmul.mubr.f32.vlgmr.msra.gmra.mrb[22].mxu0 %v19220_v35 }
 0xd6b   :  { %17020 = vmatprep.mubr.f32.mxu0 %v19450_v58 }
 0xe3d   :  { %v16955_v29 = vpop.f32.mrb[22].mxu0 }
 0xe3e   :  { %v10301_v14 = vand.u32 4294901760, %v16955_v29  ;;  %v10287_v59 = vpop.f32.mrb[23].mxu0 }
 0xe3f   :  { %v10298_v24 = vand.u32 4294901760, %v10287_v59 }
 0xe40   :  { %v10413_v4 = vsub.f32 %v16955_v29, %v10301_v14 }
 0xe41   :  { %v17916_v13 = vpack.c.bf16 %v10301_v14, %v10298_v24  ;;  %v10406_v1 = vsub.f32 %v10287_v59, %v10298_v24 }
 0xe42   :  { %v10414_v17 = vand.u32 4294901760, %v10413_v4 }
 0xe43   :  { %v10407_v30 = vand.u32 4294901760, %v10406_v1  ;;  %v17924_v11 = vpack.c.bf16 %v10413_v4, %v10406_v1  ;;  %17917 = vmatprep.subr.bf16.mxu1 %v17916_v13  ;;  %17941 = vmatprep.subr.bf16.mxu0 %v17916_v13 }
 0xe44   :  { %v10415_v42 = vsub.f32 %v10413_v4, %v10414_v17  ;;  %17919 = vmatpush3.bf16.msra.mxu1 %v17916_v13  ;;  %17943 = vmatpush3.bf16.msra.mxu0 %v17916_v13 }
 0xe45   :  { %v10408_v31 = vsub.f32 %v10406_v1, %v10407_v30  ;;  %v17932_v62 = vpack.c.bf16 %v10414_v17, %v10407_v30 }
 0xe46   :  { %v10416_v18 = vand.u32 4294901760, %v10415_v42 }
 0xe47   :  { %v10409_v5 = vand.u32 4294901760, %v10408_v31  ;;  %16961 = vmatmul.mubr.f32.vlgmr.msra.gmra.mrb[20].mxu1 %v19334_v39  ;;  %17021 = vmatmul.mubr.f32.vlgmr.msra.gmra.mrb[24].mxu0 %v19467_v10 }
 0xe48   :  { %16963 = vmatprep.mubr.f32.mxu1 %v19339_v19  ;;  %17027 = vmatprep.mubr.f32.mxu0 %v19440_v6 }
 0xe49   :  { %v17920_v29 = vpack.c.bf16 %v10416_v18, %v10409_v5 }
 0xe4b   :  { %16964 = vmatmul.mubr.f32.gmra.mrb[22].mxu1 %v19344_v56  ;;  %17921 = vmatprep.subr.bf16.mxu1 %v17920_v29 }
 0xe4c   :  { %17945 = vmatprep.subr.bf16.mxu0 %v17920_v29  ;;  %17923 = vmatpush3.bf16.msra.mxu1 %v17920_v29 }
 0xe4d   :  { %17947 = vmatpush3.bf16.msra.mxu0 %v17920_v29  ;;  %17925 = vmatprep.subr.bf16.mxu1 %v17924_v11 }
 0xe4e   :  { %17949 = vmatprep.subr.bf16.mxu0 %v17924_v11  ;;  %16970 = vmatprep.mubr.f32.mxu1 %v19261_v33 }
 0xe4f   :  { %16971 = vmatmul.mubr.f32.vlgmr.msra.gmra.mrb[20].mxu1 %v19299_v54 }
 0xe50   :  { %17028 = vmatmul.mubr.f32.vlgmr.msra.gmra.mrb[24].mxu0 %v19457_v51  ;;  %17927 = vmatpush3.bf16.msra.mxu1 %v17924_v11 }
 0xe51   :  { %17951 = vmatpush3.bf16.msra.mxu0 %v17924_v11  ;;  %17929 = vmatprep.subr.bf16.mxu1 %v17916_v13 }
 0xe52   :  { %17953 = vmatprep.subr.bf16.mxu0 %v17916_v13  ;;  %16973 = vmatprep.mubr.f32.mxu1 %v19301_v45 }
 0xe53   :  { %16974 = vmatmul.mubr.f32.gmra.mrb[22].mxu1 %v19308_v41  ;;  %17034 = vmatprep.mubr.f32.mxu0 %v19443_v57 }
 0xe54   :  { %16980 = vmatprep.mubr.f32.mxu1 %v19264_v15 }
 0xe57   :  { %16981 = vmatmul.mubr.f32.vlgmr.msra.gmra.mrb[20].mxu1 %v19306_v7 }
 0xe58   :  { %17931 = vmatpush3.bf16.msra.mxu1 %v17916_v13  ;;  %17035 = vmatmul.mubr.f32.vlgmr.msra.gmra.mrb[24].mxu0 %v19460_v8 }
 0xe59   :  { %17955 = vmatpush3.bf16.msra.mxu0 %v17916_v13  ;;  %17933 = vmatprep.subr.bf16.mxu1 %v17932_v62 }
 0xe5a   :  { %17957 = vmatprep.subr.bf16.mxu0 %v17932_v62  ;;  %16983 = vmatprep.mubr.f32.mxu1 %v19311_v47 }
 0xe5b   :  { %16984 = vmatmul.mubr.f32.gmra.mrb[22].mxu1 %v19317_v38  ;;  %17041 = vmatprep.mubr.f32.mxu0 %v19446_v2 }
 0xe5c   :  { %16990 = vmatprep.mubr.f32.mxu1 %v19267_v53 }
 0xe5f   :  { %16991 = vmatmul.mubr.f32.vlgmr.msra.gmra.mrb[20].mxu1 %v19314_v43 }
 0xe60   :  { %17935 = vmatpush3.bf16.msra.mxu1 %v17932_v62  ;;  %17042 = vmatmul.mubr.f32.vlgmr.msra.gmra.mrb[24].mxu0 %v19463_v46 }
 0xe61   :  { %17959 = vmatpush3.bf16.msra.mxu0 %v17932_v62  ;;  %17937 = vmatprep.subr.bf16.mxu1 %v17916_v13 }
 0xe62   :  { %17961 = vmatprep.subr.bf16.mxu0 %v17916_v13  ;;  %16993 = vmatprep.mubr.f32.mxu1 %v19320_v49 }
 0xe63   :  { %16994 = vmatmul.mubr.f32.gmra.mrb[22].mxu1 %v19325_v28  ;;  %17048 = vmatprep.mubr.f32.mxu0 %v19440_v6 }
 0xe64   :  { %17000 = vmatprep.mubr.f32.mxu1 %v19261_v33 }
 0xe67   :  { %17001 = vmatmul.mubr.f32.vlgmr.msra.gmra.mrb[20].mxu1 %v19299_v54 }
 0xe68   :  { %17939 = vmatpush3.bf16.msra.mxu1 %v17916_v13  ;;  %17049 = vmatmul.mubr.f32.vlgmr.msra.gmra.mrb[24].mxu0 %v19457_v51 }
 0xe69   :  { %17963 = vmatpush3.bf16.msra.mxu0 %v17916_v13  ;;  %17003 = vmatprep.mubr.f32.mxu1 %v19301_v45  ;;  %v19737_v13 = vld [vmem:[#allocation12_spill] sm:$0xff] }
 0xe6a   :  { %17965 = vmatprep.subr.bf16.mxu0 %v19329_v55  ;;  %17055 = vmatprep.mubr.f32.mxu0 %v19440_v6 }
 0xe6b   :  { %17004 = vmatmul.mubr.f32.gmra.mrb[22].mxu1 %v19308_v41 }
 0xe6c   :  { %17010 = vmatprep.mubr.f32.mxu1 %v19261_v33 }
 0xe6f   :  { %17011 = vmatmul.mubr.f32.vlgmr.msra.gmra.mrb[20].mxu1 %v19299_v54 }
 0xe70   :  { %17056 = vmatmul.mubr.f32.vlgmr.msra.gmra.mrb[24].mxu0 %v19457_v51  ;;  %17013 = vmatprep.mubr.f32.mxu1 %v19301_v45 }
 0xe71   :  { %17967 = vmatpush3.bf16.msra.mxu0 %v19329_v55  ;;  %17062 = vmatprep.mubr.f32.mxu0 %v19450_v58 }
 0xe72   :  { %17969 = vmatprep.subr.bf16.mxu0 %v19347_v44 }
 0xe73   :  { %17014 = vmatmul.mubr.f32.gmra.mrb[22].mxu1 %v19308_v41 }
 0xe74   :  { %17108 = vmatprep.mubr.f32.mxu1 %v19123_v16 }
 0xe78   :  { %17063 = vmatmul.mubr.f32.vlgmr.msra.gmra.mrb[24].mxu0 %v19467_v10 }
 0xe79   :  { %17971 = vmatpush3.bf16.msra.mxu0 %v19347_v44  ;;  %17069 = vmatprep.mubr.f32.mxu0 %v19440_v6 }
 0xe7a   :  { %17973 = vmatprep.subr.bf16.mxu0 %v19331_v61 }
 0xe80   :  { %17070 = vmatmul.mubr.f32.vlgmr.msra.gmra.mrb[24].mxu0 %v19457_v51 }
 0xe81   :  { %17975 = vmatpush3.bf16.msra.mxu0 %v19331_v61  ;;  %17076 = vmatprep.mubr.f32.mxu0 %v19443_v57 }
 0xe82   :  { %17977 = vmatprep.subr.bf16.mxu0 %v19329_v55 }
 0xe88   :  { %17077 = vmatmul.mubr.f32.vlgmr.msra.gmra.mrb[24].mxu0 %v19460_v8 }
 0xe89   :  { %17979 = vmatpush3.bf16.msra.mxu0 %v19329_v55  ;;  %17083 = vmatprep.mubr.f32.mxu0 %v19446_v2 }
 0xe8a   :  { %17981 = vmatprep.subr.bf16.mxu0 %v19341_v52 }
 0xe90   :  { %17084 = vmatmul.mubr.f32.vlgmr.msra.gmra.mrb[24].mxu0 %v19463_v46 }
 0xe91   :  { %17983 = vmatpush3.bf16.msra.mxu0 %v19341_v52  ;;  %17090 = vmatprep.mubr.f32.mxu0 %v19440_v6 }
 0xe92   :  { %17985 = vmatprep.subr.bf16.mxu0 %v19329_v55 }
 0xe98   :  { %17091 = vmatmul.mubr.f32.vlgmr.msra.gmra.mrb[24].mxu0 %v19457_v51 }
 0xe99   :  { %17987 = vmatpush3.bf16.msra.mxu0 %v19329_v55  ;;  %17097 = vmatprep.mubr.f32.mxu0 %v19440_v6 }
 0xea0   :  { %17098 = vmatmul.mubr.f32.vlgmr.msra.gmra.mrb[24].mxu0 %v19457_v51 }
 0xea1   :  { %17170 = vmatprep.mubr.f32.mxu0 %v19242_v21 }
 0xf42   :  { %v17012_v16 = vpop.f32.mrb[20].mxu1 }
 0xf43   :  { %v19530_v5 = vadd.f32 %v17012_v16, %v19381_v25  ;;  %v11900_v18 = vsub.f32 %v19385_v34, %v17012_v16  ;;  %v10863_v62 = vpop.f32.mrb[21].mxu1 }
 0xf44   :  { %v19534_v61 = vadd.f32 %v10863_v62, %v19387_v9  ;;  %v11899_v52 = vsub.f32 %v19391_v3, %v10863_v62 }
 0xf45   :  { %v11907_v44 = vand.u32 4294901760, %v11900_v18 }
 0xf46   :  { %v11904_v55 = vand.u32 4294901760, %v11899_v52  ;;  %v17015_v14 = vpop.f32.mrb[22].mxu1 }
 0xf47   :  { %v12001_v59 = vsub.f32 %v11900_v18, %v11907_v44  ;;  %v19538_v24 = vadd.f32 %v17015_v14, %v19395_v40  ;;  %v11902_v21 = vsub.f32 %v19400_v22, %v17015_v14  ;;  %v10875_v12 = vpop.f32.mrb[23].mxu1 }
 0xf48   :  { %v17988_v25 = vpack.c.bf16 %v11907_v44, %v11904_v55  ;;  %v11994_v4 = vsub.f32 %v11899_v52, %v11904_v55  ;;  %v19542_v34 = vadd.f32 %v10875_v12, %v19737_v13  ;;  %v11901_v9 = vsub.f32 %v19407_v27, %v10875_v12 }
 0xf49   :  { %v12002_v1 = vand.u32 4294901760, %v12001_v59  ;;  %v11913_v17 = vand.u32 4294901760, %v11902_v21 }
 0xf4a   :  { %19738 = vst [vmem:[#allocation12_spill] sm:$0xff] %v19542_v34  ;;  %v11995_v3 = vand.u32 4294901760, %v11994_v4  ;;  %v11910_v30 = vand.u32 4294901760, %v11901_v9  ;;  %17989 = vmatprep.subr.bf16.mxu1 %v17988_v25  ;;  %v18004_v11 = vpack.c.bf16 %v12001_v59, %v11994_v4 }
 0xf4b   :  { %v12015_v42 = vsub.f32 %v11902_v21, %v11913_v17  ;;  %17991 = vmatpush3.bf16.msra.mxu1 %v17988_v25  ;;  %v12003_v40 = vsub.f32 %v12001_v59, %v12002_v1 }
 0xf4c   :  { %v17992_v31 = vpack.c.bf16 %v11913_v17, %v11910_v30  ;;  %v12008_v29 = vsub.f32 %v11901_v9, %v11910_v30  ;;  %v11996_v22 = vsub.f32 %v11994_v4, %v11995_v3  ;;  %v18020_v16 = vpack.c.bf16 %v12002_v1, %v11995_v3 }
 0xf4d   :  { %v12016_v18 = vand.u32 4294901760, %v12015_v42  ;;  %v12004_v62 = vand.u32 4294901760, %v12003_v40 }
 0xf4e   :  { %v12009_v52 = vand.u32 4294901760, %v12008_v29  ;;  %17993 = vmatprep.subr.bf16.mxu1 %v17992_v31  ;;  %v11997_v44 = vand.u32 4294901760, %v11996_v22  ;;  %v18008_v55 = vpack.c.bf16 %v12015_v42, %v12008_v29 }
 0xf4f   :  { %17995 = vmatpush3.bf16.msra.mxu1 %v17992_v31  ;;  %v12017_v27 = vsub.f32 %v12015_v42, %v12016_v18 }
 0xf50   :  { %v17996_v14 = vpack.c.bf16 %v12004_v62, %v11997_v44  ;;  %v12010_v12 = vsub.f32 %v12008_v29, %v12009_v52  ;;  %v18024_v13 = vpack.c.bf16 %v12016_v18, %v12009_v52 }
 0xf51   :  { %v12018_v34 = vand.u32 4294901760, %v12017_v27 }
 0xf52   :  { %17109 = vmatmul.mubr.f32.vlgmr.msra.gmra.mrb[24].mxu1 %v19130_v60  ;;  %17997 = vmatprep.subr.bf16.mxu1 %v17996_v14  ;;  %v12011_v59 = vand.u32 4294901760, %v12010_v12 }
 0xf53   :  { %17999 = vmatpush3.bf16.msra.mxu1 %v17996_v14  ;;  %17119 = vmatprep.mubr.f32.mxu1 %v19076_v32 }
 0xf54   :  { %v18000_v21 = vpack.c.bf16 %v12018_v34, %v12011_v59 }
 0xf56   :  { %18001 = vmatprep.subr.bf16.mxu1 %v18000_v21 }
 0xf57   :  { %18003 = vmatpush3.bf16.msra.mxu1 %v18000_v21 }
 0xf58   :  { %18005 = vmatprep.subr.bf16.mxu1 %v18004_v11 }
 0xf5a   :  { %17120 = vmatmul.mubr.f32.vlgmr.msra.gmra.mrb[24].mxu1 %v19102_v0 }
 0xf5b   :  { %18007 = vmatpush3.bf16.msra.mxu1 %v18004_v11  ;;  %17130 = vmatprep.mubr.f32.mxu1 %v19093_v37  ;;  %v19739_v37 = vld [vmem:[#allocation5_spill] sm:$0xff] }
 0xf5c   :  { %18009 = vmatprep.subr.bf16.mxu1 %v18008_v55 }
 0xf5f   :  { %18011 = vmatpush3.bf16.msra.mxu1 %v18008_v55 }
 0xf60   :  { %18013 = vmatprep.subr.bf16.mxu1 %v17988_v25 }
 0xf62   :  { %17131 = vmatmul.mubr.f32.vlgmr.msra.gmra.mrb[24].mxu1 %v19113_v20 }
 0xf63   :  { %18015 = vmatpush3.bf16.msra.mxu1 %v17988_v25  ;;  %17141 = vmatprep.mubr.f32.mxu1 %v19107_v63  ;;  %v19740_v63 = vld [vmem:[#allocation9_spill] sm:$0xff] }
 0xf64   :  { %18017 = vmatprep.subr.bf16.mxu1 %v17992_v31 }
 0xf67   :  { %18019 = vmatpush3.bf16.msra.mxu1 %v17992_v31 }
 0xf68   :  { %18021 = vmatprep.subr.bf16.mxu1 %v18020_v16 }
 0xf6a   :  { %17142 = vmatmul.mubr.f32.vlgmr.msra.gmra.mrb[24].mxu1 %v19121_v23 }
 0xf6b   :  { %18023 = vmatpush3.bf16.msra.mxu1 %v18020_v16  ;;  %17152 = vmatprep.mubr.f32.mxu1 %v19076_v32 }
 0xf6c   :  { %18025 = vmatprep.subr.bf16.mxu1 %v18024_v13 }
 0xf6f   :  { %18027 = vmatpush3.bf16.msra.mxu1 %v18024_v13 }
 0xf70   :  { %18029 = vmatprep.subr.bf16.mxu1 %v17988_v25 }
 0xf72   :  { %17153 = vmatmul.mubr.f32.vlgmr.msra.gmra.mrb[24].mxu1 %v19102_v0 }
 0xf73   :  { %18031 = vmatpush3.bf16.msra.mxu1 %v17988_v25  ;;  %17163 = vmatprep.mubr.f32.mxu1 %v19076_v32 }
 0xf74   :  { %18033 = vmatprep.subr.bf16.mxu1 %v17992_v31 }
 0xf77   :  { %18035 = vmatpush3.bf16.msra.mxu1 %v17992_v31  ;;  %v19741_v31 = vld [vmem:[#allocation8_spill] sm:$0xff] }
 0xf78   :  { %17310 = vmatprep.subr.mxu1 %v19739_v37 }
 0xf7a   :  { %17164 = vmatmul.mubr.f32.vlgmr.msra.gmra.mrb[24].mxu1 %v19102_v0 }
 0xf7b   :  { %17311 = vmatpush3.msra.mxu1 %v19739_v37 }
 0xf7c   :  { %17318 = vmatprep.subr.mxu1 %v19740_v63 }
0x104d   :  { %v17165_v20 = vpop.f32.mrb[24].mxu1 }
0x104e   :  { %v12435_v23 = vand.u32 4294901760, %v17165_v20  ;;  %v12421_v60 = vpop.f32.mrb[25].mxu1 }
0x104f   :  { %v12432_v4 = vand.u32 4294901760, %v12421_v60 }
0x1050   :  { %v12527_v34 = vsub.f32 %v17165_v20, %v12435_v23 }
0x1051   :  { %v18036_v9 = vpack.c.bf16 %v12435_v23, %v12432_v4  ;;  %v12520_v1 = vsub.f32 %v12421_v60, %v12432_v4 }
0x1052   :  { %v12528_v25 = vand.u32 4294901760, %v12527_v34 }
0x1053   :  { %v12521_v17 = vand.u32 4294901760, %v12520_v1  ;;  %18037 = vmatprep.subr.bf16.mxu0 %v18036_v9  ;;  %v18044_v32 = vpack.c.bf16 %v12527_v34, %v12520_v1 }
0x1054   :  { %v12529_v3 = vsub.f32 %v12527_v34, %v12528_v25  ;;  %18039 = vmatpush3.bf16.msra.mxu0 %v18036_v9 }
0x1055   :  { %v12522_v30 = vsub.f32 %v12520_v1, %v12521_v17  ;;  %v18052_v11 = vpack.c.bf16 %v12528_v25, %v12521_v17  ;;  %v19745_v1 = vld [vmem:[#allocation6_spill] sm:$0xff]  ;;  %v19746_v25 = vld [vmem:[#allocation7_spill] sm:$0xff] }
0x1056   :  { %v12530_v0 = vand.u32 4294901760, %v12529_v3 }
0x1057   :  { %17171 = vmatmul.mubr.f32.vlgmr.msra.gmra.mrb[26].mxu0 %v19245_v48  ;;  %v12523_v42 = vand.u32 4294901760, %v12522_v30  ;;  %v19742_v48 = vld [vmem:[#allocation10_spill] sm:$0xff] }
0x1058   :  { %17177 = vmatprep.mubr.f32.mxu0 %v19217_v26 }
0x1059   :  { %v18040_v40 = vpack.c.bf16 %v12530_v0, %v12523_v42 }
0x105b   :  { %18041 = vmatprep.subr.bf16.mxu0 %v18040_v40 }
0x105c   :  { %18043 = vmatpush3.bf16.msra.mxu0 %v18040_v40 }
0x105d   :  { %18045 = vmatprep.subr.bf16.mxu0 %v18044_v32 }
0x105f   :  { %17178 = vmatmul.mubr.f32.vlgmr.msra.gmra.mrb[26].mxu0 %v19220_v35 }
0x1060   :  { %18047 = vmatpush3.bf16.msra.mxu0 %v18044_v32  ;;  %17184 = vmatprep.mubr.f32.mxu0 %v19224_v36  ;;  %v19743_v36 = vld [vmem:[#allocation11_spill] sm:$0xff] }
0x1061   :  { %18049 = vmatprep.subr.bf16.mxu0 %v18036_v9 }
0x1067   :  { %17185 = vmatmul.mubr.f32.vlgmr.msra.gmra.mrb[26].mxu0 %v19228_v50 }
0x1068   :  { %18051 = vmatpush3.bf16.msra.mxu0 %v18036_v9  ;;  %17191 = vmatprep.mubr.f32.mxu0 %v19741_v31 }
0x1069   :  { %18053 = vmatprep.subr.bf16.mxu0 %v18052_v11 }
0x106f   :  { %17192 = vmatmul.mubr.f32.vlgmr.msra.gmra.mrb[26].mxu0 %v19742_v48 }
0x1070   :  { %18055 = vmatpush3.bf16.msra.mxu0 %v18052_v11  ;;  %17198 = vmatprep.mubr.f32.mxu0 %v19217_v26 }
0x1071   :  { %18057 = vmatprep.subr.bf16.mxu0 %v18036_v9 }
0x1077   :  { %17199 = vmatmul.mubr.f32.vlgmr.msra.gmra.mrb[26].mxu0 %v19220_v35 }
0x1078   :  { %18059 = vmatpush3.bf16.msra.mxu0 %v18036_v9  ;;  %17205 = vmatprep.mubr.f32.mxu0 %v19217_v26 }
0x107f   :  { %17206 = vmatmul.mubr.f32.vlgmr.msra.gmra.mrb[26].mxu0 %v19220_v35 }
0x1080   :  { %17212 = vmatprep.mubr.f32.mxu0 %v19743_v36 }
0x1152   :  { %v17207_v50 = vpop.f32.mrb[26].mxu0 }
0x1153   :  { %v12937_v29 = vand.u32 4294901760, %v17207_v50  ;;  %v12923_v22 = vpop.f32.mrb[27].mxu0 }
0x1154   :  { %v12934_v16 = vand.u32 4294901760, %v12923_v22 }
0x1155   :  { %v13049_v18 = vsub.f32 %v17207_v50, %v12937_v29 }
0x1156   :  { %v19571_v62 = vpack.c.bf16 %v12937_v29, %v12934_v16  ;;  %v13042_v52 = vsub.f32 %v12923_v22, %v12934_v16  ;;  %v18492_v16 = vld [vmem:[%s19700_s4] ss:$0 sm:$0xff] }
0x1157   :  { %v13050_v44 = vand.u32 4294901760, %v13049_v18 }
0x1158   :  { %v13043_v55 = vand.u32 4294901760, %v13042_v52  ;;  %v18068_v27 = vpack.c.bf16 %v13049_v18, %v13042_v52  ;;  %18061 = vmatprep.subr.bf16.mxu0 %v19571_v62 }
0x1159   :  { %v13051_v14 = vsub.f32 %v13049_v18, %v13050_v44  ;;  %18063 = vmatpush3.bf16.msra.mxu0 %v19571_v62 }
0x115a   :  { %v13044_v26 = vsub.f32 %v13042_v52, %v13043_v55  ;;  %v18076_v35 = vpack.c.bf16 %v13050_v44, %v13043_v55 }
0x115b   :  { %v13052_v12 = vand.u32 4294901760, %v13051_v14 }
0x115c   :  { %v13045_v13 = vand.u32 4294901760, %v13044_v26  ;;  %17213 = vmatmul.mubr.f32.vlgmr.msra.gmra.mrb[28].mxu0 %v19334_v39  ;;  %v19744_v39 = vld [vmem:[#allocation12_spill] sm:$0xff] }
0x115d   :  { %17215 = vmatprep.mubr.f32.mxu0 %v19339_v19 }
0x115e   :  { %v18064_v59 = vpack.c.bf16 %v13052_v12, %v13045_v13 }
0x1160   :  { %17216 = vmatmul.mubr.f32.gmra.mrb[30].mxu0 %v19344_v56  ;;  %18065 = vmatprep.subr.bf16.mxu0 %v18064_v59 }
0x1161   :  { %18067 = vmatpush3.bf16.msra.mxu0 %v18064_v59  ;;  %17222 = vmatprep.mubr.f32.mxu0 %v19261_v33 }
0x1162   :  { %18069 = vmatprep.subr.bf16.mxu0 %v18068_v27 }
0x1164   :  { %17223 = vmatmul.mubr.f32.vlgmr.msra.gmra.mrb[28].mxu0 %v19299_v54 }
0x1165   :  { %18071 = vmatpush3.bf16.msra.mxu0 %v18068_v27  ;;  %17225 = vmatprep.mubr.f32.mxu0 %v19301_v45 }
0x1166   :  { %18073 = vmatprep.subr.bf16.mxu0 %v19571_v62 }
0x1168   :  { %17226 = vmatmul.mubr.f32.gmra.mrb[30].mxu0 %v19308_v41 }
0x1169   :  { %17232 = vmatprep.mubr.f32.mxu0 %v19264_v15 }
0x116c   :  { %17233 = vmatmul.mubr.f32.vlgmr.msra.gmra.mrb[28].mxu0 %v19306_v7 }
0x116d   :  { %18075 = vmatpush3.bf16.msra.mxu0 %v19571_v62  ;;  %17235 = vmatprep.mubr.f32.mxu0 %v19311_v47 }
0x116e   :  { %18077 = vmatprep.subr.bf16.mxu0 %v18076_v35 }
0x1170   :  { %17236 = vmatmul.mubr.f32.gmra.mrb[30].mxu0 %v19317_v38 }
0x1171   :  { %17242 = vmatprep.mubr.f32.mxu0 %v19267_v53 }
0x1174   :  { %17243 = vmatmul.mubr.f32.vlgmr.msra.gmra.mrb[28].mxu0 %v19314_v43 }
0x1175   :  { %18079 = vmatpush3.bf16.msra.mxu0 %v18076_v35  ;;  %17245 = vmatprep.mubr.f32.mxu0 %v19320_v49 }
0x1176   :  { %18081 = vmatprep.subr.bf16.mxu0 %v19571_v62 }
0x1178   :  { %17246 = vmatmul.mubr.f32.gmra.mrb[30].mxu0 %v19325_v28 }
0x1179   :  { %17252 = vmatprep.mubr.f32.mxu0 %v19261_v33 }
0x117c   :  { %17253 = vmatmul.mubr.f32.vlgmr.msra.gmra.mrb[28].mxu0 %v19299_v54 }
0x117d   :  { %18083 = vmatpush3.bf16.msra.mxu0 %v19571_v62  ;;  %17255 = vmatprep.mubr.f32.mxu0 %v19301_v45 }
0x117e   :  { %18085 = vmatprep.subr.bf16.mxu0 %v19571_v62 }
0x1180   :  { %17256 = vmatmul.mubr.f32.gmra.mrb[30].mxu0 %v19308_v41 }
0x1181   :  { %17262 = vmatprep.mubr.f32.mxu0 %v19261_v33 }
0x1184   :  { %17263 = vmatmul.mubr.f32.vlgmr.msra.gmra.mrb[28].mxu0 %v19299_v54 }
0x1185   :  { %18087 = vmatpush3.bf16.msra.mxu0 %v19571_v62  ;;  %17265 = vmatprep.mubr.f32.mxu0 %v19301_v45 }
0x1186   :  { %18089 = vmatprep.subr.bf16.mxu0 %v18064_v59 }
0x1188   :  { %17266 = vmatmul.mubr.f32.gmra.mrb[30].mxu0 %v19308_v41 }
0x1189   :  { %17272 = vmatprep.mubr.f32.mxu0 %v19450_v58 }
0x118c   :  { %17273 = vmatmul.mubr.f32.vlgmr.msra.gmra.mrb[24].mxu0 %v19467_v10 }
0x118d   :  { %18091 = vmatpush3.bf16.msra.mxu0 %v18064_v59  ;;  %17279 = vmatprep.mubr.f32.mxu0 %v19440_v6 }
0x118e   :  { %18093 = vmatprep.subr.bf16.mxu0 %v18068_v27 }
0x1194   :  { %17280 = vmatmul.mubr.f32.vlgmr.msra.gmra.mrb[24].mxu0 %v19457_v51 }
0x1195   :  { %18095 = vmatpush3.bf16.msra.mxu0 %v18068_v27  ;;  %17286 = vmatprep.mubr.f32.mxu0 %v19443_v57 }
0x1196   :  { %18097 = vmatprep.subr.bf16.mxu0 %v19571_v62 }
0x119c   :  { %17287 = vmatmul.mubr.f32.vlgmr.msra.gmra.mrb[24].mxu0 %v19460_v8 }
0x119d   :  { %18099 = vmatpush3.bf16.msra.mxu0 %v19571_v62  ;;  %17293 = vmatprep.mubr.f32.mxu0 %v19446_v2 }
0x119e   :  { %18101 = vmatprep.subr.bf16.mxu0 %v18076_v35 }
0x11a4   :  { %17294 = vmatmul.mubr.f32.vlgmr.msra.gmra.mrb[24].mxu0 %v19463_v46 }
0x11a5   :  { %18103 = vmatpush3.bf16.msra.mxu0 %v18076_v35  ;;  %17300 = vmatprep.mubr.f32.mxu0 %v19440_v6 }
0x11a6   :  { %18105 = vmatprep.subr.bf16.mxu0 %v19571_v62 }
0x11ac   :  { %17301 = vmatmul.mubr.f32.vlgmr.msra.gmra.mrb[24].mxu0 %v19457_v51 }
0x11ad   :  { %18107 = vmatpush3.bf16.msra.mxu0 %v19571_v62  ;;  %17307 = vmatprep.mubr.f32.mxu0 %v19440_v6 }
0x11b4   :  { %17308 = vmatmul.mubr.f32.vlgmr.msra.gmra.mrb[24].mxu0 %v19457_v51 }
0x1257   :  { %v17264_v33 = vpop.f32.mrb[28].mxu0 }
0x1258   :  { %v14024_v15 = vadd.f32 %v17264_v33, %v19530_v5  ;;  %v13499_v53 = vpop.f32.mrb[29].mxu0 }
0x1259   :  { %v14023_v54 = vadd.f32 %v13499_v53, %v19534_v61 }
0x125a   :  { %v14033_v45 = vsel %vm6485_vm2, %v14024_v15, 0 }
0x125b   :  { %v19623_v7 = vand.u32 4294901760, %v14033_v45  ;;  %v14030_v41 = vsel %vm6485_vm2, %v14023_v54, 0  ;;  %v17267_v47 = vpop.f32.mrb[30].mxu0 }
0x125c   :  { %v14107_v43 = vand.u32 4294901760, %v14030_v41  ;;  %v14026_v38 = vadd.f32 %v17267_v47, %v19538_v24  ;;  %v13511_v49 = vpop.f32.mrb[31].mxu0 }
0x125d   :  { %v14118_v28 = vsub.f32 %v14033_v45, %v19623_v7  ;;  %v14025_v19 = vadd.f32 %v13511_v49, %v19744_v39 }
0x125e   :  { %v14108_v56 = vsub.f32 %v14030_v41, %v14107_v43  ;;  %v14039_v6 = vsel %vm6485_vm2, %v14026_v38, 0 }
0x125f   :  { %v14119_v57 = vand.u32 4294901760, %v14118_v28  ;;  %v19630_v2 = vand.u32 4294901760, %v14039_v6  ;;  %v14036_v58 = vsel %vm6485_vm2, %v14025_v19, 0 }
0x1260   :  { %v14127_v51 = vand.u32 4294901760, %v14036_v58  ;;  %v14109_v8 = vand.u32 4294901760, %v14108_v56 }
0x1261   :  { %v14138_v46 = vsub.f32 %v14039_v6, %v19630_v2  ;;  %v14120_v10 = vsub.f32 %v14118_v28, %v14119_v57 }
0x1262   :  { %v14128_v5 = vsub.f32 %v14036_v58, %v14127_v51  ;;  %v14110_v61 = vsub.f32 %v14108_v56, %v14109_v8 }
0x1263   :  { %v14139_v24 = vand.u32 4294901760, %v14138_v46  ;;  %v14121_v23 = vand.u32 4294901760, %v14120_v10 }
0x1264   :  { %v14111_v21 = vand.u32 4294901760, %v14110_v61  ;;  %v14129_v20 = vand.u32 4294901760, %v14128_v5 }
0x1265   :  { %v14140_v60 = vsub.f32 %v14138_v46, %v14139_v24 }
0x1266   :  { %17312 = vmatprep.mubr.f32.mxu1 %v14111_v21  ;;  %v14130_v4 = vsub.f32 %v14128_v5, %v14129_v20 }
0x1267   :  { %17313 = vmatmul.mubr.f32.vlgmr.msra.gmra.mrb[26].mxu1 %v14121_v23  ;;  %v14141_v9 = vand.u32 4294901760, %v14140_v60 }
0x1268   :  { %v14131_v34 = vand.u32 4294901760, %v14130_v4  ;;  %17319 = vmatpush3.msra.mxu1 %v19740_v63 }
0x1269   :  { %17326 = vmatprep.subr.mxu1 %v19745_v1 }
0x126a   :  { %17315 = vmatprep.mubr.f32.mxu1 %v14131_v34 }
0x126b   :  { %17316 = vmatmul.mubr.f32.gmra.mrb[28].mxu1 %v14141_v9 }
0x126c   :  { %17320 = vmatprep.mubr.f32.mxu1 %v14107_v43 }
0x126f   :  { %17321 = vmatmul.mubr.f32.vlgmr.msra.gmra.mrb[26].mxu1 %v19623_v7 }
0x1270   :  { %17323 = vmatprep.mubr.f32.mxu1 %v14127_v51  ;;  %17327 = vmatpush3.msra.mxu1 %v19745_v1 }
0x1271   :  { %17334 = vmatprep.subr.mxu1 %v19739_v37 }
0x1273   :  { %17324 = vmatmul.mubr.f32.gmra.mrb[28].mxu1 %v19630_v2 }
0x1274   :  { %17328 = vmatprep.mubr.f32.mxu1 %v14108_v56 }
0x1277   :  { %17329 = vmatmul.mubr.f32.vlgmr.msra.gmra.mrb[26].mxu1 %v14118_v28 }
0x1278   :  { %17331 = vmatprep.mubr.f32.mxu1 %v14128_v5  ;;  %17335 = vmatpush3.msra.mxu1 %v19739_v37 }
0x1279   :  { %17342 = vmatprep.subr.mxu1 %v19746_v25 }
0x127b   :  { %17332 = vmatmul.mubr.f32.gmra.mrb[28].mxu1 %v14138_v46 }
0x127c   :  { %17336 = vmatprep.mubr.f32.mxu1 %v14109_v8 }
0x127f   :  { %17337 = vmatmul.mubr.f32.vlgmr.msra.gmra.mrb[26].mxu1 %v14119_v57 }
0x1280   :  { %17339 = vmatprep.mubr.f32.mxu1 %v14129_v20  ;;  %17343 = vmatpush3.msra.mxu1 %v19746_v25 }
0x1281   :  { %17350 = vmatprep.subr.mxu1 %v19739_v37 }
0x1283   :  { %17340 = vmatmul.mubr.f32.gmra.mrb[28].mxu1 %v14139_v24 }
0x1284   :  { %17344 = vmatprep.mubr.f32.mxu1 %v14107_v43 }
0x1287   :  { %v17309_v17 = vpop.f32.mrb[24].mxu0  ;;  %17345 = vmatmul.mubr.f32.vlgmr.msra.gmra.mrb[26].mxu1 %v19623_v7 }
0x1288   :  { %v14625_v32 = vsel %vm6485_vm2, %v17309_v17, 0  ;;  %v14013_v3 = vpop.f32.mrb[25].mxu0  ;;  %17347 = vmatprep.mubr.f32.mxu1 %v14127_v51  ;;  %17351 = vmatpush3.msra.mxu1 %v19739_v37 }
0x1289   :  { %v14703_v30 = vand.u32 4294901760, %v14625_v32  ;;  %v14622_v11 = vsel %vm6485_vm2, %v14013_v3, 0  ;;  %17358 = vmatprep.subr.mxu1 %v19739_v37 }
0x128a   :  { %v14693_v0 = vand.u32 4294901760, %v14622_v11 }
0x128b   :  { %v14704_v42 = vsub.f32 %v14625_v32, %v14703_v30  ;;  %17348 = vmatmul.mubr.f32.gmra.mrb[28].mxu1 %v19630_v2 }
0x128c   :  { %v14694_v40 = vsub.f32 %v14622_v11, %v14693_v0  ;;  %17352 = vmatprep.mubr.f32.mxu1 %v14107_v43 }
0x128d   :  { %v14705_v31 = vand.u32 4294901760, %v14704_v42 }
0x128e   :  { %v14695_v48 = vand.u32 4294901760, %v14694_v40 }
0x128f   :  { %17353 = vmatmul.mubr.f32.vlgmr.msra.gmra.mrb[26].mxu1 %v19623_v7  ;;  %v14706_v50 = vsub.f32 %v14704_v42, %v14705_v31 }
0x1290   :  { %17355 = vmatprep.mubr.f32.mxu1 %v14127_v51  ;;  %17359 = vmatpush3.msra.mxu1 %v19739_v37  ;;  %v14696_v36 = vsub.f32 %v14694_v40, %v14695_v48 }
0x1291   :  { %17363 = vmatprep.subr.mxu1 %v19740_v63  ;;  %v14707_v22 = vand.u32 4294901760, %v14706_v50 }
0x1292   :  { %v14697_v29 = vand.u32 4294901760, %v14696_v36 }
0x1293   :  { %17356 = vmatmul.mubr.f32.gmra.mrb[28].mxu1 %v19630_v2 }
0x1294   :  { %17360 = vmatprep.mubr.f32.mxu1 %v14697_v29 }
0x1297   :  { %17361 = vmatmul.mubr.f32.vlgmr.msra.gmra.mrb[30].mxu1 %v14707_v22 }
0x1298   :  { %17365 = vmatprep.mubr.f32.mxu1 %v14693_v0  ;;  %17364 = vmatpush3.msra.mxu1 %v19740_v63 }
0x1299   :  { %17368 = vmatprep.subr.mxu1 %v19745_v1 }
0x129f   :  { %17366 = vmatmul.mubr.f32.vlgmr.msra.gmra.mrb[30].mxu1 %v14703_v30 }
0x12a0   :  { %17370 = vmatprep.mubr.f32.mxu1 %v14694_v40  ;;  %17369 = vmatpush3.msra.mxu1 %v19745_v1 }
0x12a1   :  { %17373 = vmatprep.subr.mxu1 %v19739_v37 }
0x12a7   :  { %17371 = vmatmul.mubr.f32.vlgmr.msra.gmra.mrb[30].mxu1 %v14704_v42 }
0x12a8   :  { %17375 = vmatprep.mubr.f32.mxu1 %v14695_v48  ;;  %17374 = vmatpush3.msra.mxu1 %v19739_v37 }
0x12a9   :  { %17378 = vmatprep.subr.mxu1 %v19746_v25 }
0x12af   :  { %17376 = vmatmul.mubr.f32.vlgmr.msra.gmra.mrb[30].mxu1 %v14705_v31 }
0x12b0   :  { %17380 = vmatprep.mubr.f32.mxu1 %v14693_v0  ;;  %17379 = vmatpush3.msra.mxu1 %v19746_v25 }
0x12b1   :  { %17383 = vmatprep.subr.mxu1 %v19739_v37 }
0x12b7   :  { %17381 = vmatmul.mubr.f32.vlgmr.msra.gmra.mrb[30].mxu1 %v14703_v30 }
0x12b8   :  { %17385 = vmatprep.mubr.f32.mxu1 %v14693_v0  ;;  %17384 = vmatpush3.msra.mxu1 %v19739_v37 }
0x12bf   :  { %17386 = vmatmul.mubr.f32.vlgmr.msra.gmra.mrb[30].mxu1 %v14703_v30 }
0x1362   :  { %v17354_v63 = vpop.f32.mrb[26].mxu1 }
0x1363   :  { %v18114_v18 = vadd.f32 %v18492_v16, %v17354_v63  ;;  %v14594_v62 = vpop.f32.mrb[27].mxu1 }
0x1364   :  { %v18115_v52 = vadd.f32 %v18492_v16, %v14594_v62 }
0x1365   :  { %15153 = vst.msk [vmem:[%s19701_s5 + $0x28] sm:$0xff] %vm604_vm1, %v18114_v18 }
0x1366   :  { %15152 = vst.msk [vmem:[%s19701_s5 + $0x20] sm:$0xff] %vm604_vm1, %v18115_v52  ;;  %v17357_v37 = vpop.f32.mrb[28].mxu1 }
0x1367   :  { %v18116_v44 = vadd.f32 %v18492_v16, %v17357_v37  ;;  %v14606_v55 = vpop.f32.mrb[29].mxu1 }
0x1368   :  { %v18117_v27 = vadd.f32 %v18492_v16, %v14606_v55 }
0x1369   :  { %15155 = vst.msk [vmem:[%s19701_s5 + $0x38] sm:$0xff] %vm604_vm1, %v18116_v44 }
0x136a   :  { %15154 = vst.msk [vmem:[%s19701_s5 + $0x30] sm:$0xff] %vm604_vm1, %v18117_v27 }
0x1392   :  { %v17387_v14 = vpop.f32.mrb[30].mxu1 }
0x1393   :  { %v18118_v26 = vadd.f32 %v18492_v16, %v17387_v14  ;;  %v15106_v35 = vpop.f32.mrb[31].mxu1 }
0x1394   :  { %v18119_v12 = vadd.f32 %v18492_v16, %v15106_v35 }
0x1395   :  { %15118 = vst.msk [vmem:[#allocation2 + $0x18] sm:$0xff] %vm604_vm1, %v18118_v26 }
0x1396   :  { %15117 = vst.msk [vmem:[#allocation2 + $0x10] sm:$0xff] %vm604_vm1, %v18119_v12 }
0x1397   :  { %18504 = shalt.err (!%p18501_p4)
}
0x1398   :  { %s18505_s16 = scalar_lea.hbm %s19702_s6, 512 }
0x1399   :  { %p18506_p5 = scmp.ne.s32.totalorder %s19702_s6, %s18505_s16  ;;  %p18509_p6 = scmp.lt.u32.totalorder %s18505_s16, %s19702_s6 }
0x139b   :  { %p18511_p7 = pnand %p18509_p6, %p18506_p5 }
0x139d   :  { %18514 = shalt.err (!%p18511_p7)
}
0x139e   :  { %s18518_s20 = smov 128   ;;  %s18519_s21 = smov 8  }
0x139f   :  { %15132 = dma.vmem_to_hbm [thread:$0]  %s15127_s3, 512, %s19702_s6, [#allocation3], %s18518_s20, %s18518_s20, %s18519_s21  }
0x13a0   :  { %18515 = dma.done.wait [#allocation3], 512  }
0x13a1   :  { %18516 = vsyncadd [#allocation3], 4294966784 }
0x13a2   :  { %15138 = vsyncpa [#allocation3], 1 }

</bundles_post_ra>
